<compile_context>
chip_gen: v6e
topology: v6e:2x2x1
jax: 0.10.0
libtpu: 0.0.40
codegen_flags: <defaults>
</compile_context>

<pallas_src>
import jax
import jax.numpy as jnp
from jax.experimental import pallas as pl
from jax.experimental.pallas import tpu as pltpu

N_CONV = 13  # 9 BasicBlock_1 end convs + 3 BasicBlock_2 end convs + 1 BasicBlock_3 end conv


def _make_kernel(C, chunk, n_chunks):
    """Kernel over one (C, tl) tile; walks it in `chunk`-lane sub-chunks inside a
    real loop so live ranges stay bounded (no spills) while the grid tile stays
    large for DMA / per-step-overhead amortization."""

    def kernel(x_ref, wb_ref, o_ref):
        # x_ref : (C, tl)        channels on sublanes, positions on lanes
        # wb_ref: (13, C, C+1)   packed weights: [..., :C] = W (out, in), [..., C] = bias
        #                        (BasicBlock_1's 2x is pre-folded into convs 0..8)
        # o_ref : (C, tl)

        def conv1x1(u, k):
            # out[o,t] = b[o] + sum_i W[o,i] * u[i,t], as C VPU broadcast-FMAs:
            # (C,1) weight column (lane-broadcast) * (1,Tc) activation row
            # (sublane-broadcast).  The activation broadcast is inherently per
            # (conv, i) -- u changes every conv, so it cannot be hoisted -- and the
            # VALU mul/add stream is co-bound with it; this is the VPU floor.
            acc = wb_ref[k, :, C:C + 1]                        # bias (C, 1)
            for i in range(C):                                 # unrolled at trace time
                acc = acc + wb_ref[k, :, i:i + 1] * u[i:i + 1, :]
            return acc

        def basic1(u, k):
            # BasicBlock_1(u) == relu(end1_k(2*u)); the 2x is folded into the weights.
            return jnp.maximum(conv1x1(u, k), 0.0)

        def basic2(u, j):
            # BasicBlock_2(u): three BasicBlock_1s, then relu(end2_j(v + 2*u)).
            v = basic1(u, 3 * j + 0)
            v = basic1(v, 3 * j + 1)
            v = basic1(v, 3 * j + 2)
            return jnp.maximum(conv1x1(v + 2.0 * u, 9 + j), 0.0)

        def block3(x):
            # BasicBlock_3: three BasicBlock_2s, then relu(end3(w + 2*x)).
            u = basic2(x, 0)
            u = basic2(u, 1)
            u = basic2(u, 2)
            return jnp.maximum(conv1x1(u + 2.0 * x, 12), 0.0)

        if n_chunks == 1:
            o_ref[...] = block3(x_ref[...]).astype(o_ref.dtype)
        else:
            # Real loop (not a Python for) so the compiler bounds live ranges to
            # one sub-chunk at a time (~16-24 vregs), eliminating spills.
            @pl.loop(0, n_chunks)
            def _(ci):
                start = pl.multiple_of(ci * chunk, chunk)
                x = x_ref[:, pl.ds(start, chunk)]
                o_ref[:, pl.ds(start, chunk)] = block3(x).astype(o_ref.dtype)

    return kernel


def prepare_kernel_params(params, dtype=jnp.float32):
    """Pack all 13 conv weights + biases into one (13, C, C+1) array.
    Conv order: 0..8 = BasicBlock_1 end convs (exact 2x fold applied),
    9..11 = BasicBlock_2 end convs, 12 = BasicBlock_3 end conv."""
    w1, b1, w2, b2, w3, b3 = params                 # natural layout: W (out,in), b (out,)
    w_all = jnp.concatenate([2.0 * w1, w2, w3[None]], axis=0)     # (13, C, C)
    b_all = jnp.concatenate([b1, b2, b3[None]], axis=0)           # (13, C)
    return jnp.concatenate([w_all, b_all[..., None]], axis=-1).astype(dtype)  # (13, C, C+1)


def _largest_tile(total, cap):
    """Largest multiple of 128 that divides `total` (itself a 128-multiple) and is
    <= max(cap, 128)."""
    t = max(128, (min(cap, total) // 128) * 128)
    while total % t:
        t -= 128
    return t


def basic_block_3_pallas(x_ncl, params, *, max_tl=8192, chunk=512):
    """x_ncl: (N, C, L) float32, params in natural PyTorch layout."""
    N, C, L = x_ncl.shape
    packed = prepare_kernel_params(params)
    assert packed.shape == (N_CONV, C, C + 1)

    # Lane-align L so every store is a full-width unmasked vst; slice back after.
    Lp = ((L + 127) // 128) * 128
    xp = x_ncl if Lp == L else jnp.pad(x_ncl, ((0, 0), (0, 0), (0, Lp - L)))

    # Grid tile: largest 128-multiple divisor of Lp fitting max_tl.  If there is
    # no batch parallelism, split L so a v7x megacore gets >= 2 grid steps.
    tl = _largest_tile(Lp, max_tl)
    if N == 1 and Lp // tl < 2 and Lp >= 256:
        tl = _largest_tile(Lp, Lp // 2)

    # In-kernel sub-chunk width (~512 lanes keeps the live vreg set small).
    ch = _largest_tile(tl, min(chunk, tl))
    n_chunks = tl // ch

    grid = (N, Lp // tl)
    out = pl.pallas_call(
        _make_kernel(C, ch, n_chunks),
        out_shape=jax.ShapeDtypeStruct((N, C, Lp), x_ncl.dtype),
        grid=grid,
        in_specs=[
            pl.BlockSpec((None, C, tl), lambda n, l: (n, 0, l)),        # x, NCL layout
            pl.BlockSpec((N_CONV, C, C + 1), lambda n, l: (0, 0, 0)),   # packed W | b, resident
        ],
        out_specs=pl.BlockSpec((None, C, tl), lambda n, l: (n, 0, l)),
        compiler_params=pltpu.CompilerParams(
            dimension_semantics=("parallel", "parallel")),
    )(xp, packed)
    return out if Lp == L else out[:, :, :L]


def basic_block_3_reference(x_ncl, params):
    """Pure-JAX, exact-f32 mirror of the (in-place-aware) PyTorch forward."""
    w1, b1, w2, b2, w3, b3 = params

    def conv(u, w, b):   # u: (N, C, L), w: (out, in), b: (out,)
        return jnp.sum(w[None, :, :, None] * u[:, None, :, :], axis=2) + b[None, :, None]

    def basic1(u, k):
        return jax.nn.relu(conv(2.0 * u, w1[k], b1[k]))

    def basic2(u, j):
        v = basic1(u, 3 * j + 0)
        v = basic1(v, 3 * j + 1)
        v = basic1(v, 3 * j + 2)
        return jax.nn.relu(conv(v + 2.0 * u, w2[j], b2[j]))

    u = basic2(x_ncl, 0)
    u = basic2(u, 1)
    u = basic2(u, 2)
    return jax.nn.relu(conv(u + 2.0 * x_ncl, w3, b3))


def init_params(key, c):
    # Deterministic synthetic init (uniform +/- 1/sqrt(c), Conv1d-style),
    # natural PyTorch layout: W (out, in), b (out,).
    ks = jax.random.split(key, 6)
    s = 1.0 / jnp.sqrt(c)
    w1 = jax.random.uniform(ks[0], (9, c, c), jnp.float32, -s, s)  # BasicBlock_1 end convs
    b1 = jax.random.uniform(ks[1], (9, c), jnp.float32, -s, s)
    w2 = jax.random.uniform(ks[2], (3, c, c), jnp.float32, -s, s)  # BasicBlock_2 end convs
    b2 = jax.random.uniform(ks[3], (3, c), jnp.float32, -s, s)
    w3 = jax.random.uniform(ks[4], (c, c), jnp.float32, -s, s)     # BasicBlock_3 end conv
    b3 = jax.random.uniform(ks[5], (c,), jnp.float32, -s, s)
    return (w1, b1, w2, b2, w3, b3)


if __name__ == "__main__":
    # NOTE: these sizes are correctness checks, not a benchmark -- at this scale
    # wall time is launch / per-grid-step overhead, not kernel throughput.
    C = 8
    key = jax.random.PRNGKey(0)
    kx, kp = jax.random.split(key)
    params = init_params(kp, C)

    checks = [
        # (N, L, kwargs): exercise the single-chunk path, the in-kernel sub-chunk
        # loop, and the L-padding + multi-tile-grid path respectively.
        (2, 256, dict()),
        (2, 512, dict(max_tl=512, chunk=128)),
        (2, 200, dict(max_tl=128)),
    ]
    for idx, (n, l, kw) in enumerate(checks):
        x = jax.random.normal(jax.random.fold_in(kx, idx), (n, C, l), dtype=jnp.float32)
        out = jax.block_until_ready(basic_block_3_pallas(x, params, **kw))
        ref = jax.block_until_ready(basic_block_3_reference(x, params))
        assert out.shape == (n, C, l), f"bad shape in check {idx}"
        assert jnp.allclose(out, ref, atol=2e-5, rtol=2e-5), f"mismatch vs reference in check {idx}"
    print("KERNEL_OK")
</pallas_src>

<mosaic_0001>
module attributes {stable_mosaic.version = 11 : i64} {
  func.func @kernel(%arg0: i32, %arg1: i32, %arg2: memref<1x8x256xf32, #tpu.memory_space<vmem>>, %arg3: memref<13x8x9xf32, #tpu.memory_space<vmem>>, %arg4: memref<1x8x256xf32, #tpu.memory_space<vmem>>) attributes {dimension_semantics = [#tpu.dimension_semantics<parallel>, #tpu.dimension_semantics<parallel>], iteration_bounds = array<i64: 2, 1>, scalar_prefetch = 0 : i64, scratch_operands = 0 : i64, tpu.core_type = #tpu.core_type<tc>, window_params = [{transform_indices = @transform_0, window_bounds = array<i64: 1, 8, 256>}, {pipeline_mode = #tpu.pipeline_mode<synchronous>, transform_indices = @transform_1, window_bounds = array<i64: 13, 8, 9>}, {transform_indices = @transform_2, window_bounds = array<i64: 1, 8, 256>}]} {
    %c0 = arith.constant 0 : index
    %c0_0 = arith.constant 0 : index
    %c0_1 = arith.constant 0 : index
    %0 = vector.load %arg2[%c0, %c0_0, %c0_1] : memref<1x8x256xf32, #tpu.memory_space<vmem>>, vector<1x8x256xf32>
    %1 = vector.shape_cast %0 : vector<1x8x256xf32> to vector<8x256xf32>
    %c0_2 = arith.constant 0 : index
    %c0_3 = arith.constant 0 : index
    %c8 = arith.constant 8 : index
    %2 = vector.load %arg3[%c0_2, %c0_3, %c8] : memref<13x8x9xf32, #tpu.memory_space<vmem>>, vector<1x8x1xf32>
    %3 = vector.shape_cast %2 : vector<1x8x1xf32> to vector<8x1xf32>
    %c0_4 = arith.constant 0 : index
    %c0_5 = arith.constant 0 : index
    %c0_6 = arith.constant 0 : index
    %4 = vector.load %arg3[%c0_4, %c0_5, %c0_6] : memref<13x8x9xf32, #tpu.memory_space<vmem>>, vector<1x8x1xf32>
    %5 = vector.shape_cast %4 : vector<1x8x1xf32> to vector<8x1xf32>
    %6 = vector.extract_strided_slice %1 {offsets = [0, 0], sizes = [1, 256], strides = [1, 1]} : vector<8x256xf32> to vector<1x256xf32>
    %7 = vector.broadcast %5 : vector<8x1xf32> to vector<8x256xf32>
    %8 = vector.broadcast %6 : vector<1x256xf32> to vector<8x256xf32>
    %9 = arith.mulf %7, %8 : vector<8x256xf32>
    %10 = vector.broadcast %3 : vector<8x1xf32> to vector<8x256xf32>
    %11 = arith.addf %10, %9 : vector<8x256xf32>
    %c0_7 = arith.constant 0 : index
    %c0_8 = arith.constant 0 : index
    %c1 = arith.constant 1 : index
    %12 = vector.load %arg3[%c0_7, %c0_8, %c1] : memref<13x8x9xf32, #tpu.memory_space<vmem>>, vector<1x8x1xf32>
    %13 = vector.shape_cast %12 : vector<1x8x1xf32> to vector<8x1xf32>
    %14 = vector.extract_strided_slice %1 {offsets = [1, 0], sizes = [1, 256], strides = [1, 1]} : vector<8x256xf32> to vector<1x256xf32>
    %15 = vector.broadcast %13 : vector<8x1xf32> to vector<8x256xf32>
    %16 = vector.broadcast %14 : vector<1x256xf32> to vector<8x256xf32>
    %17 = arith.mulf %15, %16 : vector<8x256xf32>
    %18 = arith.addf %11, %17 : vector<8x256xf32>
    %c0_9 = arith.constant 0 : index
    %c0_10 = arith.constant 0 : index
    %c2 = arith.constant 2 : index
    %19 = vector.load %arg3[%c0_9, %c0_10, %c2] : memref<13x8x9xf32, #tpu.memory_space<vmem>>, vector<1x8x1xf32>
    %20 = vector.shape_cast %19 : vector<1x8x1xf32> to vector<8x1xf32>
    %21 = vector.extract_strided_slice %1 {offsets = [2, 0], sizes = [1, 256], strides = [1, 1]} : vector<8x256xf32> to vector<1x256xf32>
    %22 = vector.broadcast %20 : vector<8x1xf32> to vector<8x256xf32>
    %23 = vector.broadcast %21 : vector<1x256xf32> to vector<8x256xf32>
    %24 = arith.mulf %22, %23 : vector<8x256xf32>
    %25 = arith.addf %18, %24 : vector<8x256xf32>
    %c0_11 = arith.constant 0 : index
    %c0_12 = arith.constant 0 : index
    %c3 = arith.constant 3 : index
    %26 = vector.load %arg3[%c0_11, %c0_12, %c3] : memref<13x8x9xf32, #tpu.memory_space<vmem>>, vector<1x8x1xf32>
    %27 = vector.shape_cast %26 : vector<1x8x1xf32> to vector<8x1xf32>
    %28 = vector.extract_strided_slice %1 {offsets = [3, 0], sizes = [1, 256], strides = [1, 1]} : vector<8x256xf32> to vector<1x256xf32>
    %29 = vector.broadcast %27 : vector<8x1xf32> to vector<8x256xf32>
    %30 = vector.broadcast %28 : vector<1x256xf32> to vector<8x256xf32>
    %31 = arith.mulf %29, %30 : vector<8x256xf32>
    %32 = arith.addf %25, %31 : vector<8x256xf32>
    %c0_13 = arith.constant 0 : index
    %c0_14 = arith.constant 0 : index
    %c4 = arith.constant 4 : index
    %33 = vector.load %arg3[%c0_13, %c0_14, %c4] : memref<13x8x9xf32, #tpu.memory_space<vmem>>, vector<1x8x1xf32>
    %34 = vector.shape_cast %33 : vector<1x8x1xf32> to vector<8x1xf32>
    %35 = vector.extract_strided_slice %1 {offsets = [4, 0], sizes = [1, 256], strides = [1, 1]} : vector<8x256xf32> to vector<1x256xf32>
    %36 = vector.broadcast %34 : vector<8x1xf32> to vector<8x256xf32>
    %37 = vector.broadcast %35 : vector<1x256xf32> to vector<8x256xf32>
    %38 = arith.mulf %36, %37 : vector<8x256xf32>
    %39 = arith.addf %32, %38 : vector<8x256xf32>
    %c0_15 = arith.constant 0 : index
    %c0_16 = arith.constant 0 : index
    %c5 = arith.constant 5 : index
    %40 = vector.load %arg3[%c0_15, %c0_16, %c5] : memref<13x8x9xf32, #tpu.memory_space<vmem>>, vector<1x8x1xf32>
    %41 = vector.shape_cast %40 : vector<1x8x1xf32> to vector<8x1xf32>
    %42 = vector.extract_strided_slice %1 {offsets = [5, 0], sizes = [1, 256], strides = [1, 1]} : vector<8x256xf32> to vector<1x256xf32>
    %43 = vector.broadcast %41 : vector<8x1xf32> to vector<8x256xf32>
    %44 = vector.broadcast %42 : vector<1x256xf32> to vector<8x256xf32>
    %45 = arith.mulf %43, %44 : vector<8x256xf32>
    %46 = arith.addf %39, %45 : vector<8x256xf32>
    %c0_17 = arith.constant 0 : index
    %c0_18 = arith.constant 0 : index
    %c6 = arith.constant 6 : index
    %47 = vector.load %arg3[%c0_17, %c0_18, %c6] : memref<13x8x9xf32, #tpu.memory_space<vmem>>, vector<1x8x1xf32>
    %48 = vector.shape_cast %47 : vector<1x8x1xf32> to vector<8x1xf32>
    %49 = vector.extract_strided_slice %1 {offsets = [6, 0], sizes = [1, 256], strides = [1, 1]} : vector<8x256xf32> to vector<1x256xf32>
    %50 = vector.broadcast %48 : vector<8x1xf32> to vector<8x256xf32>
    %51 = vector.broadcast %49 : vector<1x256xf32> to vector<8x256xf32>
    %52 = arith.mulf %50, %51 : vector<8x256xf32>
    %53 = arith.addf %46, %52 : vector<8x256xf32>
    %c0_19 = arith.constant 0 : index
    %c0_20 = arith.constant 0 : index
    %c7 = arith.constant 7 : index
    %54 = vector.load %arg3[%c0_19, %c0_20, %c7] : memref<13x8x9xf32, #tpu.memory_space<vmem>>, vector<1x8x1xf32>
    %55 = vector.shape_cast %54 : vector<1x8x1xf32> to vector<8x1xf32>
    %56 = vector.extract_strided_slice %1 {offsets = [7, 0], sizes = [1, 256], strides = [1, 1]} : vector<8x256xf32> to vector<1x256xf32>
    %57 = vector.broadcast %55 : vector<8x1xf32> to vector<8x256xf32>
    %58 = vector.broadcast %56 : vector<1x256xf32> to vector<8x256xf32>
    %59 = arith.mulf %57, %58 : vector<8x256xf32>
    %60 = arith.addf %53, %59 : vector<8x256xf32>
    %cst = arith.constant 0.000000e+00 : f32
    %61 = vector.broadcast %cst : f32 to vector<8x256xf32>
    %62 = arith.maximumf %60, %61 : vector<8x256xf32>
    %c1_21 = arith.constant 1 : index
    %c0_22 = arith.constant 0 : index
    %c8_23 = arith.constant 8 : index
    %63 = vector.load %arg3[%c1_21, %c0_22, %c8_23] : memref<13x8x9xf32, #tpu.memory_space<vmem>>, vector<1x8x1xf32>
    %64 = vector.shape_cast %63 : vector<1x8x1xf32> to vector<8x1xf32>
    %c1_24 = arith.constant 1 : index
    %c0_25 = arith.constant 0 : index
    %c0_26 = arith.constant 0 : index
    %65 = vector.load %arg3[%c1_24, %c0_25, %c0_26] : memref<13x8x9xf32, #tpu.memory_space<vmem>>, vector<1x8x1xf32>
    %66 = vector.shape_cast %65 : vector<1x8x1xf32> to vector<8x1xf32>
    %67 = vector.extract_strided_slice %62 {offsets = [0, 0], sizes = [1, 256], strides = [1, 1]} : vector<8x256xf32> to vector<1x256xf32>
    %68 = vector.broadcast %66 : vector<8x1xf32> to vector<8x256xf32>
    %69 = vector.broadcast %67 : vector<1x256xf32> to vector<8x256xf32>
    %70 = arith.mulf %68, %69 : vector<8x256xf32>
    %71 = vector.broadcast %64 : vector<8x1xf32> to vector<8x256xf32>
    %72 = arith.addf %71, %70 : vector<8x256xf32>
    %c1_27 = arith.constant 1 : index
    %c0_28 = arith.constant 0 : index
    %c1_29 = arith.constant 1 : index
    %73 = vector.load %arg3[%c1_27, %c0_28, %c1_29] : memref<13x8x9xf32, #tpu.memory_space<vmem>>, vector<1x8x1xf32>
    %74 = vector.shape_cast %73 : vector<1x8x1xf32> to vector<8x1xf32>
    %75 = vector.extract_strided_slice %62 {offsets = [1, 0], sizes = [1, 256], strides = [1, 1]} : vector<8x256xf32> to vector<1x256xf32>
    %76 = vector.broadcast %74 : vector<8x1xf32> to vector<8x256xf32>
    %77 = vector.broadcast %75 : vector<1x256xf32> to vector<8x256xf32>
    %78 = arith.mulf %76, %77 : vector<8x256xf32>
    %79 = arith.addf %72, %78 : vector<8x256xf32>
    %c1_30 = arith.constant 1 : index
    %c0_31 = arith.constant 0 : index
    %c2_32 = arith.constant 2 : index
    %80 = vector.load %arg3[%c1_30, %c0_31, %c2_32] : memref<13x8x9xf32, #tpu.memory_space<vmem>>, vector<1x8x1xf32>
    %81 = vector.shape_cast %80 : vector<1x8x1xf32> to vector<8x1xf32>
    %82 = vector.extract_strided_slice %62 {offsets = [2, 0], sizes = [1, 256], strides = [1, 1]} : vector<8x256xf32> to vector<1x256xf32>
    %83 = vector.broadcast %81 : vector<8x1xf32> to vector<8x256xf32>
    %84 = vector.broadcast %82 : vector<1x256xf32> to vector<8x256xf32>
    %85 = arith.mulf %83, %84 : vector<8x256xf32>
    %86 = arith.addf %79, %85 : vector<8x256xf32>
    %c1_33 = arith.constant 1 : index
    %c0_34 = arith.constant 0 : index
    %c3_35 = arith.constant 3 : index
    %87 = vector.load %arg3[%c1_33, %c0_34, %c3_35] : memref<13x8x9xf32, #tpu.memory_space<vmem>>, vector<1x8x1xf32>
    %88 = vector.shape_cast %87 : vector<1x8x1xf32> to vector<8x1xf32>
    %89 = vector.extract_strided_slice %62 {offsets = [3, 0], sizes = [1, 256], strides = [1, 1]} : vector<8x256xf32> to vector<1x256xf32>
    %90 = vector.broadcast %88 : vector<8x1xf32> to vector<8x256xf32>
    %91 = vector.broadcast %89 : vector<1x256xf32> to vector<8x256xf32>
    %92 = arith.mulf %90, %91 : vector<8x256xf32>
    %93 = arith.addf %86, %92 : vector<8x256xf32>
    %c1_36 = arith.constant 1 : index
    %c0_37 = arith.constant 0 : index
    %c4_38 = arith.constant 4 : index
    %94 = vector.load %arg3[%c1_36, %c0_37, %c4_38] : memref<13x8x9xf32, #tpu.memory_space<vmem>>, vector<1x8x1xf32>
    %95 = vector.shape_cast %94 : vector<1x8x1xf32> to vector<8x1xf32>
    %96 = vector.extract_strided_slice %62 {offsets = [4, 0], sizes = [1, 256], strides = [1, 1]} : vector<8x256xf32> to vector<1x256xf32>
    %97 = vector.broadcast %95 : vector<8x1xf32> to vector<8x256xf32>
    %98 = vector.broadcast %96 : vector<1x256xf32> to vector<8x256xf32>
    %99 = arith.mulf %97, %98 : vector<8x256xf32>
    %100 = arith.addf %93, %99 : vector<8x256xf32>
    %c1_39 = arith.constant 1 : index
    %c0_40 = arith.constant 0 : index
    %c5_41 = arith.constant 5 : index
    %101 = vector.load %arg3[%c1_39, %c0_40, %c5_41] : memref<13x8x9xf32, #tpu.memory_space<vmem>>, vector<1x8x1xf32>
    %102 = vector.shape_cast %101 : vector<1x8x1xf32> to vector<8x1xf32>
    %103 = vector.extract_strided_slice %62 {offsets = [5, 0], sizes = [1, 256], strides = [1, 1]} : vector<8x256xf32> to vector<1x256xf32>
    %104 = vector.broadcast %102 : vector<8x1xf32> to vector<8x256xf32>
    %105 = vector.broadcast %103 : vector<1x256xf32> to vector<8x256xf32>
    %106 = arith.mulf %104, %105 : vector<8x256xf32>
    %107 = arith.addf %100, %106 : vector<8x256xf32>
    %c1_42 = arith.constant 1 : index
    %c0_43 = arith.constant 0 : index
    %c6_44 = arith.constant 6 : index
    %108 = vector.load %arg3[%c1_42, %c0_43, %c6_44] : memref<13x8x9xf32, #tpu.memory_space<vmem>>, vector<1x8x1xf32>
    %109 = vector.shape_cast %108 : vector<1x8x1xf32> to vector<8x1xf32>
    %110 = vector.extract_strided_slice %62 {offsets = [6, 0], sizes = [1, 256], strides = [1, 1]} : vector<8x256xf32> to vector<1x256xf32>
    %111 = vector.broadcast %109 : vector<8x1xf32> to vector<8x256xf32>
    %112 = vector.broadcast %110 : vector<1x256xf32> to vector<8x256xf32>
    %113 = arith.mulf %111, %112 : vector<8x256xf32>
    %114 = arith.addf %107, %113 : vector<8x256xf32>
    %c1_45 = arith.constant 1 : index
    %c0_46 = arith.constant 0 : index
    %c7_47 = arith.constant 7 : index
    %115 = vector.load %arg3[%c1_45, %c0_46, %c7_47] : memref<13x8x9xf32, #tpu.memory_space<vmem>>, vector<1x8x1xf32>
    %116 = vector.shape_cast %115 : vector<1x8x1xf32> to vector<8x1xf32>
    %117 = vector.extract_strided_slice %62 {offsets = [7, 0], sizes = [1, 256], strides = [1, 1]} : vector<8x256xf32> to vector<1x256xf32>
    %118 = vector.broadcast %116 : vector<8x1xf32> to vector<8x256xf32>
    %119 = vector.broadcast %117 : vector<1x256xf32> to vector<8x256xf32>
    %120 = arith.mulf %118, %119 : vector<8x256xf32>
    %121 = arith.addf %114, %120 : vector<8x256xf32>
    %cst_48 = arith.constant 0.000000e+00 : f32
    %122 = vector.broadcast %cst_48 : f32 to vector<8x256xf32>
    %123 = arith.maximumf %121, %122 : vector<8x256xf32>
    %c2_49 = arith.constant 2 : index
    %c0_50 = arith.constant 0 : index
    %c8_51 = arith.constant 8 : index
    %124 = vector.load %arg3[%c2_49, %c0_50, %c8_51] : memref<13x8x9xf32, #tpu.memory_space<vmem>>, vector<1x8x1xf32>
    %125 = vector.shape_cast %124 : vector<1x8x1xf32> to vector<8x1xf32>
    %c2_52 = arith.constant 2 : index
    %c0_53 = arith.constant 0 : index
    %c0_54 = arith.constant 0 : index
    %126 = vector.load %arg3[%c2_52, %c0_53, %c0_54] : memref<13x8x9xf32, #tpu.memory_space<vmem>>, vector<1x8x1xf32>
    %127 = vector.shape_cast %126 : vector<1x8x1xf32> to vector<8x1xf32>
    %128 = vector.extract_strided_slice %123 {offsets = [0, 0], sizes = [1, 256], strides = [1, 1]} : vector<8x256xf32> to vector<1x256xf32>
    %129 = vector.broadcast %127 : vector<8x1xf32> to vector<8x256xf32>
    %130 = vector.broadcast %128 : vector<1x256xf32> to vector<8x256xf32>
    %131 = arith.mulf %129, %130 : vector<8x256xf32>
    %132 = vector.broadcast %125 : vector<8x1xf32> to vector<8x256xf32>
    %133 = arith.addf %132, %131 : vector<8x256xf32>
    %c2_55 = arith.constant 2 : index
    %c0_56 = arith.constant 0 : index
    %c1_57 = arith.constant 1 : index
    %134 = vector.load %arg3[%c2_55, %c0_56, %c1_57] : memref<13x8x9xf32, #tpu.memory_space<vmem>>, vector<1x8x1xf32>
    %135 = vector.shape_cast %134 : vector<1x8x1xf32> to vector<8x1xf32>
    %136 = vector.extract_strided_slice %123 {offsets = [1, 0], sizes = [1, 256], strides = [1, 1]} : vector<8x256xf32> to vector<1x256xf32>
    %137 = vector.broadcast %135 : vector<8x1xf32> to vector<8x256xf32>
    %138 = vector.broadcast %136 : vector<1x256xf32> to vector<8x256xf32>
    %139 = arith.mulf %137, %138 : vector<8x256xf32>
    %140 = arith.addf %133, %139 : vector<8x256xf32>
    %c2_58 = arith.constant 2 : index
    %c0_59 = arith.constant 0 : index
    %c2_60 = arith.constant 2 : index
    %141 = vector.load %arg3[%c2_58, %c0_59, %c2_60] : memref<13x8x9xf32, #tpu.memory_space<vmem>>, vector<1x8x1xf32>
    %142 = vector.shape_cast %141 : vector<1x8x1xf32> to vector<8x1xf32>
    %143 = vector.extract_strided_slice %123 {offsets = [2, 0], sizes = [1, 256], strides = [1, 1]} : vector<8x256xf32> to vector<1x256xf32>
    %144 = vector.broadcast %142 : vector<8x1xf32> to vector<8x256xf32>
    %145 = vector.broadcast %143 : vector<1x256xf32> to vector<8x256xf32>
    %146 = arith.mulf %144, %145 : vector<8x256xf32>
    %147 = arith.addf %140, %146 : vector<8x256xf32>
    %c2_61 = arith.constant 2 : index
    %c0_62 = arith.constant 0 : index
    %c3_63 = arith.constant 3 : index
    %148 = vector.load %arg3[%c2_61, %c0_62, %c3_63] : memref<13x8x9xf32, #tpu.memory_space<vmem>>, vector<1x8x1xf32>
    %149 = vector.shape_cast %148 : vector<1x8x1xf32> to vector<8x1xf32>
    %150 = vector.extract_strided_slice %123 {offsets = [3, 0], sizes = [1, 256], strides = [1, 1]} : vector<8x256xf32> to vector<1x256xf32>
    %151 = vector.broadcast %149 : vector<8x1xf32> to vector<8x256xf32>
    %152 = vector.broadcast %150 : vector<1x256xf32> to vector<8x256xf32>
    %153 = arith.mulf %151, %152 : vector<8x256xf32>
    %154 = arith.addf %147, %153 : vector<8x256xf32>
    %c2_64 = arith.constant 2 : index
    %c0_65 = arith.constant 0 : index
    %c4_66 = arith.constant 4 : index
    %155 = vector.load %arg3[%c2_64, %c0_65, %c4_66] : memref<13x8x9xf32, #tpu.memory_space<vmem>>, vector<1x8x1xf32>
    %156 = vector.shape_cast %155 : vector<1x8x1xf32> to vector<8x1xf32>
    %157 = vector.extract_strided_slice %123 {offsets = [4, 0], sizes = [1, 256], strides = [1, 1]} : vector<8x256xf32> to vector<1x256xf32>
    %158 = vector.broadcast %156 : vector<8x1xf32> to vector<8x256xf32>
    %159 = vector.broadcast %157 : vector<1x256xf32> to vector<8x256xf32>
    %160 = arith.mulf %158, %159 : vector<8x256xf32>
    %161 = arith.addf %154, %160 : vector<8x256xf32>
    %c2_67 = arith.constant 2 : index
    %c0_68 = arith.constant 0 : index
    %c5_69 = arith.constant 5 : index
    %162 = vector.load %arg3[%c2_67, %c0_68, %c5_69] : memref<13x8x9xf32, #tpu.memory_space<vmem>>, vector<1x8x1xf32>
    %163 = vector.shape_cast %162 : vector<1x8x1xf32> to vector<8x1xf32>
    %164 = vector.extract_strided_slice %123 {offsets = [5, 0], sizes = [1, 256], strides = [1, 1]} : vector<8x256xf32> to vector<1x256xf32>
    %165 = vector.broadcast %163 : vector<8x1xf32> to vector<8x256xf32>
    %166 = vector.broadcast %164 : vector<1x256xf32> to vector<8x256xf32>
    %167 = arith.mulf %165, %166 : vector<8x256xf32>
    %168 = arith.addf %161, %167 : vector<8x256xf32>
    %c2_70 = arith.constant 2 : index
    %c0_71 = arith.constant 0 : index
    %c6_72 = arith.constant 6 : index
    %169 = vector.load %arg3[%c2_70, %c0_71, %c6_72] : memref<13x8x9xf32, #tpu.memory_space<vmem>>, vector<1x8x1xf32>
    %170 = vector.shape_cast %169 : vector<1x8x1xf32> to vector<8x1xf32>
    %171 = vector.extract_strided_slice %123 {offsets = [6, 0], sizes = [1, 256], strides = [1, 1]} : vector<8x256xf32> to vector<1x256xf32>
    %172 = vector.broadcast %170 : vector<8x1xf32> to vector<8x256xf32>
    %173 = vector.broadcast %171 : vector<1x256xf32> to vector<8x256xf32>
    %174 = arith.mulf %172, %173 : vector<8x256xf32>
    %175 = arith.addf %168, %174 : vector<8x256xf32>
    %c2_73 = arith.constant 2 : index
    %c0_74 = arith.constant 0 : index
    %c7_75 = arith.constant 7 : index
    %176 = vector.load %arg3[%c2_73, %c0_74, %c7_75] : memref<13x8x9xf32, #tpu.memory_space<vmem>>, vector<1x8x1xf32>
    %177 = vector.shape_cast %176 : vector<1x8x1xf32> to vector<8x1xf32>
    %178 = vector.extract_strided_slice %123 {offsets = [7, 0], sizes = [1, 256], strides = [1, 1]} : vector<8x256xf32> to vector<1x256xf32>
    %179 = vector.broadcast %177 : vector<8x1xf32> to vector<8x256xf32>
    %180 = vector.broadcast %178 : vector<1x256xf32> to vector<8x256xf32>
    %181 = arith.mulf %179, %180 : vector<8x256xf32>
    %182 = arith.addf %175, %181 : vector<8x256xf32>
    %cst_76 = arith.constant 0.000000e+00 : f32
    %183 = vector.broadcast %cst_76 : f32 to vector<8x256xf32>
    %184 = arith.maximumf %182, %183 : vector<8x256xf32>
    %cst_77 = arith.constant 2.000000e+00 : f32
    %185 = vector.broadcast %cst_77 : f32 to vector<8x256xf32>
    %186 = arith.mulf %185, %1 : vector<8x256xf32>
    %187 = arith.addf %184, %186 : vector<8x256xf32>
    %c9 = arith.constant 9 : index
    %c0_78 = arith.constant 0 : index
    %c8_79 = arith.constant 8 : index
    %188 = vector.load %arg3[%c9, %c0_78, %c8_79] : memref<13x8x9xf32, #tpu.memory_space<vmem>>, vector<1x8x1xf32>
    %189 = vector.shape_cast %188 : vector<1x8x1xf32> to vector<8x1xf32>
    %c9_80 = arith.constant 9 : index
    %c0_81 = arith.constant 0 : index
    %c0_82 = arith.constant 0 : index
    %190 = vector.load %arg3[%c9_80, %c0_81, %c0_82] : memref<13x8x9xf32, #tpu.memory_space<vmem>>, vector<1x8x1xf32>
    %191 = vector.shape_cast %190 : vector<1x8x1xf32> to vector<8x1xf32>
    %192 = vector.extract_strided_slice %187 {offsets = [0, 0], sizes = [1, 256], strides = [1, 1]} : vector<8x256xf32> to vector<1x256xf32>
    %193 = vector.broadcast %191 : vector<8x1xf32> to vector<8x256xf32>
    %194 = vector.broadcast %192 : vector<1x256xf32> to vector<8x256xf32>
    %195 = arith.mulf %193, %194 : vector<8x256xf32>
    %196 = vector.broadcast %189 : vector<8x1xf32> to vector<8x256xf32>
    %197 = arith.addf %196, %195 : vector<8x256xf32>
    %c9_83 = arith.constant 9 : index
    %c0_84 = arith.constant 0 : index
    %c1_85 = arith.constant 1 : index
    %198 = vector.load %arg3[%c9_83, %c0_84, %c1_85] : memref<13x8x9xf32, #tpu.memory_space<vmem>>, vector<1x8x1xf32>
    %199 = vector.shape_cast %198 : vector<1x8x1xf32> to vector<8x1xf32>
    %200 = vector.extract_strided_slice %187 {offsets = [1, 0], sizes = [1, 256], strides = [1, 1]} : vector<8x256xf32> to vector<1x256xf32>
    %201 = vector.broadcast %199 : vector<8x1xf32> to vector<8x256xf32>
    %202 = vector.broadcast %200 : vector<1x256xf32> to vector<8x256xf32>
    %203 = arith.mulf %201, %202 : vector<8x256xf32>
    %204 = arith.addf %197, %203 : vector<8x256xf32>
    %c9_86 = arith.constant 9 : index
    %c0_87 = arith.constant 0 : index
    %c2_88 = arith.constant 2 : index
    %205 = vector.load %arg3[%c9_86, %c0_87, %c2_88] : memref<13x8x9xf32, #tpu.memory_space<vmem>>, vector<1x8x1xf32>
    %206 = vector.shape_cast %205 : vector<1x8x1xf32> to vector<8x1xf32>
    %207 = vector.extract_strided_slice %187 {offsets = [2, 0], sizes = [1, 256], strides = [1, 1]} : vector<8x256xf32> to vector<1x256xf32>
    %208 = vector.broadcast %206 : vector<8x1xf32> to vector<8x256xf32>
    %209 = vector.broadcast %207 : vector<1x256xf32> to vector<8x256xf32>
    %210 = arith.mulf %208, %209 : vector<8x256xf32>
    %211 = arith.addf %204, %210 : vector<8x256xf32>
    %c9_89 = arith.constant 9 : index
    %c0_90 = arith.constant 0 : index
    %c3_91 = arith.constant 3 : index
    %212 = vector.load %arg3[%c9_89, %c0_90, %c3_91] : memref<13x8x9xf32, #tpu.memory_space<vmem>>, vector<1x8x1xf32>
    %213 = vector.shape_cast %212 : vector<1x8x1xf32> to vector<8x1xf32>
    %214 = vector.extract_strided_slice %187 {offsets = [3, 0], sizes = [1, 256], strides = [1, 1]} : vector<8x256xf32> to vector<1x256xf32>
    %215 = vector.broadcast %213 : vector<8x1xf32> to vector<8x256xf32>
    %216 = vector.broadcast %214 : vector<1x256xf32> to vector<8x256xf32>
    %217 = arith.mulf %215, %216 : vector<8x256xf32>
    %218 = arith.addf %211, %217 : vector<8x256xf32>
    %c9_92 = arith.constant 9 : index
    %c0_93 = arith.constant 0 : index
    %c4_94 = arith.constant 4 : index
    %219 = vector.load %arg3[%c9_92, %c0_93, %c4_94] : memref<13x8x9xf32, #tpu.memory_space<vmem>>, vector<1x8x1xf32>
    %220 = vector.shape_cast %219 : vector<1x8x1xf32> to vector<8x1xf32>
    %221 = vector.extract_strided_slice %187 {offsets = [4, 0], sizes = [1, 256], strides = [1, 1]} : vector<8x256xf32> to vector<1x256xf32>
    %222 = vector.broadcast %220 : vector<8x1xf32> to vector<8x256xf32>
    %223 = vector.broadcast %221 : vector<1x256xf32> to vector<8x256xf32>
    %224 = arith.mulf %222, %223 : vector<8x256xf32>
    %225 = arith.addf %218, %224 : vector<8x256xf32>
    %c9_95 = arith.constant 9 : index
    %c0_96 = arith.constant 0 : index
    %c5_97 = arith.constant 5 : index
    %226 = vector.load %arg3[%c9_95, %c0_96, %c5_97] : memref<13x8x9xf32, #tpu.memory_space<vmem>>, vector<1x8x1xf32>
    %227 = vector.shape_cast %226 : vector<1x8x1xf32> to vector<8x1xf32>
    %228 = vector.extract_strided_slice %187 {offsets = [5, 0], sizes = [1, 256], strides = [1, 1]} : vector<8x256xf32> to vector<1x256xf32>
    %229 = vector.broadcast %227 : vector<8x1xf32> to vector<8x256xf32>
    %230 = vector.broadcast %228 : vector<1x256xf32> to vector<8x256xf32>
    %231 = arith.mulf %229, %230 : vector<8x256xf32>
    %232 = arith.addf %225, %231 : vector<8x256xf32>
    %c9_98 = arith.constant 9 : index
    %c0_99 = arith.constant 0 : index
    %c6_100 = arith.constant 6 : index
    %233 = vector.load %arg3[%c9_98, %c0_99, %c6_100] : memref<13x8x9xf32, #tpu.memory_space<vmem>>, vector<1x8x1xf32>
    %234 = vector.shape_cast %233 : vector<1x8x1xf32> to vector<8x1xf32>
    %235 = vector.extract_strided_slice %187 {offsets = [6, 0], sizes = [1, 256], strides = [1, 1]} : vector<8x256xf32> to vector<1x256xf32>
    %236 = vector.broadcast %234 : vector<8x1xf32> to vector<8x256xf32>
    %237 = vector.broadcast %235 : vector<1x256xf32> to vector<8x256xf32>
    %238 = arith.mulf %236, %237 : vector<8x256xf32>
    %239 = arith.addf %232, %238 : vector<8x256xf32>
    %c9_101 = arith.constant 9 : index
    %c0_102 = arith.constant 0 : index
    %c7_103 = arith.constant 7 : index
    %240 = vector.load %arg3[%c9_101, %c0_102, %c7_103] : memref<13x8x9xf32, #tpu.memory_space<vmem>>, vector<1x8x1xf32>
    %241 = vector.shape_cast %240 : vector<1x8x1xf32> to vector<8x1xf32>
    %242 = vector.extract_strided_slice %187 {offsets = [7, 0], sizes = [1, 256], strides = [1, 1]} : vector<8x256xf32> to vector<1x256xf32>
    %243 = vector.broadcast %241 : vector<8x1xf32> to vector<8x256xf32>
    %244 = vector.broadcast %242 : vector<1x256xf32> to vector<8x256xf32>
    %245 = arith.mulf %243, %244 : vector<8x256xf32>
    %246 = arith.addf %239, %245 : vector<8x256xf32>
    %cst_104 = arith.constant 0.000000e+00 : f32
    %247 = vector.broadcast %cst_104 : f32 to vector<8x256xf32>
    %248 = arith.maximumf %246, %247 : vector<8x256xf32>
    %c3_105 = arith.constant 3 : index
    %c0_106 = arith.constant 0 : index
    %c8_107 = arith.constant 8 : index
    %249 = vector.load %arg3[%c3_105, %c0_106, %c8_107] : memref<13x8x9xf32, #tpu.memory_space<vmem>>, vector<1x8x1xf32>
    %250 = vector.shape_cast %249 : vector<1x8x1xf32> to vector<8x1xf32>
    %c3_108 = arith.constant 3 : index
    %c0_109 = arith.constant 0 : index
    %c0_110 = arith.constant 0 : index
    %251 = vector.load %arg3[%c3_108, %c0_109, %c0_110] : memref<13x8x9xf32, #tpu.memory_space<vmem>>, vector<1x8x1xf32>
    %252 = vector.shape_cast %251 : vector<1x8x1xf32> to vector<8x1xf32>
    %253 = vector.extract_strided_slice %248 {offsets = [0, 0], sizes = [1, 256], strides = [1, 1]} : vector<8x256xf32> to vector<1x256xf32>
    %254 = vector.broadcast %252 : vector<8x1xf32> to vector<8x256xf32>
    %255 = vector.broadcast %253 : vector<1x256xf32> to vector<8x256xf32>
    %256 = arith.mulf %254, %255 : vector<8x256xf32>
    %257 = vector.broadcast %250 : vector<8x1xf32> to vector<8x256xf32>
    %258 = arith.addf %257, %256 : vector<8x256xf32>
    %c3_111 = arith.constant 3 : index
    %c0_112 = arith.constant 0 : index
    %c1_113 = arith.constant 1 : index
    %259 = vector.load %arg3[%c3_111, %c0_112, %c1_113] : memref<13x8x9xf32, #tpu.memory_space<vmem>>, vector<1x8x1xf32>
    %260 = vector.shape_cast %259 : vector<1x8x1xf32> to vector<8x1xf32>
    %261 = vector.extract_strided_slice %248 {offsets = [1, 0], sizes = [1, 256], strides = [1, 1]} : vector<8x256xf32> to vector<1x256xf32>
    %262 = vector.broadcast %260 : vector<8x1xf32> to vector<8x256xf32>
    %263 = vector.broadcast %261 : vector<1x256xf32> to vector<8x256xf32>
    %264 = arith.mulf %262, %263 : vector<8x256xf32>
    %265 = arith.addf %258, %264 : vector<8x256xf32>
    %c3_114 = arith.constant 3 : index
    %c0_115 = arith.constant 0 : index
    %c2_116 = arith.constant 2 : index
    %266 = vector.load %arg3[%c3_114, %c0_115, %c2_116] : memref<13x8x9xf32, #tpu.memory_space<vmem>>, vector<1x8x1xf32>
    %267 = vector.shape_cast %266 : vector<1x8x1xf32> to vector<8x1xf32>
    %268 = vector.extract_strided_slice %248 {offsets = [2, 0], sizes = [1, 256], strides = [1, 1]} : vector<8x256xf32> to vector<1x256xf32>
    %269 = vector.broadcast %267 : vector<8x1xf32> to vector<8x256xf32>
    %270 = vector.broadcast %268 : vector<1x256xf32> to vector<8x256xf32>
    %271 = arith.mulf %269, %270 : vector<8x256xf32>
    %272 = arith.addf %265, %271 : vector<8x256xf32>
    %c3_117 = arith.constant 3 : index
    %c0_118 = arith.constant 0 : index
    %c3_119 = arith.constant 3 : index
    %273 = vector.load %arg3[%c3_117, %c0_118, %c3_119] : memref<13x8x9xf32, #tpu.memory_space<vmem>>, vector<1x8x1xf32>
    %274 = vector.shape_cast %273 : vector<1x8x1xf32> to vector<8x1xf32>
    %275 = vector.extract_strided_slice %248 {offsets = [3, 0], sizes = [1, 256], strides = [1, 1]} : vector<8x256xf32> to vector<1x256xf32>
    %276 = vector.broadcast %274 : vector<8x1xf32> to vector<8x256xf32>
    %277 = vector.broadcast %275 : vector<1x256xf32> to vector<8x256xf32>
    %278 = arith.mulf %276, %277 : vector<8x256xf32>
    %279 = arith.addf %272, %278 : vector<8x256xf32>
    %c3_120 = arith.constant 3 : index
    %c0_121 = arith.constant 0 : index
    %c4_122 = arith.constant 4 : index
    %280 = vector.load %arg3[%c3_120, %c0_121, %c4_122] : memref<13x8x9xf32, #tpu.memory_space<vmem>>, vector<1x8x1xf32>
    %281 = vector.shape_cast %280 : vector<1x8x1xf32> to vector<8x1xf32>
    %282 = vector.extract_strided_slice %248 {offsets = [4, 0], sizes = [1, 256], strides = [1, 1]} : vector<8x256xf32> to vector<1x256xf32>
    %283 = vector.broadcast %281 : vector<8x1xf32> to vector<8x256xf32>
    %284 = vector.broadcast %282 : vector<1x256xf32> to vector<8x256xf32>
    %285 = arith.mulf %283, %284 : vector<8x256xf32>
    %286 = arith.addf %279, %285 : vector<8x256xf32>
    %c3_123 = arith.constant 3 : index
    %c0_124 = arith.constant 0 : index
    %c5_125 = arith.constant 5 : index
    %287 = vector.load %arg3[%c3_123, %c0_124, %c5_125] : memref<13x8x9xf32, #tpu.memory_space<vmem>>, vector<1x8x1xf32>
    %288 = vector.shape_cast %287 : vector<1x8x1xf32> to vector<8x1xf32>
    %289 = vector.extract_strided_slice %248 {offsets = [5, 0], sizes = [1, 256], strides = [1, 1]} : vector<8x256xf32> to vector<1x256xf32>
    %290 = vector.broadcast %288 : vector<8x1xf32> to vector<8x256xf32>
    %291 = vector.broadcast %289 : vector<1x256xf32> to vector<8x256xf32>
    %292 = arith.mulf %290, %291 : vector<8x256xf32>
    %293 = arith.addf %286, %292 : vector<8x256xf32>
    %c3_126 = arith.constant 3 : index
    %c0_127 = arith.constant 0 : index
    %c6_128 = arith.constant 6 : index
    %294 = vector.load %arg3[%c3_126, %c0_127, %c6_128] : memref<13x8x9xf32, #tpu.memory_space<vmem>>, vector<1x8x1xf32>
    %295 = vector.shape_cast %294 : vector<1x8x1xf32> to vector<8x1xf32>
    %296 = vector.extract_strided_slice %248 {offsets = [6, 0], sizes = [1, 256], strides = [1, 1]} : vector<8x256xf32> to vector<1x256xf32>
    %297 = vector.broadcast %295 : vector<8x1xf32> to vector<8x256xf32>
    %298 = vector.broadcast %296 : vector<1x256xf32> to vector<8x256xf32>
    %299 = arith.mulf %297, %298 : vector<8x256xf32>
    %300 = arith.addf %293, %299 : vector<8x256xf32>
    %c3_129 = arith.constant 3 : index
    %c0_130 = arith.constant 0 : index
    %c7_131 = arith.constant 7 : index
    %301 = vector.load %arg3[%c3_129, %c0_130, %c7_131] : memref<13x8x9xf32, #tpu.memory_space<vmem>>, vector<1x8x1xf32>
    %302 = vector.shape_cast %301 : vector<1x8x1xf32> to vector<8x1xf32>
    %303 = vector.extract_strided_slice %248 {offsets = [7, 0], sizes = [1, 256], strides = [1, 1]} : vector<8x256xf32> to vector<1x256xf32>
    %304 = vector.broadcast %302 : vector<8x1xf32> to vector<8x256xf32>
    %305 = vector.broadcast %303 : vector<1x256xf32> to vector<8x256xf32>
    %306 = arith.mulf %304, %305 : vector<8x256xf32>
    %307 = arith.addf %300, %306 : vector<8x256xf32>
    %cst_132 = arith.constant 0.000000e+00 : f32
    %308 = vector.broadcast %cst_132 : f32 to vector<8x256xf32>
    %309 = arith.maximumf %307, %308 : vector<8x256xf32>
    %c4_133 = arith.constant 4 : index
    %c0_134 = arith.constant 0 : index
    %c8_135 = arith.constant 8 : index
    %310 = vector.load %arg3[%c4_133, %c0_134, %c8_135] : memref<13x8x9xf32, #tpu.memory_space<vmem>>, vector<1x8x1xf32>
    %311 = vector.shape_cast %310 : vector<1x8x1xf32> to vector<8x1xf32>
    %c4_136 = arith.constant 4 : index
    %c0_137 = arith.constant 0 : index
    %c0_138 = arith.constant 0 : index
    %312 = vector.load %arg3[%c4_136, %c0_137, %c0_138] : memref<13x8x9xf32, #tpu.memory_space<vmem>>, vector<1x8x1xf32>
    %313 = vector.shape_cast %312 : vector<1x8x1xf32> to vector<8x1xf32>
    %314 = vector.extract_strided_slice %309 {offsets = [0, 0], sizes = [1, 256], strides = [1, 1]} : vector<8x256xf32> to vector<1x256xf32>
    %315 = vector.broadcast %313 : vector<8x1xf32> to vector<8x256xf32>
    %316 = vector.broadcast %314 : vector<1x256xf32> to vector<8x256xf32>
    %317 = arith.mulf %315, %316 : vector<8x256xf32>
    %318 = vector.broadcast %311 : vector<8x1xf32> to vector<8x256xf32>
    %319 = arith.addf %318, %317 : vector<8x256xf32>
    %c4_139 = arith.constant 4 : index
    %c0_140 = arith.constant 0 : index
    %c1_141 = arith.constant 1 : index
    %320 = vector.load %arg3[%c4_139, %c0_140, %c1_141] : memref<13x8x9xf32, #tpu.memory_space<vmem>>, vector<1x8x1xf32>
    %321 = vector.shape_cast %320 : vector<1x8x1xf32> to vector<8x1xf32>
    %322 = vector.extract_strided_slice %309 {offsets = [1, 0], sizes = [1, 256], strides = [1, 1]} : vector<8x256xf32> to vector<1x256xf32>
    %323 = vector.broadcast %321 : vector<8x1xf32> to vector<8x256xf32>
    %324 = vector.broadcast %322 : vector<1x256xf32> to vector<8x256xf32>
    %325 = arith.mulf %323, %324 : vector<8x256xf32>
    %326 = arith.addf %319, %325 : vector<8x256xf32>
    %c4_142 = arith.constant 4 : index
    %c0_143 = arith.constant 0 : index
    %c2_144 = arith.constant 2 : index
    %327 = vector.load %arg3[%c4_142, %c0_143, %c2_144] : memref<13x8x9xf32, #tpu.memory_space<vmem>>, vector<1x8x1xf32>
    %328 = vector.shape_cast %327 : vector<1x8x1xf32> to vector<8x1xf32>
    %329 = vector.extract_strided_slice %309 {offsets = [2, 0], sizes = [1, 256], strides = [1, 1]} : vector<8x256xf32> to vector<1x256xf32>
    %330 = vector.broadcast %328 : vector<8x1xf32> to vector<8x256xf32>
    %331 = vector.broadcast %329 : vector<1x256xf32> to vector<8x256xf32>
    %332 = arith.mulf %330, %331 : vector<8x256xf32>
    %333 = arith.addf %326, %332 : vector<8x256xf32>
    %c4_145 = arith.constant 4 : index
    %c0_146 = arith.constant 0 : index
    %c3_147 = arith.constant 3 : index
    %334 = vector.load %arg3[%c4_145, %c0_146, %c3_147] : memref<13x8x9xf32, #tpu.memory_space<vmem>>, vector<1x8x1xf32>
    %335 = vector.shape_cast %334 : vector<1x8x1xf32> to vector<8x1xf32>
    %336 = vector.extract_strided_slice %309 {offsets = [3, 0], sizes = [1, 256], strides = [1, 1]} : vector<8x256xf32> to vector<1x256xf32>
    %337 = vector.broadcast %335 : vector<8x1xf32> to vector<8x256xf32>
    %338 = vector.broadcast %336 : vector<1x256xf32> to vector<8x256xf32>
    %339 = arith.mulf %337, %338 : vector<8x256xf32>
    %340 = arith.addf %333, %339 : vector<8x256xf32>
    %c4_148 = arith.constant 4 : index
    %c0_149 = arith.constant 0 : index
    %c4_150 = arith.constant 4 : index
    %341 = vector.load %arg3[%c4_148, %c0_149, %c4_150] : memref<13x8x9xf32, #tpu.memory_space<vmem>>, vector<1x8x1xf32>
    %342 = vector.shape_cast %341 : vector<1x8x1xf32> to vector<8x1xf32>
    %343 = vector.extract_strided_slice %309 {offsets = [4, 0], sizes = [1, 256], strides = [1, 1]} : vector<8x256xf32> to vector<1x256xf32>
    %344 = vector.broadcast %342 : vector<8x1xf32> to vector<8x256xf32>
    %345 = vector.broadcast %343 : vector<1x256xf32> to vector<8x256xf32>
    %346 = arith.mulf %344, %345 : vector<8x256xf32>
    %347 = arith.addf %340, %346 : vector<8x256xf32>
    %c4_151 = arith.constant 4 : index
    %c0_152 = arith.constant 0 : index
    %c5_153 = arith.constant 5 : index
    %348 = vector.load %arg3[%c4_151, %c0_152, %c5_153] : memref<13x8x9xf32, #tpu.memory_space<vmem>>, vector<1x8x1xf32>
    %349 = vector.shape_cast %348 : vector<1x8x1xf32> to vector<8x1xf32>
    %350 = vector.extract_strided_slice %309 {offsets = [5, 0], sizes = [1, 256], strides = [1, 1]} : vector<8x256xf32> to vector<1x256xf32>
    %351 = vector.broadcast %349 : vector<8x1xf32> to vector<8x256xf32>
    %352 = vector.broadcast %350 : vector<1x256xf32> to vector<8x256xf32>
    %353 = arith.mulf %351, %352 : vector<8x256xf32>
    %354 = arith.addf %347, %353 : vector<8x256xf32>
    %c4_154 = arith.constant 4 : index
    %c0_155 = arith.constant 0 : index
    %c6_156 = arith.constant 6 : index
    %355 = vector.load %arg3[%c4_154, %c0_155, %c6_156] : memref<13x8x9xf32, #tpu.memory_space<vmem>>, vector<1x8x1xf32>
    %356 = vector.shape_cast %355 : vector<1x8x1xf32> to vector<8x1xf32>
    %357 = vector.extract_strided_slice %309 {offsets = [6, 0], sizes = [1, 256], strides = [1, 1]} : vector<8x256xf32> to vector<1x256xf32>
    %358 = vector.broadcast %356 : vector<8x1xf32> to vector<8x256xf32>
    %359 = vector.broadcast %357 : vector<1x256xf32> to vector<8x256xf32>
    %360 = arith.mulf %358, %359 : vector<8x256xf32>
    %361 = arith.addf %354, %360 : vector<8x256xf32>
    %c4_157 = arith.constant 4 : index
    %c0_158 = arith.constant 0 : index
    %c7_159 = arith.constant 7 : index
    %362 = vector.load %arg3[%c4_157, %c0_158, %c7_159] : memref<13x8x9xf32, #tpu.memory_space<vmem>>, vector<1x8x1xf32>
    %363 = vector.shape_cast %362 : vector<1x8x1xf32> to vector<8x1xf32>
    %364 = vector.extract_strided_slice %309 {offsets = [7, 0], sizes = [1, 256], strides = [1, 1]} : vector<8x256xf32> to vector<1x256xf32>
    %365 = vector.broadcast %363 : vector<8x1xf32> to vector<8x256xf32>
    %366 = vector.broadcast %364 : vector<1x256xf32> to vector<8x256xf32>
    %367 = arith.mulf %365, %366 : vector<8x256xf32>
    %368 = arith.addf %361, %367 : vector<8x256xf32>
    %cst_160 = arith.constant 0.000000e+00 : f32
    %369 = vector.broadcast %cst_160 : f32 to vector<8x256xf32>
    %370 = arith.maximumf %368, %369 : vector<8x256xf32>
    %c5_161 = arith.constant 5 : index
    %c0_162 = arith.constant 0 : index
    %c8_163 = arith.constant 8 : index
    %371 = vector.load %arg3[%c5_161, %c0_162, %c8_163] : memref<13x8x9xf32, #tpu.memory_space<vmem>>, vector<1x8x1xf32>
    %372 = vector.shape_cast %371 : vector<1x8x1xf32> to vector<8x1xf32>
    %c5_164 = arith.constant 5 : index
    %c0_165 = arith.constant 0 : index
    %c0_166 = arith.constant 0 : index
    %373 = vector.load %arg3[%c5_164, %c0_165, %c0_166] : memref<13x8x9xf32, #tpu.memory_space<vmem>>, vector<1x8x1xf32>
    %374 = vector.shape_cast %373 : vector<1x8x1xf32> to vector<8x1xf32>
    %375 = vector.extract_strided_slice %370 {offsets = [0, 0], sizes = [1, 256], strides = [1, 1]} : vector<8x256xf32> to vector<1x256xf32>
    %376 = vector.broadcast %374 : vector<8x1xf32> to vector<8x256xf32>
    %377 = vector.broadcast %375 : vector<1x256xf32> to vector<8x256xf32>
    %378 = arith.mulf %376, %377 : vector<8x256xf32>
    %379 = vector.broadcast %372 : vector<8x1xf32> to vector<8x256xf32>
    %380 = arith.addf %379, %378 : vector<8x256xf32>
    %c5_167 = arith.constant 5 : index
    %c0_168 = arith.constant 0 : index
    %c1_169 = arith.constant 1 : index
    %381 = vector.load %arg3[%c5_167, %c0_168, %c1_169] : memref<13x8x9xf32, #tpu.memory_space<vmem>>, vector<1x8x1xf32>
    %382 = vector.shape_cast %381 : vector<1x8x1xf32> to vector<8x1xf32>
    %383 = vector.extract_strided_slice %370 {offsets = [1, 0], sizes = [1, 256], strides = [1, 1]} : vector<8x256xf32> to vector<1x256xf32>
    %384 = vector.broadcast %382 : vector<8x1xf32> to vector<8x256xf32>
    %385 = vector.broadcast %383 : vector<1x256xf32> to vector<8x256xf32>
    %386 = arith.mulf %384, %385 : vector<8x256xf32>
    %387 = arith.addf %380, %386 : vector<8x256xf32>
    %c5_170 = arith.constant 5 : index
    %c0_171 = arith.constant 0 : index
    %c2_172 = arith.constant 2 : index
    %388 = vector.load %arg3[%c5_170, %c0_171, %c2_172] : memref<13x8x9xf32, #tpu.memory_space<vmem>>, vector<1x8x1xf32>
    %389 = vector.shape_cast %388 : vector<1x8x1xf32> to vector<8x1xf32>
    %390 = vector.extract_strided_slice %370 {offsets = [2, 0], sizes = [1, 256], strides = [1, 1]} : vector<8x256xf32> to vector<1x256xf32>
    %391 = vector.broadcast %389 : vector<8x1xf32> to vector<8x256xf32>
    %392 = vector.broadcast %390 : vector<1x256xf32> to vector<8x256xf32>
    %393 = arith.mulf %391, %392 : vector<8x256xf32>
    %394 = arith.addf %387, %393 : vector<8x256xf32>
    %c5_173 = arith.constant 5 : index
    %c0_174 = arith.constant 0 : index
    %c3_175 = arith.constant 3 : index
    %395 = vector.load %arg3[%c5_173, %c0_174, %c3_175] : memref<13x8x9xf32, #tpu.memory_space<vmem>>, vector<1x8x1xf32>
    %396 = vector.shape_cast %395 : vector<1x8x1xf32> to vector<8x1xf32>
    %397 = vector.extract_strided_slice %370 {offsets = [3, 0], sizes = [1, 256], strides = [1, 1]} : vector<8x256xf32> to vector<1x256xf32>
    %398 = vector.broadcast %396 : vector<8x1xf32> to vector<8x256xf32>
    %399 = vector.broadcast %397 : vector<1x256xf32> to vector<8x256xf32>
    %400 = arith.mulf %398, %399 : vector<8x256xf32>
    %401 = arith.addf %394, %400 : vector<8x256xf32>
    %c5_176 = arith.constant 5 : index
    %c0_177 = arith.constant 0 : index
    %c4_178 = arith.constant 4 : index
    %402 = vector.load %arg3[%c5_176, %c0_177, %c4_178] : memref<13x8x9xf32, #tpu.memory_space<vmem>>, vector<1x8x1xf32>
    %403 = vector.shape_cast %402 : vector<1x8x1xf32> to vector<8x1xf32>
    %404 = vector.extract_strided_slice %370 {offsets = [4, 0], sizes = [1, 256], strides = [1, 1]} : vector<8x256xf32> to vector<1x256xf32>
    %405 = vector.broadcast %403 : vector<8x1xf32> to vector<8x256xf32>
    %406 = vector.broadcast %404 : vector<1x256xf32> to vector<8x256xf32>
    %407 = arith.mulf %405, %406 : vector<8x256xf32>
    %408 = arith.addf %401, %407 : vector<8x256xf32>
    %c5_179 = arith.constant 5 : index
    %c0_180 = arith.constant 0 : index
    %c5_181 = arith.constant 5 : index
    %409 = vector.load %arg3[%c5_179, %c0_180, %c5_181] : memref<13x8x9xf32, #tpu.memory_space<vmem>>, vector<1x8x1xf32>
    %410 = vector.shape_cast %409 : vector<1x8x1xf32> to vector<8x1xf32>
    %411 = vector.extract_strided_slice %370 {offsets = [5, 0], sizes = [1, 256], strides = [1, 1]} : vector<8x256xf32> to vector<1x256xf32>
    %412 = vector.broadcast %410 : vector<8x1xf32> to vector<8x256xf32>
    %413 = vector.broadcast %411 : vector<1x256xf32> to vector<8x256xf32>
    %414 = arith.mulf %412, %413 : vector<8x256xf32>
    %415 = arith.addf %408, %414 : vector<8x256xf32>
    %c5_182 = arith.constant 5 : index
    %c0_183 = arith.constant 0 : index
    %c6_184 = arith.constant 6 : index
    %416 = vector.load %arg3[%c5_182, %c0_183, %c6_184] : memref<13x8x9xf32, #tpu.memory_space<vmem>>, vector<1x8x1xf32>
    %417 = vector.shape_cast %416 : vector<1x8x1xf32> to vector<8x1xf32>
    %418 = vector.extract_strided_slice %370 {offsets = [6, 0], sizes = [1, 256], strides = [1, 1]} : vector<8x256xf32> to vector<1x256xf32>
    %419 = vector.broadcast %417 : vector<8x1xf32> to vector<8x256xf32>
    %420 = vector.broadcast %418 : vector<1x256xf32> to vector<8x256xf32>
    %421 = arith.mulf %419, %420 : vector<8x256xf32>
    %422 = arith.addf %415, %421 : vector<8x256xf32>
    %c5_185 = arith.constant 5 : index
    %c0_186 = arith.constant 0 : index
    %c7_187 = arith.constant 7 : index
    %423 = vector.load %arg3[%c5_185, %c0_186, %c7_187] : memref<13x8x9xf32, #tpu.memory_space<vmem>>, vector<1x8x1xf32>
    %424 = vector.shape_cast %423 : vector<1x8x1xf32> to vector<8x1xf32>
    %425 = vector.extract_strided_slice %370 {offsets = [7, 0], sizes = [1, 256], strides = [1, 1]} : vector<8x256xf32> to vector<1x256xf32>
    %426 = vector.broadcast %424 : vector<8x1xf32> to vector<8x256xf32>
    %427 = vector.broadcast %425 : vector<1x256xf32> to vector<8x256xf32>
    %428 = arith.mulf %426, %427 : vector<8x256xf32>
    %429 = arith.addf %422, %428 : vector<8x256xf32>
    %cst_188 = arith.constant 0.000000e+00 : f32
    %430 = vector.broadcast %cst_188 : f32 to vector<8x256xf32>
    %431 = arith.maximumf %429, %430 : vector<8x256xf32>
    %cst_189 = arith.constant 2.000000e+00 : f32
    %432 = vector.broadcast %cst_189 : f32 to vector<8x256xf32>
    %433 = arith.mulf %432, %248 : vector<8x256xf32>
    %434 = arith.addf %431, %433 : vector<8x256xf32>
    %c10 = arith.constant 10 : index
    %c0_190 = arith.constant 0 : index
    %c8_191 = arith.constant 8 : index
    %435 = vector.load %arg3[%c10, %c0_190, %c8_191] : memref<13x8x9xf32, #tpu.memory_space<vmem>>, vector<1x8x1xf32>
    %436 = vector.shape_cast %435 : vector<1x8x1xf32> to vector<8x1xf32>
    %c10_192 = arith.constant 10 : index
    %c0_193 = arith.constant 0 : index
    %c0_194 = arith.constant 0 : index
    %437 = vector.load %arg3[%c10_192, %c0_193, %c0_194] : memref<13x8x9xf32, #tpu.memory_space<vmem>>, vector<1x8x1xf32>
    %438 = vector.shape_cast %437 : vector<1x8x1xf32> to vector<8x1xf32>
    %439 = vector.extract_strided_slice %434 {offsets = [0, 0], sizes = [1, 256], strides = [1, 1]} : vector<8x256xf32> to vector<1x256xf32>
    %440 = vector.broadcast %438 : vector<8x1xf32> to vector<8x256xf32>
    %441 = vector.broadcast %439 : vector<1x256xf32> to vector<8x256xf32>
    %442 = arith.mulf %440, %441 : vector<8x256xf32>
    %443 = vector.broadcast %436 : vector<8x1xf32> to vector<8x256xf32>
    %444 = arith.addf %443, %442 : vector<8x256xf32>
    %c10_195 = arith.constant 10 : index
    %c0_196 = arith.constant 0 : index
    %c1_197 = arith.constant 1 : index
    %445 = vector.load %arg3[%c10_195, %c0_196, %c1_197] : memref<13x8x9xf32, #tpu.memory_space<vmem>>, vector<1x8x1xf32>
    %446 = vector.shape_cast %445 : vector<1x8x1xf32> to vector<8x1xf32>
    %447 = vector.extract_strided_slice %434 {offsets = [1, 0], sizes = [1, 256], strides = [1, 1]} : vector<8x256xf32> to vector<1x256xf32>
    %448 = vector.broadcast %446 : vector<8x1xf32> to vector<8x256xf32>
    %449 = vector.broadcast %447 : vector<1x256xf32> to vector<8x256xf32>
    %450 = arith.mulf %448, %449 : vector<8x256xf32>
    %451 = arith.addf %444, %450 : vector<8x256xf32>
    %c10_198 = arith.constant 10 : index
    %c0_199 = arith.constant 0 : index
    %c2_200 = arith.constant 2 : index
    %452 = vector.load %arg3[%c10_198, %c0_199, %c2_200] : memref<13x8x9xf32, #tpu.memory_space<vmem>>, vector<1x8x1xf32>
    %453 = vector.shape_cast %452 : vector<1x8x1xf32> to vector<8x1xf32>
    %454 = vector.extract_strided_slice %434 {offsets = [2, 0], sizes = [1, 256], strides = [1, 1]} : vector<8x256xf32> to vector<1x256xf32>
    %455 = vector.broadcast %453 : vector<8x1xf32> to vector<8x256xf32>
    %456 = vector.broadcast %454 : vector<1x256xf32> to vector<8x256xf32>
    %457 = arith.mulf %455, %456 : vector<8x256xf32>
    %458 = arith.addf %451, %457 : vector<8x256xf32>
    %c10_201 = arith.constant 10 : index
    %c0_202 = arith.constant 0 : index
    %c3_203 = arith.constant 3 : index
    %459 = vector.load %arg3[%c10_201, %c0_202, %c3_203] : memref<13x8x9xf32, #tpu.memory_space<vmem>>, vector<1x8x1xf32>
    %460 = vector.shape_cast %459 : vector<1x8x1xf32> to vector<8x1xf32>
    %461 = vector.extract_strided_slice %434 {offsets = [3, 0], sizes = [1, 256], strides = [1, 1]} : vector<8x256xf32> to vector<1x256xf32>
    %462 = vector.broadcast %460 : vector<8x1xf32> to vector<8x256xf32>
    %463 = vector.broadcast %461 : vector<1x256xf32> to vector<8x256xf32>
    %464 = arith.mulf %462, %463 : vector<8x256xf32>
    %465 = arith.addf %458, %464 : vector<8x256xf32>
    %c10_204 = arith.constant 10 : index
    %c0_205 = arith.constant 0 : index
    %c4_206 = arith.constant 4 : index
    %466 = vector.load %arg3[%c10_204, %c0_205, %c4_206] : memref<13x8x9xf32, #tpu.memory_space<vmem>>, vector<1x8x1xf32>
    %467 = vector.shape_cast %466 : vector<1x8x1xf32> to vector<8x1xf32>
    %468 = vector.extract_strided_slice %434 {offsets = [4, 0], sizes = [1, 256], strides = [1, 1]} : vector<8x256xf32> to vector<1x256xf32>
    %469 = vector.broadcast %467 : vector<8x1xf32> to vector<8x256xf32>
    %470 = vector.broadcast %468 : vector<1x256xf32> to vector<8x256xf32>
    %471 = arith.mulf %469, %470 : vector<8x256xf32>
    %472 = arith.addf %465, %471 : vector<8x256xf32>
    %c10_207 = arith.constant 10 : index
    %c0_208 = arith.constant 0 : index
    %c5_209 = arith.constant 5 : index
    %473 = vector.load %arg3[%c10_207, %c0_208, %c5_209] : memref<13x8x9xf32, #tpu.memory_space<vmem>>, vector<1x8x1xf32>
    %474 = vector.shape_cast %473 : vector<1x8x1xf32> to vector<8x1xf32>
    %475 = vector.extract_strided_slice %434 {offsets = [5, 0], sizes = [1, 256], strides = [1, 1]} : vector<8x256xf32> to vector<1x256xf32>
    %476 = vector.broadcast %474 : vector<8x1xf32> to vector<8x256xf32>
    %477 = vector.broadcast %475 : vector<1x256xf32> to vector<8x256xf32>
    %478 = arith.mulf %476, %477 : vector<8x256xf32>
    %479 = arith.addf %472, %478 : vector<8x256xf32>
    %c10_210 = arith.constant 10 : index
    %c0_211 = arith.constant 0 : index
    %c6_212 = arith.constant 6 : index
    %480 = vector.load %arg3[%c10_210, %c0_211, %c6_212] : memref<13x8x9xf32, #tpu.memory_space<vmem>>, vector<1x8x1xf32>
    %481 = vector.shape_cast %480 : vector<1x8x1xf32> to vector<8x1xf32>
    %482 = vector.extract_strided_slice %434 {offsets = [6, 0], sizes = [1, 256], strides = [1, 1]} : vector<8x256xf32> to vector<1x256xf32>
    %483 = vector.broadcast %481 : vector<8x1xf32> to vector<8x256xf32>
    %484 = vector.broadcast %482 : vector<1x256xf32> to vector<8x256xf32>
    %485 = arith.mulf %483, %484 : vector<8x256xf32>
    %486 = arith.addf %479, %485 : vector<8x256xf32>
    %c10_213 = arith.constant 10 : index
    %c0_214 = arith.constant 0 : index
    %c7_215 = arith.constant 7 : index
    %487 = vector.load %arg3[%c10_213, %c0_214, %c7_215] : memref<13x8x9xf32, #tpu.memory_space<vmem>>, vector<1x8x1xf32>
    %488 = vector.shape_cast %487 : vector<1x8x1xf32> to vector<8x1xf32>
    %489 = vector.extract_strided_slice %434 {offsets = [7, 0], sizes = [1, 256], strides = [1, 1]} : vector<8x256xf32> to vector<1x256xf32>
    %490 = vector.broadcast %488 : vector<8x1xf32> to vector<8x256xf32>
    %491 = vector.broadcast %489 : vector<1x256xf32> to vector<8x256xf32>
    %492 = arith.mulf %490, %491 : vector<8x256xf32>
    %493 = arith.addf %486, %492 : vector<8x256xf32>
    %cst_216 = arith.constant 0.000000e+00 : f32
    %494 = vector.broadcast %cst_216 : f32 to vector<8x256xf32>
    %495 = arith.maximumf %493, %494 : vector<8x256xf32>
    %c6_217 = arith.constant 6 : index
    %c0_218 = arith.constant 0 : index
    %c8_219 = arith.constant 8 : index
    %496 = vector.load %arg3[%c6_217, %c0_218, %c8_219] : memref<13x8x9xf32, #tpu.memory_space<vmem>>, vector<1x8x1xf32>
    %497 = vector.shape_cast %496 : vector<1x8x1xf32> to vector<8x1xf32>
    %c6_220 = arith.constant 6 : index
    %c0_221 = arith.constant 0 : index
    %c0_222 = arith.constant 0 : index
    %498 = vector.load %arg3[%c6_220, %c0_221, %c0_222] : memref<13x8x9xf32, #tpu.memory_space<vmem>>, vector<1x8x1xf32>
    %499 = vector.shape_cast %498 : vector<1x8x1xf32> to vector<8x1xf32>
    %500 = vector.extract_strided_slice %495 {offsets = [0, 0], sizes = [1, 256], strides = [1, 1]} : vector<8x256xf32> to vector<1x256xf32>
    %501 = vector.broadcast %499 : vector<8x1xf32> to vector<8x256xf32>
    %502 = vector.broadcast %500 : vector<1x256xf32> to vector<8x256xf32>
    %503 = arith.mulf %501, %502 : vector<8x256xf32>
    %504 = vector.broadcast %497 : vector<8x1xf32> to vector<8x256xf32>
    %505 = arith.addf %504, %503 : vector<8x256xf32>
    %c6_223 = arith.constant 6 : index
    %c0_224 = arith.constant 0 : index
    %c1_225 = arith.constant 1 : index
    %506 = vector.load %arg3[%c6_223, %c0_224, %c1_225] : memref<13x8x9xf32, #tpu.memory_space<vmem>>, vector<1x8x1xf32>
    %507 = vector.shape_cast %506 : vector<1x8x1xf32> to vector<8x1xf32>
    %508 = vector.extract_strided_slice %495 {offsets = [1, 0], sizes = [1, 256], strides = [1, 1]} : vector<8x256xf32> to vector<1x256xf32>
    %509 = vector.broadcast %507 : vector<8x1xf32> to vector<8x256xf32>
    %510 = vector.broadcast %508 : vector<1x256xf32> to vector<8x256xf32>
    %511 = arith.mulf %509, %510 : vector<8x256xf32>
    %512 = arith.addf %505, %511 : vector<8x256xf32>
    %c6_226 = arith.constant 6 : index
    %c0_227 = arith.constant 0 : index
    %c2_228 = arith.constant 2 : index
    %513 = vector.load %arg3[%c6_226, %c0_227, %c2_228] : memref<13x8x9xf32, #tpu.memory_space<vmem>>, vector<1x8x1xf32>
    %514 = vector.shape_cast %513 : vector<1x8x1xf32> to vector<8x1xf32>
    %515 = vector.extract_strided_slice %495 {offsets = [2, 0], sizes = [1, 256], strides = [1, 1]} : vector<8x256xf32> to vector<1x256xf32>
    %516 = vector.broadcast %514 : vector<8x1xf32> to vector<8x256xf32>
    %517 = vector.broadcast %515 : vector<1x256xf32> to vector<8x256xf32>
    %518 = arith.mulf %516, %517 : vector<8x256xf32>
    %519 = arith.addf %512, %518 : vector<8x256xf32>
    %c6_229 = arith.constant 6 : index
    %c0_230 = arith.constant 0 : index
    %c3_231 = arith.constant 3 : index
    %520 = vector.load %arg3[%c6_229, %c0_230, %c3_231] : memref<13x8x9xf32, #tpu.memory_space<vmem>>, vector<1x8x1xf32>
    %521 = vector.shape_cast %520 : vector<1x8x1xf32> to vector<8x1xf32>
    %522 = vector.extract_strided_slice %495 {offsets = [3, 0], sizes = [1, 256], strides = [1, 1]} : vector<8x256xf32> to vector<1x256xf32>
    %523 = vector.broadcast %521 : vector<8x1xf32> to vector<8x256xf32>
    %524 = vector.broadcast %522 : vector<1x256xf32> to vector<8x256xf32>
    %525 = arith.mulf %523, %524 : vector<8x256xf32>
    %526 = arith.addf %519, %525 : vector<8x256xf32>
    %c6_232 = arith.constant 6 : index
    %c0_233 = arith.constant 0 : index
    %c4_234 = arith.constant 4 : index
    %527 = vector.load %arg3[%c6_232, %c0_233, %c4_234] : memref<13x8x9xf32, #tpu.memory_space<vmem>>, vector<1x8x1xf32>
    %528 = vector.shape_cast %527 : vector<1x8x1xf32> to vector<8x1xf32>
    %529 = vector.extract_strided_slice %495 {offsets = [4, 0], sizes = [1, 256], strides = [1, 1]} : vector<8x256xf32> to vector<1x256xf32>
    %530 = vector.broadcast %528 : vector<8x1xf32> to vector<8x256xf32>
    %531 = vector.broadcast %529 : vector<1x256xf32> to vector<8x256xf32>
    %532 = arith.mulf %530, %531 : vector<8x256xf32>
    %533 = arith.addf %526, %532 : vector<8x256xf32>
    %c6_235 = arith.constant 6 : index
    %c0_236 = arith.constant 0 : index
    %c5_237 = arith.constant 5 : index
    %534 = vector.load %arg3[%c6_235, %c0_236, %c5_237] : memref<13x8x9xf32, #tpu.memory_space<vmem>>, vector<1x8x1xf32>
    %535 = vector.shape_cast %534 : vector<1x8x1xf32> to vector<8x1xf32>
    %536 = vector.extract_strided_slice %495 {offsets = [5, 0], sizes = [1, 256], strides = [1, 1]} : vector<8x256xf32> to vector<1x256xf32>
    %537 = vector.broadcast %535 : vector<8x1xf32> to vector<8x256xf32>
    %538 = vector.broadcast %536 : vector<1x256xf32> to vector<8x256xf32>
    %539 = arith.mulf %537, %538 : vector<8x256xf32>
    %540 = arith.addf %533, %539 : vector<8x256xf32>
    %c6_238 = arith.constant 6 : index
    %c0_239 = arith.constant 0 : index
    %c6_240 = arith.constant 6 : index
    %541 = vector.load %arg3[%c6_238, %c0_239, %c6_240] : memref<13x8x9xf32, #tpu.memory_space<vmem>>, vector<1x8x1xf32>
    %542 = vector.shape_cast %541 : vector<1x8x1xf32> to vector<8x1xf32>
    %543 = vector.extract_strided_slice %495 {offsets = [6, 0], sizes = [1, 256], strides = [1, 1]} : vector<8x256xf32> to vector<1x256xf32>
    %544 = vector.broadcast %542 : vector<8x1xf32> to vector<8x256xf32>
    %545 = vector.broadcast %543 : vector<1x256xf32> to vector<8x256xf32>
    %546 = arith.mulf %544, %545 : vector<8x256xf32>
    %547 = arith.addf %540, %546 : vector<8x256xf32>
    %c6_241 = arith.constant 6 : index
    %c0_242 = arith.constant 0 : index
    %c7_243 = arith.constant 7 : index
    %548 = vector.load %arg3[%c6_241, %c0_242, %c7_243] : memref<13x8x9xf32, #tpu.memory_space<vmem>>, vector<1x8x1xf32>
    %549 = vector.shape_cast %548 : vector<1x8x1xf32> to vector<8x1xf32>
    %550 = vector.extract_strided_slice %495 {offsets = [7, 0], sizes = [1, 256], strides = [1, 1]} : vector<8x256xf32> to vector<1x256xf32>
    %551 = vector.broadcast %549 : vector<8x1xf32> to vector<8x256xf32>
    %552 = vector.broadcast %550 : vector<1x256xf32> to vector<8x256xf32>
    %553 = arith.mulf %551, %552 : vector<8x256xf32>
    %554 = arith.addf %547, %553 : vector<8x256xf32>
    %cst_244 = arith.constant 0.000000e+00 : f32
    %555 = vector.broadcast %cst_244 : f32 to vector<8x256xf32>
    %556 = arith.maximumf %554, %555 : vector<8x256xf32>
    %c7_245 = arith.constant 7 : index
    %c0_246 = arith.constant 0 : index
    %c8_247 = arith.constant 8 : index
    %557 = vector.load %arg3[%c7_245, %c0_246, %c8_247] : memref<13x8x9xf32, #tpu.memory_space<vmem>>, vector<1x8x1xf32>
    %558 = vector.shape_cast %557 : vector<1x8x1xf32> to vector<8x1xf32>
    %c7_248 = arith.constant 7 : index
    %c0_249 = arith.constant 0 : index
    %c0_250 = arith.constant 0 : index
    %559 = vector.load %arg3[%c7_248, %c0_249, %c0_250] : memref<13x8x9xf32, #tpu.memory_space<vmem>>, vector<1x8x1xf32>
    %560 = vector.shape_cast %559 : vector<1x8x1xf32> to vector<8x1xf32>
    %561 = vector.extract_strided_slice %556 {offsets = [0, 0], sizes = [1, 256], strides = [1, 1]} : vector<8x256xf32> to vector<1x256xf32>
    %562 = vector.broadcast %560 : vector<8x1xf32> to vector<8x256xf32>
    %563 = vector.broadcast %561 : vector<1x256xf32> to vector<8x256xf32>
    %564 = arith.mulf %562, %563 : vector<8x256xf32>
    %565 = vector.broadcast %558 : vector<8x1xf32> to vector<8x256xf32>
    %566 = arith.addf %565, %564 : vector<8x256xf32>
    %c7_251 = arith.constant 7 : index
    %c0_252 = arith.constant 0 : index
    %c1_253 = arith.constant 1 : index
    %567 = vector.load %arg3[%c7_251, %c0_252, %c1_253] : memref<13x8x9xf32, #tpu.memory_space<vmem>>, vector<1x8x1xf32>
    %568 = vector.shape_cast %567 : vector<1x8x1xf32> to vector<8x1xf32>
    %569 = vector.extract_strided_slice %556 {offsets = [1, 0], sizes = [1, 256], strides = [1, 1]} : vector<8x256xf32> to vector<1x256xf32>
    %570 = vector.broadcast %568 : vector<8x1xf32> to vector<8x256xf32>
    %571 = vector.broadcast %569 : vector<1x256xf32> to vector<8x256xf32>
    %572 = arith.mulf %570, %571 : vector<8x256xf32>
    %573 = arith.addf %566, %572 : vector<8x256xf32>
    %c7_254 = arith.constant 7 : index
    %c0_255 = arith.constant 0 : index
    %c2_256 = arith.constant 2 : index
    %574 = vector.load %arg3[%c7_254, %c0_255, %c2_256] : memref<13x8x9xf32, #tpu.memory_space<vmem>>, vector<1x8x1xf32>
    %575 = vector.shape_cast %574 : vector<1x8x1xf32> to vector<8x1xf32>
    %576 = vector.extract_strided_slice %556 {offsets = [2, 0], sizes = [1, 256], strides = [1, 1]} : vector<8x256xf32> to vector<1x256xf32>
    %577 = vector.broadcast %575 : vector<8x1xf32> to vector<8x256xf32>
    %578 = vector.broadcast %576 : vector<1x256xf32> to vector<8x256xf32>
    %579 = arith.mulf %577, %578 : vector<8x256xf32>
    %580 = arith.addf %573, %579 : vector<8x256xf32>
    %c7_257 = arith.constant 7 : index
    %c0_258 = arith.constant 0 : index
    %c3_259 = arith.constant 3 : index
    %581 = vector.load %arg3[%c7_257, %c0_258, %c3_259] : memref<13x8x9xf32, #tpu.memory_space<vmem>>, vector<1x8x1xf32>
    %582 = vector.shape_cast %581 : vector<1x8x1xf32> to vector<8x1xf32>
    %583 = vector.extract_strided_slice %556 {offsets = [3, 0], sizes = [1, 256], strides = [1, 1]} : vector<8x256xf32> to vector<1x256xf32>
    %584 = vector.broadcast %582 : vector<8x1xf32> to vector<8x256xf32>
    %585 = vector.broadcast %583 : vector<1x256xf32> to vector<8x256xf32>
    %586 = arith.mulf %584, %585 : vector<8x256xf32>
    %587 = arith.addf %580, %586 : vector<8x256xf32>
    %c7_260 = arith.constant 7 : index
    %c0_261 = arith.constant 0 : index
    %c4_262 = arith.constant 4 : index
    %588 = vector.load %arg3[%c7_260, %c0_261, %c4_262] : memref<13x8x9xf32, #tpu.memory_space<vmem>>, vector<1x8x1xf32>
    %589 = vector.shape_cast %588 : vector<1x8x1xf32> to vector<8x1xf32>
    %590 = vector.extract_strided_slice %556 {offsets = [4, 0], sizes = [1, 256], strides = [1, 1]} : vector<8x256xf32> to vector<1x256xf32>
    %591 = vector.broadcast %589 : vector<8x1xf32> to vector<8x256xf32>
    %592 = vector.broadcast %590 : vector<1x256xf32> to vector<8x256xf32>
    %593 = arith.mulf %591, %592 : vector<8x256xf32>
    %594 = arith.addf %587, %593 : vector<8x256xf32>
    %c7_263 = arith.constant 7 : index
    %c0_264 = arith.constant 0 : index
    %c5_265 = arith.constant 5 : index
    %595 = vector.load %arg3[%c7_263, %c0_264, %c5_265] : memref<13x8x9xf32, #tpu.memory_space<vmem>>, vector<1x8x1xf32>
    %596 = vector.shape_cast %595 : vector<1x8x1xf32> to vector<8x1xf32>
    %597 = vector.extract_strided_slice %556 {offsets = [5, 0], sizes = [1, 256], strides = [1, 1]} : vector<8x256xf32> to vector<1x256xf32>
    %598 = vector.broadcast %596 : vector<8x1xf32> to vector<8x256xf32>
    %599 = vector.broadcast %597 : vector<1x256xf32> to vector<8x256xf32>
    %600 = arith.mulf %598, %599 : vector<8x256xf32>
    %601 = arith.addf %594, %600 : vector<8x256xf32>
    %c7_266 = arith.constant 7 : index
    %c0_267 = arith.constant 0 : index
    %c6_268 = arith.constant 6 : index
    %602 = vector.load %arg3[%c7_266, %c0_267, %c6_268] : memref<13x8x9xf32, #tpu.memory_space<vmem>>, vector<1x8x1xf32>
    %603 = vector.shape_cast %602 : vector<1x8x1xf32> to vector<8x1xf32>
    %604 = vector.extract_strided_slice %556 {offsets = [6, 0], sizes = [1, 256], strides = [1, 1]} : vector<8x256xf32> to vector<1x256xf32>
    %605 = vector.broadcast %603 : vector<8x1xf32> to vector<8x256xf32>
    %606 = vector.broadcast %604 : vector<1x256xf32> to vector<8x256xf32>
    %607 = arith.mulf %605, %606 : vector<8x256xf32>
    %608 = arith.addf %601, %607 : vector<8x256xf32>
    %c7_269 = arith.constant 7 : index
    %c0_270 = arith.constant 0 : index
    %c7_271 = arith.constant 7 : index
    %609 = vector.load %arg3[%c7_269, %c0_270, %c7_271] : memref<13x8x9xf32, #tpu.memory_space<vmem>>, vector<1x8x1xf32>
    %610 = vector.shape_cast %609 : vector<1x8x1xf32> to vector<8x1xf32>
    %611 = vector.extract_strided_slice %556 {offsets = [7, 0], sizes = [1, 256], strides = [1, 1]} : vector<8x256xf32> to vector<1x256xf32>
    %612 = vector.broadcast %610 : vector<8x1xf32> to vector<8x256xf32>
    %613 = vector.broadcast %611 : vector<1x256xf32> to vector<8x256xf32>
    %614 = arith.mulf %612, %613 : vector<8x256xf32>
    %615 = arith.addf %608, %614 : vector<8x256xf32>
    %cst_272 = arith.constant 0.000000e+00 : f32
    %616 = vector.broadcast %cst_272 : f32 to vector<8x256xf32>
    %617 = arith.maximumf %615, %616 : vector<8x256xf32>
    %c8_273 = arith.constant 8 : index
    %c0_274 = arith.constant 0 : index
    %c8_275 = arith.constant 8 : index
    %618 = vector.load %arg3[%c8_273, %c0_274, %c8_275] : memref<13x8x9xf32, #tpu.memory_space<vmem>>, vector<1x8x1xf32>
    %619 = vector.shape_cast %618 : vector<1x8x1xf32> to vector<8x1xf32>
    %c8_276 = arith.constant 8 : index
    %c0_277 = arith.constant 0 : index
    %c0_278 = arith.constant 0 : index
    %620 = vector.load %arg3[%c8_276, %c0_277, %c0_278] : memref<13x8x9xf32, #tpu.memory_space<vmem>>, vector<1x8x1xf32>
    %621 = vector.shape_cast %620 : vector<1x8x1xf32> to vector<8x1xf32>
    %622 = vector.extract_strided_slice %617 {offsets = [0, 0], sizes = [1, 256], strides = [1, 1]} : vector<8x256xf32> to vector<1x256xf32>
    %623 = vector.broadcast %621 : vector<8x1xf32> to vector<8x256xf32>
    %624 = vector.broadcast %622 : vector<1x256xf32> to vector<8x256xf32>
    %625 = arith.mulf %623, %624 : vector<8x256xf32>
    %626 = vector.broadcast %619 : vector<8x1xf32> to vector<8x256xf32>
    %627 = arith.addf %626, %625 : vector<8x256xf32>
    %c8_279 = arith.constant 8 : index
    %c0_280 = arith.constant 0 : index
    %c1_281 = arith.constant 1 : index
    %628 = vector.load %arg3[%c8_279, %c0_280, %c1_281] : memref<13x8x9xf32, #tpu.memory_space<vmem>>, vector<1x8x1xf32>
    %629 = vector.shape_cast %628 : vector<1x8x1xf32> to vector<8x1xf32>
    %630 = vector.extract_strided_slice %617 {offsets = [1, 0], sizes = [1, 256], strides = [1, 1]} : vector<8x256xf32> to vector<1x256xf32>
    %631 = vector.broadcast %629 : vector<8x1xf32> to vector<8x256xf32>
    %632 = vector.broadcast %630 : vector<1x256xf32> to vector<8x256xf32>
    %633 = arith.mulf %631, %632 : vector<8x256xf32>
    %634 = arith.addf %627, %633 : vector<8x256xf32>
    %c8_282 = arith.constant 8 : index
    %c0_283 = arith.constant 0 : index
    %c2_284 = arith.constant 2 : index
    %635 = vector.load %arg3[%c8_282, %c0_283, %c2_284] : memref<13x8x9xf32, #tpu.memory_space<vmem>>, vector<1x8x1xf32>
    %636 = vector.shape_cast %635 : vector<1x8x1xf32> to vector<8x1xf32>
    %637 = vector.extract_strided_slice %617 {offsets = [2, 0], sizes = [1, 256], strides = [1, 1]} : vector<8x256xf32> to vector<1x256xf32>
    %638 = vector.broadcast %636 : vector<8x1xf32> to vector<8x256xf32>
    %639 = vector.broadcast %637 : vector<1x256xf32> to vector<8x256xf32>
    %640 = arith.mulf %638, %639 : vector<8x256xf32>
    %641 = arith.addf %634, %640 : vector<8x256xf32>
    %c8_285 = arith.constant 8 : index
    %c0_286 = arith.constant 0 : index
    %c3_287 = arith.constant 3 : index
    %642 = vector.load %arg3[%c8_285, %c0_286, %c3_287] : memref<13x8x9xf32, #tpu.memory_space<vmem>>, vector<1x8x1xf32>
    %643 = vector.shape_cast %642 : vector<1x8x1xf32> to vector<8x1xf32>
    %644 = vector.extract_strided_slice %617 {offsets = [3, 0], sizes = [1, 256], strides = [1, 1]} : vector<8x256xf32> to vector<1x256xf32>
    %645 = vector.broadcast %643 : vector<8x1xf32> to vector<8x256xf32>
    %646 = vector.broadcast %644 : vector<1x256xf32> to vector<8x256xf32>
    %647 = arith.mulf %645, %646 : vector<8x256xf32>
    %648 = arith.addf %641, %647 : vector<8x256xf32>
    %c8_288 = arith.constant 8 : index
    %c0_289 = arith.constant 0 : index
    %c4_290 = arith.constant 4 : index
    %649 = vector.load %arg3[%c8_288, %c0_289, %c4_290] : memref<13x8x9xf32, #tpu.memory_space<vmem>>, vector<1x8x1xf32>
    %650 = vector.shape_cast %649 : vector<1x8x1xf32> to vector<8x1xf32>
    %651 = vector.extract_strided_slice %617 {offsets = [4, 0], sizes = [1, 256], strides = [1, 1]} : vector<8x256xf32> to vector<1x256xf32>
    %652 = vector.broadcast %650 : vector<8x1xf32> to vector<8x256xf32>
    %653 = vector.broadcast %651 : vector<1x256xf32> to vector<8x256xf32>
    %654 = arith.mulf %652, %653 : vector<8x256xf32>
    %655 = arith.addf %648, %654 : vector<8x256xf32>
    %c8_291 = arith.constant 8 : index
    %c0_292 = arith.constant 0 : index
    %c5_293 = arith.constant 5 : index
    %656 = vector.load %arg3[%c8_291, %c0_292, %c5_293] : memref<13x8x9xf32, #tpu.memory_space<vmem>>, vector<1x8x1xf32>
    %657 = vector.shape_cast %656 : vector<1x8x1xf32> to vector<8x1xf32>
    %658 = vector.extract_strided_slice %617 {offsets = [5, 0], sizes = [1, 256], strides = [1, 1]} : vector<8x256xf32> to vector<1x256xf32>
    %659 = vector.broadcast %657 : vector<8x1xf32> to vector<8x256xf32>
    %660 = vector.broadcast %658 : vector<1x256xf32> to vector<8x256xf32>
    %661 = arith.mulf %659, %660 : vector<8x256xf32>
    %662 = arith.addf %655, %661 : vector<8x256xf32>
    %c8_294 = arith.constant 8 : index
    %c0_295 = arith.constant 0 : index
    %c6_296 = arith.constant 6 : index
    %663 = vector.load %arg3[%c8_294, %c0_295, %c6_296] : memref<13x8x9xf32, #tpu.memory_space<vmem>>, vector<1x8x1xf32>
    %664 = vector.shape_cast %663 : vector<1x8x1xf32> to vector<8x1xf32>
    %665 = vector.extract_strided_slice %617 {offsets = [6, 0], sizes = [1, 256], strides = [1, 1]} : vector<8x256xf32> to vector<1x256xf32>
    %666 = vector.broadcast %664 : vector<8x1xf32> to vector<8x256xf32>
    %667 = vector.broadcast %665 : vector<1x256xf32> to vector<8x256xf32>
    %668 = arith.mulf %666, %667 : vector<8x256xf32>
    %669 = arith.addf %662, %668 : vector<8x256xf32>
    %c8_297 = arith.constant 8 : index
    %c0_298 = arith.constant 0 : index
    %c7_299 = arith.constant 7 : index
    %670 = vector.load %arg3[%c8_297, %c0_298, %c7_299] : memref<13x8x9xf32, #tpu.memory_space<vmem>>, vector<1x8x1xf32>
    %671 = vector.shape_cast %670 : vector<1x8x1xf32> to vector<8x1xf32>
    %672 = vector.extract_strided_slice %617 {offsets = [7, 0], sizes = [1, 256], strides = [1, 1]} : vector<8x256xf32> to vector<1x256xf32>
    %673 = vector.broadcast %671 : vector<8x1xf32> to vector<8x256xf32>
    %674 = vector.broadcast %672 : vector<1x256xf32> to vector<8x256xf32>
    %675 = arith.mulf %673, %674 : vector<8x256xf32>
    %676 = arith.addf %669, %675 : vector<8x256xf32>
    %cst_300 = arith.constant 0.000000e+00 : f32
    %677 = vector.broadcast %cst_300 : f32 to vector<8x256xf32>
    %678 = arith.maximumf %676, %677 : vector<8x256xf32>
    %cst_301 = arith.constant 2.000000e+00 : f32
    %679 = vector.broadcast %cst_301 : f32 to vector<8x256xf32>
    %680 = arith.mulf %679, %495 : vector<8x256xf32>
    %681 = arith.addf %678, %680 : vector<8x256xf32>
    %c11 = arith.constant 11 : index
    %c0_302 = arith.constant 0 : index
    %c8_303 = arith.constant 8 : index
    %682 = vector.load %arg3[%c11, %c0_302, %c8_303] : memref<13x8x9xf32, #tpu.memory_space<vmem>>, vector<1x8x1xf32>
    %683 = vector.shape_cast %682 : vector<1x8x1xf32> to vector<8x1xf32>
    %c11_304 = arith.constant 11 : index
    %c0_305 = arith.constant 0 : index
    %c0_306 = arith.constant 0 : index
    %684 = vector.load %arg3[%c11_304, %c0_305, %c0_306] : memref<13x8x9xf32, #tpu.memory_space<vmem>>, vector<1x8x1xf32>
    %685 = vector.shape_cast %684 : vector<1x8x1xf32> to vector<8x1xf32>
    %686 = vector.extract_strided_slice %681 {offsets = [0, 0], sizes = [1, 256], strides = [1, 1]} : vector<8x256xf32> to vector<1x256xf32>
    %687 = vector.broadcast %685 : vector<8x1xf32> to vector<8x256xf32>
    %688 = vector.broadcast %686 : vector<1x256xf32> to vector<8x256xf32>
    %689 = arith.mulf %687, %688 : vector<8x256xf32>
    %690 = vector.broadcast %683 : vector<8x1xf32> to vector<8x256xf32>
    %691 = arith.addf %690, %689 : vector<8x256xf32>
    %c11_307 = arith.constant 11 : index
    %c0_308 = arith.constant 0 : index
    %c1_309 = arith.constant 1 : index
    %692 = vector.load %arg3[%c11_307, %c0_308, %c1_309] : memref<13x8x9xf32, #tpu.memory_space<vmem>>, vector<1x8x1xf32>
    %693 = vector.shape_cast %692 : vector<1x8x1xf32> to vector<8x1xf32>
    %694 = vector.extract_strided_slice %681 {offsets = [1, 0], sizes = [1, 256], strides = [1, 1]} : vector<8x256xf32> to vector<1x256xf32>
    %695 = vector.broadcast %693 : vector<8x1xf32> to vector<8x256xf32>
    %696 = vector.broadcast %694 : vector<1x256xf32> to vector<8x256xf32>
    %697 = arith.mulf %695, %696 : vector<8x256xf32>
    %698 = arith.addf %691, %697 : vector<8x256xf32>
    %c11_310 = arith.constant 11 : index
    %c0_311 = arith.constant 0 : index
    %c2_312 = arith.constant 2 : index
    %699 = vector.load %arg3[%c11_310, %c0_311, %c2_312] : memref<13x8x9xf32, #tpu.memory_space<vmem>>, vector<1x8x1xf32>
    %700 = vector.shape_cast %699 : vector<1x8x1xf32> to vector<8x1xf32>
    %701 = vector.extract_strided_slice %681 {offsets = [2, 0], sizes = [1, 256], strides = [1, 1]} : vector<8x256xf32> to vector<1x256xf32>
    %702 = vector.broadcast %700 : vector<8x1xf32> to vector<8x256xf32>
    %703 = vector.broadcast %701 : vector<1x256xf32> to vector<8x256xf32>
    %704 = arith.mulf %702, %703 : vector<8x256xf32>
    %705 = arith.addf %698, %704 : vector<8x256xf32>
    %c11_313 = arith.constant 11 : index
    %c0_314 = arith.constant 0 : index
    %c3_315 = arith.constant 3 : index
    %706 = vector.load %arg3[%c11_313, %c0_314, %c3_315] : memref<13x8x9xf32, #tpu.memory_space<vmem>>, vector<1x8x1xf32>
    %707 = vector.shape_cast %706 : vector<1x8x1xf32> to vector<8x1xf32>
    %708 = vector.extract_strided_slice %681 {offsets = [3, 0], sizes = [1, 256], strides = [1, 1]} : vector<8x256xf32> to vector<1x256xf32>
    %709 = vector.broadcast %707 : vector<8x1xf32> to vector<8x256xf32>
    %710 = vector.broadcast %708 : vector<1x256xf32> to vector<8x256xf32>
    %711 = arith.mulf %709, %710 : vector<8x256xf32>
    %712 = arith.addf %705, %711 : vector<8x256xf32>
    %c11_316 = arith.constant 11 : index
    %c0_317 = arith.constant 0 : index
    %c4_318 = arith.constant 4 : index
    %713 = vector.load %arg3[%c11_316, %c0_317, %c4_318] : memref<13x8x9xf32, #tpu.memory_space<vmem>>, vector<1x8x1xf32>
    %714 = vector.shape_cast %713 : vector<1x8x1xf32> to vector<8x1xf32>
    %715 = vector.extract_strided_slice %681 {offsets = [4, 0], sizes = [1, 256], strides = [1, 1]} : vector<8x256xf32> to vector<1x256xf32>
    %716 = vector.broadcast %714 : vector<8x1xf32> to vector<8x256xf32>
    %717 = vector.broadcast %715 : vector<1x256xf32> to vector<8x256xf32>
    %718 = arith.mulf %716, %717 : vector<8x256xf32>
    %719 = arith.addf %712, %718 : vector<8x256xf32>
    %c11_319 = arith.constant 11 : index
    %c0_320 = arith.constant 0 : index
    %c5_321 = arith.constant 5 : index
    %720 = vector.load %arg3[%c11_319, %c0_320, %c5_321] : memref<13x8x9xf32, #tpu.memory_space<vmem>>, vector<1x8x1xf32>
    %721 = vector.shape_cast %720 : vector<1x8x1xf32> to vector<8x1xf32>
    %722 = vector.extract_strided_slice %681 {offsets = [5, 0], sizes = [1, 256], strides = [1, 1]} : vector<8x256xf32> to vector<1x256xf32>
    %723 = vector.broadcast %721 : vector<8x1xf32> to vector<8x256xf32>
    %724 = vector.broadcast %722 : vector<1x256xf32> to vector<8x256xf32>
    %725 = arith.mulf %723, %724 : vector<8x256xf32>
    %726 = arith.addf %719, %725 : vector<8x256xf32>
    %c11_322 = arith.constant 11 : index
    %c0_323 = arith.constant 0 : index
    %c6_324 = arith.constant 6 : index
    %727 = vector.load %arg3[%c11_322, %c0_323, %c6_324] : memref<13x8x9xf32, #tpu.memory_space<vmem>>, vector<1x8x1xf32>
    %728 = vector.shape_cast %727 : vector<1x8x1xf32> to vector<8x1xf32>
    %729 = vector.extract_strided_slice %681 {offsets = [6, 0], sizes = [1, 256], strides = [1, 1]} : vector<8x256xf32> to vector<1x256xf32>
    %730 = vector.broadcast %728 : vector<8x1xf32> to vector<8x256xf32>
    %731 = vector.broadcast %729 : vector<1x256xf32> to vector<8x256xf32>
    %732 = arith.mulf %730, %731 : vector<8x256xf32>
    %733 = arith.addf %726, %732 : vector<8x256xf32>
    %c11_325 = arith.constant 11 : index
    %c0_326 = arith.constant 0 : index
    %c7_327 = arith.constant 7 : index
    %734 = vector.load %arg3[%c11_325, %c0_326, %c7_327] : memref<13x8x9xf32, #tpu.memory_space<vmem>>, vector<1x8x1xf32>
    %735 = vector.shape_cast %734 : vector<1x8x1xf32> to vector<8x1xf32>
    %736 = vector.extract_strided_slice %681 {offsets = [7, 0], sizes = [1, 256], strides = [1, 1]} : vector<8x256xf32> to vector<1x256xf32>
    %737 = vector.broadcast %735 : vector<8x1xf32> to vector<8x256xf32>
    %738 = vector.broadcast %736 : vector<1x256xf32> to vector<8x256xf32>
    %739 = arith.mulf %737, %738 : vector<8x256xf32>
    %740 = arith.addf %733, %739 : vector<8x256xf32>
    %cst_328 = arith.constant 0.000000e+00 : f32
    %741 = vector.broadcast %cst_328 : f32 to vector<8x256xf32>
    %742 = arith.maximumf %740, %741 : vector<8x256xf32>
    %cst_329 = arith.constant 2.000000e+00 : f32
    %743 = vector.broadcast %cst_329 : f32 to vector<8x256xf32>
    %744 = arith.mulf %743, %1 : vector<8x256xf32>
    %745 = arith.addf %742, %744 : vector<8x256xf32>
    %c12 = arith.constant 12 : index
    %c0_330 = arith.constant 0 : index
    %c8_331 = arith.constant 8 : index
    %746 = vector.load %arg3[%c12, %c0_330, %c8_331] : memref<13x8x9xf32, #tpu.memory_space<vmem>>, vector<1x8x1xf32>
    %747 = vector.shape_cast %746 : vector<1x8x1xf32> to vector<8x1xf32>
    %c12_332 = arith.constant 12 : index
    %c0_333 = arith.constant 0 : index
    %c0_334 = arith.constant 0 : index
    %748 = vector.load %arg3[%c12_332, %c0_333, %c0_334] : memref<13x8x9xf32, #tpu.memory_space<vmem>>, vector<1x8x1xf32>
    %749 = vector.shape_cast %748 : vector<1x8x1xf32> to vector<8x1xf32>
    %750 = vector.extract_strided_slice %745 {offsets = [0, 0], sizes = [1, 256], strides = [1, 1]} : vector<8x256xf32> to vector<1x256xf32>
    %751 = vector.broadcast %749 : vector<8x1xf32> to vector<8x256xf32>
    %752 = vector.broadcast %750 : vector<1x256xf32> to vector<8x256xf32>
    %753 = arith.mulf %751, %752 : vector<8x256xf32>
    %754 = vector.broadcast %747 : vector<8x1xf32> to vector<8x256xf32>
    %755 = arith.addf %754, %753 : vector<8x256xf32>
    %c12_335 = arith.constant 12 : index
    %c0_336 = arith.constant 0 : index
    %c1_337 = arith.constant 1 : index
    %756 = vector.load %arg3[%c12_335, %c0_336, %c1_337] : memref<13x8x9xf32, #tpu.memory_space<vmem>>, vector<1x8x1xf32>
    %757 = vector.shape_cast %756 : vector<1x8x1xf32> to vector<8x1xf32>
    %758 = vector.extract_strided_slice %745 {offsets = [1, 0], sizes = [1, 256], strides = [1, 1]} : vector<8x256xf32> to vector<1x256xf32>
    %759 = vector.broadcast %757 : vector<8x1xf32> to vector<8x256xf32>
    %760 = vector.broadcast %758 : vector<1x256xf32> to vector<8x256xf32>
    %761 = arith.mulf %759, %760 : vector<8x256xf32>
    %762 = arith.addf %755, %761 : vector<8x256xf32>
    %c12_338 = arith.constant 12 : index
    %c0_339 = arith.constant 0 : index
    %c2_340 = arith.constant 2 : index
    %763 = vector.load %arg3[%c12_338, %c0_339, %c2_340] : memref<13x8x9xf32, #tpu.memory_space<vmem>>, vector<1x8x1xf32>
    %764 = vector.shape_cast %763 : vector<1x8x1xf32> to vector<8x1xf32>
    %765 = vector.extract_strided_slice %745 {offsets = [2, 0], sizes = [1, 256], strides = [1, 1]} : vector<8x256xf32> to vector<1x256xf32>
    %766 = vector.broadcast %764 : vector<8x1xf32> to vector<8x256xf32>
    %767 = vector.broadcast %765 : vector<1x256xf32> to vector<8x256xf32>
    %768 = arith.mulf %766, %767 : vector<8x256xf32>
    %769 = arith.addf %762, %768 : vector<8x256xf32>
    %c12_341 = arith.constant 12 : index
    %c0_342 = arith.constant 0 : index
    %c3_343 = arith.constant 3 : index
    %770 = vector.load %arg3[%c12_341, %c0_342, %c3_343] : memref<13x8x9xf32, #tpu.memory_space<vmem>>, vector<1x8x1xf32>
    %771 = vector.shape_cast %770 : vector<1x8x1xf32> to vector<8x1xf32>
    %772 = vector.extract_strided_slice %745 {offsets = [3, 0], sizes = [1, 256], strides = [1, 1]} : vector<8x256xf32> to vector<1x256xf32>
    %773 = vector.broadcast %771 : vector<8x1xf32> to vector<8x256xf32>
    %774 = vector.broadcast %772 : vector<1x256xf32> to vector<8x256xf32>
    %775 = arith.mulf %773, %774 : vector<8x256xf32>
    %776 = arith.addf %769, %775 : vector<8x256xf32>
    %c12_344 = arith.constant 12 : index
    %c0_345 = arith.constant 0 : index
    %c4_346 = arith.constant 4 : index
    %777 = vector.load %arg3[%c12_344, %c0_345, %c4_346] : memref<13x8x9xf32, #tpu.memory_space<vmem>>, vector<1x8x1xf32>
    %778 = vector.shape_cast %777 : vector<1x8x1xf32> to vector<8x1xf32>
    %779 = vector.extract_strided_slice %745 {offsets = [4, 0], sizes = [1, 256], strides = [1, 1]} : vector<8x256xf32> to vector<1x256xf32>
    %780 = vector.broadcast %778 : vector<8x1xf32> to vector<8x256xf32>
    %781 = vector.broadcast %779 : vector<1x256xf32> to vector<8x256xf32>
    %782 = arith.mulf %780, %781 : vector<8x256xf32>
    %783 = arith.addf %776, %782 : vector<8x256xf32>
    %c12_347 = arith.constant 12 : index
    %c0_348 = arith.constant 0 : index
    %c5_349 = arith.constant 5 : index
    %784 = vector.load %arg3[%c12_347, %c0_348, %c5_349] : memref<13x8x9xf32, #tpu.memory_space<vmem>>, vector<1x8x1xf32>
    %785 = vector.shape_cast %784 : vector<1x8x1xf32> to vector<8x1xf32>
    %786 = vector.extract_strided_slice %745 {offsets = [5, 0], sizes = [1, 256], strides = [1, 1]} : vector<8x256xf32> to vector<1x256xf32>
    %787 = vector.broadcast %785 : vector<8x1xf32> to vector<8x256xf32>
    %788 = vector.broadcast %786 : vector<1x256xf32> to vector<8x256xf32>
    %789 = arith.mulf %787, %788 : vector<8x256xf32>
    %790 = arith.addf %783, %789 : vector<8x256xf32>
    %c12_350 = arith.constant 12 : index
    %c0_351 = arith.constant 0 : index
    %c6_352 = arith.constant 6 : index
    %791 = vector.load %arg3[%c12_350, %c0_351, %c6_352] : memref<13x8x9xf32, #tpu.memory_space<vmem>>, vector<1x8x1xf32>
    %792 = vector.shape_cast %791 : vector<1x8x1xf32> to vector<8x1xf32>
    %793 = vector.extract_strided_slice %745 {offsets = [6, 0], sizes = [1, 256], strides = [1, 1]} : vector<8x256xf32> to vector<1x256xf32>
    %794 = vector.broadcast %792 : vector<8x1xf32> to vector<8x256xf32>
    %795 = vector.broadcast %793 : vector<1x256xf32> to vector<8x256xf32>
    %796 = arith.mulf %794, %795 : vector<8x256xf32>
    %797 = arith.addf %790, %796 : vector<8x256xf32>
    %c12_353 = arith.constant 12 : index
    %c0_354 = arith.constant 0 : index
    %c7_355 = arith.constant 7 : index
    %798 = vector.load %arg3[%c12_353, %c0_354, %c7_355] : memref<13x8x9xf32, #tpu.memory_space<vmem>>, vector<1x8x1xf32>
    %799 = vector.shape_cast %798 : vector<1x8x1xf32> to vector<8x1xf32>
    %800 = vector.extract_strided_slice %745 {offsets = [7, 0], sizes = [1, 256], strides = [1, 1]} : vector<8x256xf32> to vector<1x256xf32>
    %801 = vector.broadcast %799 : vector<8x1xf32> to vector<8x256xf32>
    %802 = vector.broadcast %800 : vector<1x256xf32> to vector<8x256xf32>
    %803 = arith.mulf %801, %802 : vector<8x256xf32>
    %804 = arith.addf %797, %803 : vector<8x256xf32>
    %cst_356 = arith.constant 0.000000e+00 : f32
    %805 = vector.broadcast %cst_356 : f32 to vector<8x256xf32>
    %806 = arith.maximumf %804, %805 : vector<8x256xf32>
    %c0_357 = arith.constant 0 : index
    %c0_358 = arith.constant 0 : index
    %c0_359 = arith.constant 0 : index
    %807 = vector.load %arg4[%c0_357, %c0_358, %c0_359] : memref<1x8x256xf32, #tpu.memory_space<vmem>>, vector<1x8x256xf32>
    %808 = vector.shape_cast %807 : vector<1x8x256xf32> to vector<8x256xf32>
    %809 = vector.shape_cast %806 : vector<8x256xf32> to vector<1x8x256xf32>
    tpu.vector_store %arg4[%c0_357, %c0_358, %c0_359], %809 {strides = array<i32>} : memref<1x8x256xf32, #tpu.memory_space<vmem>>, vector<1x8x256xf32>,
    return
  }
  func.func @transform_0(%arg0: i32, %arg1: i32) -> (i32, i32, i32) {
    %c0_i32 = arith.constant 0 : i32
    %c0_i32_0 = arith.constant 0 : i32
    return %arg0, %c0_i32, %arg1 : i32, i32, i32
  }
  func.func @transform_1(%arg0: i32, %arg1: i32) -> (i32, i32, i32) {
    %c0_i32 = arith.constant 0 : i32
    %c0_i32_0 = arith.constant 0 : i32
    %c0_i32_1 = arith.constant 0 : i32
    %c0_i32_2 = arith.constant 0 : i32
    return %c0_i32, %c0_i32_0, %c0_i32_1 : i32, i32, i32
  }
  func.func @transform_2(%arg0: i32, %arg1: i32) -> (i32, i32, i32) {
    %c0_i32 = arith.constant 0 : i32
    %c0_i32_0 = arith.constant 0 : i32
    return %arg0, %c0_i32, %arg1 : i32, i32, i32
  }
}

</mosaic_0001>

<bundles_post_ra>
// kernel: tpu_custom_call.1
= control target key start
LH: loop header
LB: loop body
LE: loop exit
PB: predicated region body
PF: predicated region fallthrough
CT: control target
= control target key end

     0   :  { %7 = vsyncpa [#allocation3], 0  ;;  %s3157_s0 = inlined_call_operand.vmem [shape: f32[2,8,256], index: 0, kind: input, shape index: {}]   ;;  %s3158_s1 = inlined_call_operand.vmem [shape: f32[13,8,9], index: 1, kind: input, shape index: {}]   ;;  %s3159_s2 = inlined_call_operand.hbm [shape: f32[2,8,256], index: 2, kind: output, shape index: {}]  }
   0x1   :  { %9 = vsyncpa [#allocation3 + $0x1], 0  ;;  %s2375_s9 = smov 0   ;;  %s2377_s10 = smov 0  }
   0x2   :  { %s2379_s11 = smov 0   ;;  %s2381_s12 = smov 0  }
   0x3   :  { %s2383_s13 = smov 0   ;;  %s2385_s14 = smov 0  }
   0x4 LB: > { %s2064_s15 = sadd.s32 4294967295, %s2348_s14   ;;  %s2065_s16 = sadd.s32 4294967294, %s2348_s14   ;;  %s2348_s14 = sphi %s2385_s14, %s15_s14   ;;  %s2344_s13 = sphi %s2383_s13, %s3166_s13   ;;  %s2340_s12 = sphi %s2381_s12, %s3165_s12   ;;  %s2336_s11 = sphi %s2379_s11, %s3164_s11   ;;  %s2332_s10 = sphi %s2377_s10, %s3163_s10   ;;  %s2328_s9 = sphi %s2375_s9, %s3162_s9  }
   0x5   : > { %s27_s17 = sadd.s32 1, %s2344_s13  ;;  %s85_s18 = sadd.s32 1, %s2336_s11 }
   0x6   : > { %p29_p0 = scmp.ge.s32.totalorder %s27_s17, 2  ;;  %p95_p1 = scmp.ne.s32.totalorder %s2336_s11, %s2332_s10 }
   0x7   : > { %p96_p2 = scmp.eq.s32.totalorder %s2064_s15, 1  ;;  %p101_p3 = scmp.ne.s32.totalorder %s2332_s10, %s2328_s9 }
   0x8   : > { %s3168_s17 = smov (%p29_p0, %s27_s17), 0  ;;  %p102_p5 = scmp.eq.s32.totalorder %s2065_s16, 1 }
   0x9   : > { %p2415_p4 = por %p96_p2, %p95_p1  ;;  %s80_s20 = ssub.s32 %s2344_s13, %s3168_s17 }
   0xa   : > { %p2068_p6 = scmp.ge.s32.totalorder %s2348_s14, 1  ;;  %p83_p7 = scmp.eq.s32.totalorder %s80_s20, 0 }
   0xb   : > { %p2422_p8 = por %p102_p5, %p101_p3  ;;  %p136_p9 = scmp.lt.s32.totalorder %s2348_s14, 3 }
   0xc   : > { %s2428_s22 = scalar_select %p83_p7, %s2336_s11, %s85_s18  }
   0xd   : > { %p137_p10 = pnand %p2068_p6, %p136_p9 }
   0xe   : > { %p163_p11 = scmp.lt.s32.totalorder (!%p137_p10), %s2340_s12, 1  ;;  %s159_s8 = sand.u32 (!%p137_p10), 1, %s2332_s10  }
   0xf   : > { %140 = sbr.rel (%p137_p10) target bundleno = 547 (0x223), region = 28  ;;  %s2069_s15 = sshll.u32 (!%p137_p10), %s159_s8, 4 }
  0x10   : > { %s2090_s16 = sshll.u32 (!%p137_p10), %s2340_s12, 8  ;;  %s1972_s26 = scalar_lea.sflag (!%p137_p10), [#allocation3], %s159_s8 }
  0x14   : > { %v175_v0 = vld [vmem:[%s3158_s1] sm:$0xff]  ;;  %v2350_v1 = vmov 1   ;;  %v2351_v2 = vmov 0   ;;  %v2352_v3 = vmov 2   ;;  %v2353_v4 = vmov 8   ;;  %v2072_v9 = vld [vmem:[%s3158_s1 + $0x8] sm:$0xff] }
  0x15   : > { %2157 = vset.pattern.permute.xlu1 %v2350_v1  ;;  %2155 = vset.pattern.permute.xlu0 %v2351_v2  ;;  %v2354_v5 = vmov 3   ;;  %v2355_v6 = vmov 4   ;;  %v2356_v7 = vmov 5   ;;  %v2357_v8 = vmov 7   ;;  %v2073_v11 = vld [vmem:[%s3158_s1 + $0x10] sm:$0xff]  ;;  %v2074_v12 = vld [vmem:[%s3158_s1 + $0x48] sm:$0xff] }
  0x16   : > { %198 = vperm.xlu1 %2157, %v175_v0   ;;  %178 = vperm.xlu0 %2155, %v175_v0   ;;  %v2358_v10 = vmov 6   ;;  %v2471_v13 = vld [vmem:[%s3158_s1 + $0x18] sm:$0xff]  ;;  %v2485_v14 = vld [vmem:[%s3158_s1 + $0x20] sm:$0xff]  ;;  %v2499_v15 = vld [vmem:[%s3158_s1 + $0x28] sm:$0xff]  ;;  %s164_s18 = scalar_select %p163_p11, %s2340_s12, 1  ;;  %v181_v17 = vlaneseq }
  0x17   : > { %v2514_v16 = vld [vmem:[%s3158_s1 + $0x50] sm:$0xff]  ;;  %s2359_s12 = smov [#allocation2]  }
  0x18   : > { %s2089_s20 = sshll.u32 %s164_s18, 4  ;;  %v182_v18 = vshrl.u32 %v181_v17, 7  ;;  %v2548_v28 = vld [vmem:[%s3158_s1 + $0x30] sm:$0xff]  ;;  %v2597_v17 = vld [vmem:[%s3158_s1 + $0x38] sm:$0xff]  ;;  %s161_s18 = scalar_lea.vmem [#allocation2], %s2069_s15 }
  0x19   : > { %s170_s25 = scalar_lea.vmem %s3157_s0, %s2089_s20  ;;  %s1988_s20 = sshll.u32 %s161_s18, 4  ;;  %s1989_s20 = int_to_ptr.vmem [resolvable:$true] %s1988_s20 }
  0x1a   : > { %2158 = vset.pattern.permute.xlu1 %v2352_v3  ;;  %2156 = vset.pattern.permute.xlu0 %v2353_v4  ;;  %v2527_v19 = vsub.s32 0, %v182_v18  ;;  %v2532_v20 = vsub.s32 1, %v182_v18  ;;  %v2534_v21 = vld [vmem:[%s170_s25] sm:$0xff]  ;;  %v2536_v22 = vld [vmem:[%s170_s25 + $0x8] sm:$0xff]  ;;  %v2543_v27 = vsub.s32 2, %v182_v18  ;;  %v2557_v33 = vsub.s32 3, %v182_v18  ;;  %s3115_s25 = scalar_lea.hbm %s3159_s2, %s2090_s16 }
  0x1b   : > { %214 = vperm.xlu1 %2158, %v175_v0   ;;  %192 = vperm.xlu0 %2156, %v175_v0   ;;  %v2559_v34 = vsub.s32 4, %v182_v18  ;;  %v2574_v46 = vsub.s32 5, %v182_v18  ;;  %v2581_v58 = vsub.s32 6, %v182_v18  ;;  %v2586_v61 = vsub.s32 7, %v182_v18  ;;  %s2272_s27 = scalar_lea.vmem %s1989_s20, 256  ;;  %s2276_s28 = sshll.u32 %s2359_s12, 4  ;;  %s2277_s28 = int_to_ptr.vmem [resolvable:$false] %s2276_s28 }
  0x1c   : > { %v184_v23 = vrot.slane %v2534_v21, %v2527_v19  ;;  %v188_v24 = vrot.slane %v2536_v22, %v2527_v19  ;;  %v204_v29 = vrot.slane %v2534_v21, %v2532_v20  ;;  %v208_v30 = vrot.slane %v2536_v22, %v2532_v20  ;;  %p2273_p12 = scmp.ne.s32.totalorder %s1989_s20, %s2272_s27  ;;  %s2278_s29 = scalar_lea.vmem %s2277_s28, 512 }
  0x1d   : > { %v220_v35 = vrot.slane %v2534_v21, %v2543_v27  ;;  %v224_v36 = vrot.slane %v2536_v22, %v2543_v27  ;;  %v236_v43 = vrot.slane %v2534_v21, %v2557_v33  ;;  %v240_v44 = vrot.slane %v2536_v22, %v2557_v33  ;;  %p2279_p1 = scmp.lt.s32.totalorder %s1989_s20, %s2277_s28  ;;  %p2280_p2 = scmp.lt.s32.totalorder %s2278_s29, %s2272_s27 }
  0x1e   : > { %v252_v45 = vrot.slane %v2534_v21, %v2559_v34  ;;  %v256_v51 = vrot.slane %v2536_v22, %v2559_v34  ;;  %v268_v60 = vrot.slane %v2534_v21, %v2574_v46  ;;  %p2274_p13 = pnand %p2273_p12, %p2415_p4 }
  0x1f   : > { %2159 = vset.pattern.permute.xlu1 %v2354_v5  ;;  %2160 = vset.pattern.permute.xlu0 %v2355_v6  ;;  %p2281_p3 = por %p2280_p2, %p2279_p1 }
  0x20   : > { %230 = vperm.xlu1 %2159, %v175_v0   ;;  %246 = vperm.xlu0 %2160, %v175_v0   ;;  %p2275_p0 = pneg %p2274_p13 }
  0x22   : > { %p2282_p5 = pnand %p2281_p3, %p2275_p0 }
  0x24   : > { %2161 = vset.pattern.permute.xlu1 %v2356_v7  ;;  %2163 = vset.pattern.permute.xlu0 %v2357_v8 }
  0x25   : > { %262 = vperm.xlu1 %2161, %v175_v0   ;;  %294 = vperm.xlu0 %2163, %v175_v0  }
  0x29   : > { %2162 = vset.pattern.permute.xlu1 %v2358_v10  ;;  %2166 = vset.pattern.permute.xlu0 %v2350_v1 }
  0x2a   : > { %278 = vperm.xlu1 %2162, %v175_v0   ;;  %335 = vperm.xlu0 %2166, %v2072_v9  }
  0x2e   : > { %2164 = vset.pattern.permute.xlu1 %v2351_v2  ;;  %2169 = vset.pattern.permute.xlu0 %v2355_v6 }
  0x2f   : > { %315 = vperm.xlu1 %2164, %v2072_v9   ;;  %383 = vperm.xlu0 %2169, %v2072_v9  }
  0x33   : > { %2165 = vset.pattern.permute.xlu1 %v2353_v4  ;;  %2172 = vset.pattern.permute.xlu0 %v2357_v8 }
  0x34   : > { %329 = vperm.xlu1 %2165, %v2072_v9   ;;  %431 = vperm.xlu0 %2172, %v2072_v9  }
  0x38   : > { %2167 = vset.pattern.permute.xlu1 %v2352_v3  ;;  %2175 = vset.pattern.permute.xlu0 %v2350_v1 }
  0x39   : > { %351 = vperm.xlu1 %2167, %v2072_v9   ;;  %472 = vperm.xlu0 %2175, %v2073_v11  }
  0x3d   : > { %2168 = vset.pattern.permute.xlu1 %v2354_v5  ;;  %2178 = vset.pattern.permute.xlu0 %v2355_v6 }
  0x3e   : > { %367 = vperm.xlu1 %2168, %v2072_v9   ;;  %520 = vperm.xlu0 %2178, %v2073_v11  }
  0x42   : > { %2170 = vset.pattern.permute.xlu1 %v2356_v7  ;;  %2181 = vset.pattern.permute.xlu0 %v2357_v8 }
  0x43   : > { %399 = vperm.xlu1 %2170, %v2072_v9   ;;  %568 = vperm.xlu0 %2181, %v2073_v11  }
  0x47   : > { %2171 = vset.pattern.permute.xlu1 %v2358_v10  ;;  %2184 = vset.pattern.permute.xlu0 %v2350_v1 }
  0x48   : > { %415 = vperm.xlu1 %2171, %v2072_v9   ;;  %613 = vperm.xlu0 %2184, %v2074_v12   ;;  %v272_v9 = vrot.slane %v2536_v22, %v2574_v46 }
  0x4c   : > { %2173 = vset.pattern.permute.xlu1 %v2351_v2  ;;  %2187 = vset.pattern.permute.xlu0 %v2355_v6 }
  0x4d   : > { %452 = vperm.xlu1 %2173, %v2073_v11   ;;  %661 = vperm.xlu0 %2187, %v2074_v12  }
  0x51   : > { %2174 = vset.pattern.permute.xlu1 %v2353_v4  ;;  %2190 = vset.pattern.permute.xlu0 %v2357_v8 }
  0x52   : > { %466 = vperm.xlu1 %2174, %v2073_v11   ;;  %709 = vperm.xlu0 %2190, %v2074_v12  }
  0x56   : > { %2176 = vset.pattern.permute.xlu1 %v2352_v3  ;;  %2193 = vset.pattern.permute.xlu0 %v2350_v1 }
  0x57   : > { %488 = vperm.xlu1 %2176, %v2073_v11   ;;  %750 = vperm.xlu0 %2193, %v2471_v13  }
  0x5b   : > { %2177 = vset.pattern.permute.xlu1 %v2354_v5  ;;  %2196 = vset.pattern.permute.xlu0 %v2355_v6 }
  0x5c   : > { %504 = vperm.xlu1 %2177, %v2073_v11   ;;  %798 = vperm.xlu0 %2196, %v2471_v13  }
  0x60   : > { %2179 = vset.pattern.permute.xlu1 %v2356_v7  ;;  %2199 = vset.pattern.permute.xlu0 %v2357_v8 }
  0x61   : > { %536 = vperm.xlu1 %2179, %v2073_v11   ;;  %846 = vperm.xlu0 %2199, %v2471_v13  }
  0x65   : > { %2180 = vset.pattern.permute.xlu1 %v2358_v10  ;;  %2202 = vset.pattern.permute.xlu0 %v2350_v1 }
  0x66   : > { %552 = vperm.xlu1 %2180, %v2073_v11   ;;  %887 = vperm.xlu0 %2202, %v2485_v14  }
  0x6a   : > { %2182 = vset.pattern.permute.xlu1 %v2351_v2  ;;  %2205 = vset.pattern.permute.xlu0 %v2355_v6 }
  0x6b   : > { %593 = vperm.xlu1 %2182, %v2074_v12   ;;  %935 = vperm.xlu0 %2205, %v2485_v14  }
  0x6f   : > { %2183 = vset.pattern.permute.xlu1 %v2353_v4  ;;  %2208 = vset.pattern.permute.xlu0 %v2357_v8 }
  0x70   : > { %607 = vperm.xlu1 %2183, %v2074_v12   ;;  %983 = vperm.xlu0 %2208, %v2485_v14  }
  0x74   : > { %2185 = vset.pattern.permute.xlu1 %v2352_v3  ;;  %2211 = vset.pattern.permute.xlu0 %v2350_v1 }
  0x75   : > { %629 = vperm.xlu1 %2185, %v2074_v12   ;;  %1024 = vperm.xlu0 %2211, %v2499_v15  }
  0x79   : > { %2186 = vset.pattern.permute.xlu1 %v2354_v5  ;;  %2214 = vset.pattern.permute.xlu0 %v2355_v6 }
  0x7a   : > { %645 = vperm.xlu1 %2186, %v2074_v12   ;;  %1072 = vperm.xlu0 %2214, %v2499_v15  }
  0x7e   : > { %2188 = vset.pattern.permute.xlu1 %v2356_v7  ;;  %2217 = vset.pattern.permute.xlu0 %v2357_v8 }
  0x7f   : > { %677 = vperm.xlu1 %2188, %v2074_v12   ;;  %1120 = vperm.xlu0 %2217, %v2499_v15  }
  0x83   : > { %2189 = vset.pattern.permute.xlu1 %v2358_v10  ;;  %2220 = vset.pattern.permute.xlu0 %v2350_v1 }
  0x84   : > { %693 = vperm.xlu1 %2189, %v2074_v12   ;;  %1165 = vperm.xlu0 %2220, %v2514_v16   ;;  %v284_v12 = vrot.slane %v2534_v21, %v2581_v58 }
  0x88   : > { %2191 = vset.pattern.permute.xlu1 %v2351_v2  ;;  %2223 = vset.pattern.permute.xlu0 %v2355_v6 }
  0x89   : > { %730 = vperm.xlu1 %2191, %v2471_v13   ;;  %1213 = vperm.xlu0 %2223, %v2514_v16  }
  0x8d   : > { %2192 = vset.pattern.permute.xlu1 %v2353_v4  ;;  %2226 = vset.pattern.permute.xlu0 %v2357_v8 }
  0x8e   : > { %744 = vperm.xlu1 %2192, %v2471_v13   ;;  %1261 = vperm.xlu0 %2226, %v2514_v16  }
  0x91   : > { %v199_v25 = vpop.permute.xlu1 %198  ;;  %v179_v26 = vpop.permute.xlu0 %178 }
  0x92   : > { %2194 = vset.pattern.permute.xlu1 %v2352_v3  ;;  %v189_v31 = vmul.f32 %v184_v23, %v179_v26  ;;  %v190_v32 = vmul.f32 %v188_v24, %v179_v26  ;;  %2229 = vset.pattern.permute.xlu0 %v2350_v1  ;;  %v209_v39 = vmul.f32 %v204_v29, %v199_v25 }
  0x93   : > { %766 = vperm.xlu1 %2194, %v2471_v13   ;;  %1302 = vperm.xlu0 %2229, %v2548_v28   ;;  %v210_v40 = vmul.f32 %v208_v30, %v199_v25  ;;  %v300_v23 = vrot.slane %v2534_v21, %v2586_v61  ;;  %v304_v24 = vrot.slane %v2536_v22, %v2586_v61 }
  0x94   : > { %v288_v25 = vrot.slane %v2536_v22, %v2581_v58 }
  0x96   : > { %v215_v37 = vpop.permute.xlu1 %214  ;;  %v193_v38 = vpop.permute.xlu0 %192 }
  0x97   : > { %v195_v41 = vadd.f32 %v193_v38, %v189_v31  ;;  %v196_v42 = vadd.f32 %v193_v38, %v190_v32  ;;  %2195 = vset.pattern.permute.xlu1 %v2354_v5  ;;  %2232 = vset.pattern.permute.xlu0 %v2355_v6  ;;  %v225_v47 = vmul.f32 %v220_v35, %v215_v37 }
  0x98   : > { %782 = vperm.xlu1 %2195, %v2471_v13   ;;  %v226_v48 = vmul.f32 %v224_v36, %v215_v37  ;;  %1350 = vperm.xlu0 %2232, %v2548_v28  }
  0x99   : > { %v211_v49 = vadd.f32 %v209_v39, %v195_v41  ;;  %v212_v50 = vadd.f32 %v210_v40, %v196_v42 }
  0x9b   : > { %v227_v52 = vadd.f32 %v225_v47, %v211_v49  ;;  %v228_v53 = vadd.f32 %v226_v48, %v212_v50  ;;  %v231_v54 = vpop.permute.xlu1 %230  ;;  %v247_v55 = vpop.permute.xlu0 %246 }
  0x9c   : > { %v241_v56 = vmul.f32 %v236_v43, %v231_v54  ;;  %v242_v57 = vmul.f32 %v240_v44, %v231_v54  ;;  %2197 = vset.pattern.permute.xlu1 %v2356_v7  ;;  %v257_v59 = vmul.f32 %v252_v45, %v247_v55  ;;  %2235 = vset.pattern.permute.xlu0 %v2357_v8 }
  0x9d   : > { %814 = vperm.xlu1 %2197, %v2471_v13   ;;  %v258_v0 = vmul.f32 %v256_v51, %v247_v55  ;;  %1398 = vperm.xlu0 %2235, %v2548_v28  }
  0x9e   : > { %v243_v62 = vadd.f32 %v241_v56, %v227_v52  ;;  %v244_v63 = vadd.f32 %v242_v57, %v228_v53 }
  0xa0   : > { %v263_v11 = vpop.permute.xlu1 %262  ;;  %v259_v18 = vadd.f32 %v257_v59, %v243_v62  ;;  %v260_v26 = vadd.f32 %v258_v0, %v244_v63  ;;  %v295_v31 = vpop.permute.xlu0 %294 }
  0xa1   : > { %2198 = vset.pattern.permute.xlu1 %v2358_v10  ;;  %v273_v29 = vmul.f32 %v268_v60, %v263_v11  ;;  %v274_v30 = vmul.f32 %v272_v9, %v263_v11  ;;  %2238 = vset.pattern.permute.xlu0 %v2350_v1  ;;  %v305_v32 = vmul.f32 %v300_v23, %v295_v31 }
  0xa2   : > { %830 = vperm.xlu1 %2198, %v2471_v13   ;;  %1439 = vperm.xlu0 %2238, %v2597_v17   ;;  %v306_v35 = vmul.f32 %v304_v24, %v295_v31  ;;  %v2649_v31 = vld [vmem:[%s3158_s1 + $0x40] sm:$0xff] }
  0xa3   : > { %v275_v37 = vadd.f32 %v273_v29, %v259_v18  ;;  %v276_v38 = vadd.f32 %v274_v30, %v260_v26 }
  0xa5   : > { %v279_v36 = vpop.permute.xlu1 %278  ;;  %v336_v55 = vpop.permute.xlu0 %335 }
  0xa6   : > { %v289_v39 = vmul.f32 %v284_v12, %v279_v36  ;;  %v290_v40 = vmul.f32 %v288_v25, %v279_v36  ;;  %2200 = vset.pattern.permute.xlu1 %v2351_v2  ;;  %2241 = vset.pattern.permute.xlu0 %v2355_v6 }
  0xa7   : > { %867 = vperm.xlu1 %2200, %v2485_v14   ;;  %1487 = vperm.xlu0 %2241, %v2597_v17  }
  0xa8   : > { %v291_v41 = vadd.f32 %v289_v39, %v275_v37  ;;  %v292_v13 = vadd.f32 %v290_v40, %v276_v38 }
  0xaa   : > { %v307_v42 = vadd.f32 %v305_v32, %v291_v41  ;;  %v308_v43 = vadd.f32 %v306_v35, %v292_v13  ;;  %v316_v44 = vpop.permute.xlu1 %315  ;;  %v384_v37 = vpop.permute.xlu0 %383 }
  0xab   : > { %2201 = vset.pattern.permute.xlu1 %v2353_v4  ;;  %2244 = vset.pattern.permute.xlu0 %v2357_v8 }
  0xac   : > { %v2614_v45 = vmax.f32 %v307_v42, 0.0  ;;  %v2616_v47 = vmax.f32 %v308_v43, 0.0  ;;  %881 = vperm.xlu1 %2201, %v2485_v14   ;;  %1535 = vperm.xlu0 %2244, %v2597_v17  }
  0xae   : > { %v321_v48 = vrot.slane %v2614_v45, %v2527_v19  ;;  %v325_v49 = vrot.slane %v2616_v47, %v2527_v19  ;;  %v341_v50 = vrot.slane %v2614_v45, %v2532_v20  ;;  %v345_v52 = vrot.slane %v2616_v47, %v2532_v20 }
  0xaf   : > { %v330_v51 = vpop.permute.xlu1 %329  ;;  %v357_v60 = vrot.slane %v2614_v45, %v2543_v27  ;;  %v361_v0 = vrot.slane %v2616_v47, %v2543_v27  ;;  %v373_v23 = vrot.slane %v2614_v45, %v2557_v33  ;;  %v377_v24 = vrot.slane %v2616_v47, %v2557_v33 }
  0xb0   : > { %v326_v53 = vmul.f32 %v321_v48, %v316_v44  ;;  %v327_v54 = vmul.f32 %v325_v49, %v316_v44  ;;  %2203 = vset.pattern.permute.xlu1 %v2352_v3  ;;  %2247 = vset.pattern.permute.xlu0 %v2350_v1  ;;  %v346_v59 = vmul.f32 %v341_v50, %v336_v55 }
  0xb1   : > { %903 = vperm.xlu1 %2203, %v2485_v14   ;;  %v347_v62 = vmul.f32 %v345_v52, %v336_v55  ;;  %v389_v25 = vrot.slane %v2614_v45, %v2559_v34  ;;  %v393_v26 = vrot.slane %v2616_v47, %v2559_v34  ;;  %1576 = vperm.xlu0 %2247, %v2649_v31   ;;  %v432_v55 = vpop.permute.xlu0 %431 }
  0xb2   : > { %v332_v56 = vadd.f32 %v330_v51, %v326_v53  ;;  %v333_v57 = vadd.f32 %v330_v51, %v327_v54  ;;  %v405_v41 = vrot.slane %v2614_v45, %v2574_v46  ;;  %v409_v43 = vrot.slane %v2616_v47, %v2574_v46 }
  0xb3   : > { %v394_v40 = vmul.f32 %v389_v25, %v384_v37  ;;  %v395_v13 = vmul.f32 %v393_v26, %v384_v37  ;;  %v437_v51 = vrot.slane %v2614_v45, %v2586_v61  ;;  %v441_v52 = vrot.slane %v2616_v47, %v2586_v61 }
  0xb4   : > { %v352_v63 = vpop.permute.xlu1 %351  ;;  %v348_v9 = vadd.f32 %v346_v59, %v332_v56  ;;  %v349_v12 = vadd.f32 %v347_v62, %v333_v57  ;;  %v421_v53 = vrot.slane %v2614_v45, %v2581_v58  ;;  %v425_v54 = vrot.slane %v2616_v47, %v2581_v58 }
  0xb5   : > { %v362_v11 = vmul.f32 %v357_v60, %v352_v63  ;;  %2204 = vset.pattern.permute.xlu1 %v2354_v5  ;;  %v363_v18 = vmul.f32 %v361_v0, %v352_v63  ;;  %2250 = vset.pattern.permute.xlu0 %v2355_v6  ;;  %v442_v62 = vmul.f32 %v437_v51, %v432_v55 }
  0xb6   : > { %919 = vperm.xlu1 %2204, %v2485_v14   ;;  %1624 = vperm.xlu0 %2250, %v2649_v31   ;;  %v443_v63 = vmul.f32 %v441_v52, %v432_v55  ;;  %v2708_v55 = vld [vmem:[%s3158_s1 + $0x58] sm:$0xff] }
  0xb7   : > { %v364_v29 = vadd.f32 %v362_v11, %v348_v9  ;;  %v365_v32 = vadd.f32 %v363_v18, %v349_v12 }
  0xb9   : > { %v368_v30 = vpop.permute.xlu1 %367 }
  0xba   : > { %v378_v35 = vmul.f32 %v373_v23, %v368_v30  ;;  %v379_v36 = vmul.f32 %v377_v24, %v368_v30  ;;  %2206 = vset.pattern.permute.xlu1 %v2356_v7  ;;  %2253 = vset.pattern.permute.xlu0 %v2357_v8 }
  0xbb   : > { %951 = vperm.xlu1 %2206, %v2485_v14   ;;  %1672 = vperm.xlu0 %2253, %v2649_v31  }
  0xbc   : > { %v380_v38 = vadd.f32 %v378_v35, %v364_v29  ;;  %v381_v39 = vadd.f32 %v379_v36, %v365_v32  ;;  %v473_v35 = vpop.permute.xlu0 %472 }
  0xbe   : > { %v400_v42 = vpop.permute.xlu1 %399  ;;  %v396_v44 = vadd.f32 %v394_v40, %v380_v38  ;;  %v397_v49 = vadd.f32 %v395_v13, %v381_v39 }
  0xbf   : > { %v410_v48 = vmul.f32 %v405_v41, %v400_v42  ;;  %2207 = vset.pattern.permute.xlu1 %v2358_v10  ;;  %v411_v50 = vmul.f32 %v409_v43, %v400_v42  ;;  %2256 = vset.pattern.permute.xlu0 %v2350_v1 }
  0xc0   : > { %967 = vperm.xlu1 %2207, %v2485_v14   ;;  %1717 = vperm.xlu0 %2256, %v2708_v55  }
  0xc1   : > { %v412_v56 = vadd.f32 %v410_v48, %v396_v44  ;;  %v413_v59 = vadd.f32 %v411_v50, %v397_v49 }
  0xc3   : > { %v416_v57 = vpop.permute.xlu1 %415 }
  0xc4   : > { %v426_v60 = vmul.f32 %v421_v53, %v416_v57  ;;  %v427_v14 = vmul.f32 %v425_v54, %v416_v57  ;;  %2209 = vset.pattern.permute.xlu1 %v2351_v2  ;;  %2259 = vset.pattern.permute.xlu0 %v2355_v6 }
  0xc5   : > { %1004 = vperm.xlu1 %2209, %v2499_v15   ;;  %1765 = vperm.xlu0 %2259, %v2708_v55  }
  0xc6   : > { %v428_v45 = vadd.f32 %v426_v60, %v412_v56  ;;  %v429_v0 = vadd.f32 %v427_v14, %v413_v59  ;;  %v521_v60 = vpop.permute.xlu0 %520 }
  0xc8   : > { %v444_v9 = vadd.f32 %v442_v62, %v428_v45  ;;  %v445_v47 = vadd.f32 %v443_v63, %v429_v0  ;;  %v453_v11 = vpop.permute.xlu1 %452 }
  0xc9   : > { %2210 = vset.pattern.permute.xlu1 %v2353_v4  ;;  %2262 = vset.pattern.permute.xlu0 %v2357_v8 }
  0xca   : > { %v2676_v12 = vmax.f32 %v444_v9, 0.0  ;;  %v2678_v18 = vmax.f32 %v445_v47, 0.0  ;;  %1018 = vperm.xlu1 %2210, %v2499_v15   ;;  %1813 = vperm.xlu0 %2262, %v2708_v55  }
  0xcc   : > { %v458_v23 = vrot.slane %v2676_v12, %v2527_v19  ;;  %v462_v24 = vrot.slane %v2678_v18, %v2527_v19  ;;  %v478_v25 = vrot.slane %v2676_v12, %v2532_v20  ;;  %v482_v29 = vrot.slane %v2678_v18, %v2532_v20 }
  0xcd   : > { %v467_v26 = vpop.permute.xlu1 %466  ;;  %v494_v39 = vrot.slane %v2676_v12, %v2543_v27  ;;  %v498_v13 = vrot.slane %v2678_v18, %v2543_v27  ;;  %v510_v49 = vrot.slane %v2676_v12, %v2557_v33  ;;  %v514_v50 = vrot.slane %v2678_v18, %v2557_v33 }
  0xce   : > { %v463_v30 = vmul.f32 %v458_v23, %v453_v11  ;;  %v464_v32 = vmul.f32 %v462_v24, %v453_v11  ;;  %2212 = vset.pattern.permute.xlu1 %v2352_v3  ;;  %v483_v38 = vmul.f32 %v478_v25, %v473_v35  ;;  %v484_v40 = vmul.f32 %v482_v29, %v473_v35  ;;  %v569_v35 = vpop.permute.xlu0 %568 }
  0xcf   : > { %1040 = vperm.xlu1 %2212, %v2499_v15   ;;  %v526_v51 = vrot.slane %v2676_v12, %v2559_v34  ;;  %v530_v52 = vrot.slane %v2678_v18, %v2559_v34  ;;  %v542_v45 = vrot.slane %v2676_v12, %v2574_v46  ;;  %v546_v47 = vrot.slane %v2678_v18, %v2574_v46 }
  0xd0   : > { %v469_v36 = vadd.f32 %v467_v26, %v463_v30  ;;  %v470_v37 = vadd.f32 %v467_v26, %v464_v32  ;;  %v574_v26 = vrot.slane %v2676_v12, %v2586_v61  ;;  %v578_v29 = vrot.slane %v2678_v18, %v2586_v61  ;;  %2265 = vset.pattern.permute.xlu0 %v2350_v1 }
  0xd1   : > { %v531_v63 = vmul.f32 %v526_v51, %v521_v60  ;;  %v532_v0 = vmul.f32 %v530_v52, %v521_v60  ;;  %v558_v30 = vrot.slane %v2676_v12, %v2581_v58  ;;  %v562_v32 = vrot.slane %v2678_v18, %v2581_v58 }
  0xd2   : > { %v489_v41 = vpop.permute.xlu1 %488  ;;  %v485_v42 = vadd.f32 %v483_v38, %v469_v36  ;;  %v486_v44 = vadd.f32 %v484_v40, %v470_v37  ;;  %v579_v40 = vmul.f32 %v574_v26, %v569_v35 }
  0xd3   : > { %v499_v43 = vmul.f32 %v494_v39, %v489_v41  ;;  %2213 = vset.pattern.permute.xlu1 %v2354_v5  ;;  %v500_v48 = vmul.f32 %v498_v13, %v489_v41  ;;  %v580_v41 = vmul.f32 %v578_v29, %v569_v35 }
  0xd4   : > { %1056 = vperm.xlu1 %2213, %v2499_v15  }
  0xd5   : > { %v501_v53 = vadd.f32 %v499_v43, %v485_v42  ;;  %v502_v56 = vadd.f32 %v500_v48, %v486_v44  ;;  %v2734_v43 = vmul.f32 2.0, %v2534_v21  ;;  %v2737_v44 = vmul.f32 2.0, %v2536_v22 }
  0xd7   : > { %v505_v54 = vpop.permute.xlu1 %504 }
  0xd8   : > { %v515_v57 = vmul.f32 %v510_v49, %v505_v54  ;;  %v516_v59 = vmul.f32 %v514_v50, %v505_v54  ;;  %2215 = vset.pattern.permute.xlu1 %v2356_v7 }
  0xd9   : > { %1088 = vperm.xlu1 %2215, %v2499_v15  }
  0xda   : > { %v517_v14 = vadd.f32 %v515_v57, %v501_v53  ;;  %v518_v62 = vadd.f32 %v516_v59, %v502_v56  ;;  %v614_v56 = vpop.permute.xlu0 %613 }
  0xdc   : > { %v537_v9 = vpop.permute.xlu1 %536  ;;  %v533_v11 = vadd.f32 %v531_v63, %v517_v14  ;;  %v534_v24 = vadd.f32 %v532_v0, %v518_v62 }
  0xdd   : > { %v547_v23 = vmul.f32 %v542_v45, %v537_v9  ;;  %2216 = vset.pattern.permute.xlu1 %v2358_v10  ;;  %v548_v25 = vmul.f32 %v546_v47, %v537_v9 }
  0xde   : > { %1104 = vperm.xlu1 %2216, %v2499_v15  }
  0xdf   : > { %v549_v36 = vadd.f32 %v547_v23, %v533_v11  ;;  %v550_v38 = vadd.f32 %v548_v25, %v534_v24 }
  0xe1   : > { %v553_v37 = vpop.permute.xlu1 %552 }
  0xe2   : > { %v563_v39 = vmul.f32 %v558_v30, %v553_v37  ;;  %v564_v15 = vmul.f32 %v562_v32, %v553_v37  ;;  %2218 = vset.pattern.permute.xlu1 %v2351_v2 }
  0xe3   : > { %1145 = vperm.xlu1 %2218, %v2514_v16  }
  0xe4   : > { %v565_v12 = vadd.f32 %v563_v39, %v549_v36  ;;  %v566_v13 = vadd.f32 %v564_v15, %v550_v38  ;;  %v2775_v36 = vld [vmem:[%s3158_s1 + $0x60] sm:$0xff]  ;;  %v662_v15 = vpop.permute.xlu0 %661 }
  0xe5   : > { %1856 = vperm.xlu0 %2265, %v2775_v36  }
  0xe6   : > { %v581_v42 = vadd.f32 %v579_v40, %v565_v12  ;;  %v582_v18 = vadd.f32 %v580_v41, %v566_v13  ;;  %v594_v48 = vpop.permute.xlu1 %593 }
  0xe7   : > { %2219 = vset.pattern.permute.xlu1 %v2353_v4 }
  0xe8   : > { %v583_v49 = vmax.f32 %v581_v42, 0.0  ;;  %v584_v50 = vmax.f32 %v582_v18, 0.0  ;;  %1159 = vperm.xlu1 %2219, %v2514_v16  }
  0xe9   : > { %2268 = vset.pattern.permute.xlu0 %v2355_v6 }
  0xea   : > { %v2743_v51 = vadd.f32 %v2734_v43, %v583_v49  ;;  %v2746_v52 = vadd.f32 %v2737_v44, %v584_v50  ;;  %1904 = vperm.xlu0 %2268, %v2775_v36  }
  0xeb   : > { %v608_v21 = vpop.permute.xlu1 %607 }
  0xec   : > { %v619_v22 = vrot.slane %v2743_v51, %v2532_v20  ;;  %v623_v53 = vrot.slane %v2746_v52, %v2532_v20  ;;  %v599_v1 = vrot.slane %v2743_v51, %v2527_v19  ;;  %v603_v54 = vrot.slane %v2746_v52, %v2527_v19  ;;  %2221 = vset.pattern.permute.xlu1 %v2352_v3 }
  0xed   : > { %1181 = vperm.xlu1 %2221, %v2514_v16   ;;  %v635_v0 = vrot.slane %v2743_v51, %v2543_v27  ;;  %v639_v9 = vrot.slane %v2746_v52, %v2543_v27  ;;  %v651_v25 = vrot.slane %v2743_v51, %v2557_v33  ;;  %v655_v26 = vrot.slane %v2746_v52, %v2557_v33 }
  0xee   : > { %v604_v57 = vmul.f32 %v599_v1, %v594_v48  ;;  %v605_v59 = vmul.f32 %v603_v54, %v594_v48  ;;  %v624_v60 = vmul.f32 %v619_v22, %v614_v56  ;;  %v625_v14 = vmul.f32 %v623_v53, %v614_v56  ;;  %v710_v56 = vpop.permute.xlu0 %709  ;;  %2271 = vset.pattern.permute.xlu0 %v2357_v8 }
  0xef   : > { %v667_v29 = vrot.slane %v2743_v51, %v2559_v34  ;;  %v671_v30 = vrot.slane %v2746_v52, %v2559_v34  ;;  %v683_v13 = vrot.slane %v2743_v51, %v2574_v46  ;;  %v687_v48 = vrot.slane %v2746_v52, %v2574_v46  ;;  %1952 = vperm.xlu0 %2271, %v2775_v36  }
  0xf0   : > { %v610_v62 = vadd.f32 %v608_v21, %v604_v57  ;;  %v611_v63 = vadd.f32 %v608_v21, %v605_v59  ;;  %v630_v45 = vpop.permute.xlu1 %629  ;;  %v715_v53 = vrot.slane %v2743_v51, %v2586_v61  ;;  %v719_v1 = vrot.slane %v2746_v52, %v2586_v61 }
  0xf1   : > { %2222 = vset.pattern.permute.xlu1 %v2354_v5  ;;  %v640_v23 = vmul.f32 %v635_v0, %v630_v45  ;;  %v641_v24 = vmul.f32 %v639_v9, %v630_v45  ;;  %v672_v12 = vmul.f32 %v667_v29, %v662_v15  ;;  %v673_v42 = vmul.f32 %v671_v30, %v662_v15 }
  0xf2   : > { %v626_v47 = vadd.f32 %v624_v60, %v610_v62  ;;  %v627_v11 = vadd.f32 %v625_v14, %v611_v63  ;;  %1197 = vperm.xlu1 %2222, %v2514_v16   ;;  %v699_v54 = vrot.slane %v2743_v51, %v2581_v58  ;;  %v703_v6 = vrot.slane %v2746_v52, %v2581_v58 }
  0xf3   : > { %v720_v62 = vmul.f32 %v715_v53, %v710_v56  ;;  %v721_v63 = vmul.f32 %v719_v1, %v710_v56 }
  0xf4   : > { %v642_v32 = vadd.f32 %v640_v23, %v626_v47  ;;  %v643_v37 = vadd.f32 %v641_v24, %v627_v11 }
  0xf5   : > { %v646_v35 = vpop.permute.xlu1 %645 }
  0xf6   : > { %v656_v38 = vmul.f32 %v651_v25, %v646_v35  ;;  %v657_v39 = vmul.f32 %v655_v26, %v646_v35  ;;  %2224 = vset.pattern.permute.xlu1 %v2356_v7 }
  0xf7   : > { %1229 = vperm.xlu1 %2224, %v2514_v16  }
  0xf8   : > { %v658_v40 = vadd.f32 %v656_v38, %v642_v32  ;;  %v659_v41 = vadd.f32 %v657_v39, %v643_v37  ;;  %v751_v32 = vpop.permute.xlu0 %750 }
  0xfa   : > { %v678_v18 = vpop.permute.xlu1 %677  ;;  %v674_v49 = vadd.f32 %v672_v12, %v658_v40  ;;  %v675_v21 = vadd.f32 %v673_v42, %v659_v41 }
  0xfb   : > { %v688_v50 = vmul.f32 %v683_v13, %v678_v18  ;;  %2225 = vset.pattern.permute.xlu1 %v2358_v10  ;;  %v689_v22 = vmul.f32 %v687_v48, %v678_v18 }
  0xfc   : > { %1245 = vperm.xlu1 %2225, %v2514_v16  }
  0xfd   : > { %v690_v57 = vadd.f32 %v688_v50, %v674_v49  ;;  %v691_v60 = vadd.f32 %v689_v22, %v675_v21 }
  0xff   : > { %v694_v59 = vpop.permute.xlu1 %693 }
 0x100   : > { %v704_v14 = vmul.f32 %v699_v54, %v694_v59  ;;  %v705_v16 = vmul.f32 %v703_v6, %v694_v59  ;;  %2227 = vset.pattern.permute.xlu1 %v2351_v2  ;;  %v799_v59 = vpop.permute.xlu0 %798 }
 0x101   : > { %1282 = vperm.xlu1 %2227, %v2548_v28  }
 0x102   : > { %v706_v51 = vadd.f32 %v704_v14, %v690_v57  ;;  %v707_v45 = vadd.f32 %v705_v16, %v691_v60 }
 0x104   : > { %v722_v0 = vadd.f32 %v720_v62, %v706_v51  ;;  %v723_v52 = vadd.f32 %v721_v63, %v707_v45  ;;  %v731_v9 = vpop.permute.xlu1 %730 }
 0x105   : > { %2228 = vset.pattern.permute.xlu1 %v2353_v4 }
 0x106   : > { %v2801_v47 = vmax.f32 %v722_v0, 0.0  ;;  %v2803_v8 = vmax.f32 %v723_v52, 0.0  ;;  %1296 = vperm.xlu1 %2228, %v2548_v28  }
 0x108   : > { %v736_v11 = vrot.slane %v2801_v47, %v2527_v19  ;;  %v740_v23 = vrot.slane %v2803_v8, %v2527_v19  ;;  %v756_v25 = vrot.slane %v2801_v47, %v2532_v20  ;;  %v760_v26 = vrot.slane %v2803_v8, %v2532_v20 }
 0x109   : > { %v745_v24 = vpop.permute.xlu1 %744  ;;  %v772_v40 = vrot.slane %v2801_v47, %v2543_v27  ;;  %v776_v41 = vrot.slane %v2803_v8, %v2543_v27  ;;  %v788_v48 = vrot.slane %v2801_v47, %v2557_v33  ;;  %v792_v49 = vrot.slane %v2803_v8, %v2557_v33 }
 0x10a   : > { %2230 = vset.pattern.permute.xlu1 %v2352_v3  ;;  %v741_v29 = vmul.f32 %v736_v11, %v731_v9  ;;  %v742_v30 = vmul.f32 %v740_v23, %v731_v9  ;;  %v761_v38 = vmul.f32 %v756_v25, %v751_v32  ;;  %v762_v39 = vmul.f32 %v760_v26, %v751_v32  ;;  %v847_v25 = vpop.permute.xlu0 %846 }
 0x10b   : > { %1318 = vperm.xlu1 %2230, %v2548_v28   ;;  %v804_v50 = vrot.slane %v2801_v47, %v2559_v34  ;;  %v808_v21 = vrot.slane %v2803_v8, %v2559_v34  ;;  %v820_v62 = vrot.slane %v2801_v47, %v2574_v46  ;;  %v824_v63 = vrot.slane %v2803_v8, %v2574_v46 }
 0x10c   : > { %v747_v35 = vadd.f32 %v745_v24, %v741_v29  ;;  %v748_v37 = vadd.f32 %v745_v24, %v742_v30  ;;  %v852_v9 = vrot.slane %v2801_v47, %v2586_v61  ;;  %v856_v11 = vrot.slane %v2803_v8, %v2586_v61 }
 0x10d   : > { %v809_v60 = vmul.f32 %v804_v50, %v799_v59  ;;  %v810_v14 = vmul.f32 %v808_v21, %v799_v59  ;;  %v836_v23 = vrot.slane %v2801_v47, %v2581_v58  ;;  %v840_v24 = vrot.slane %v2803_v8, %v2581_v58 }
 0x10e   : > { %v767_v15 = vpop.permute.xlu1 %766  ;;  %v763_v12 = vadd.f32 %v761_v38, %v747_v35  ;;  %v764_v13 = vadd.f32 %v762_v39, %v748_v37  ;;  %v858_v37 = vmul.f32 %v856_v11, %v847_v25 }
 0x10f   : > { %2231 = vset.pattern.permute.xlu1 %v2354_v5  ;;  %v777_v42 = vmul.f32 %v772_v40, %v767_v15  ;;  %v778_v18 = vmul.f32 %v776_v41, %v767_v15 }
 0x110   : > { %1334 = vperm.xlu1 %2231, %v2548_v28  }
 0x111   : > { %v779_v53 = vadd.f32 %v777_v42, %v763_v12  ;;  %v780_v1 = vadd.f32 %v778_v18, %v764_v13 }
 0x113   : > { %v783_v22 = vpop.permute.xlu1 %782 }
 0x114   : > { %v793_v54 = vmul.f32 %v788_v48, %v783_v22  ;;  %v794_v6 = vmul.f32 %v792_v49, %v783_v22  ;;  %2233 = vset.pattern.permute.xlu1 %v2356_v7 }
 0x115   : > { %1366 = vperm.xlu1 %2233, %v2548_v28  }
 0x116   : > { %v795_v56 = vadd.f32 %v793_v54, %v779_v53  ;;  %v796_v57 = vadd.f32 %v794_v6, %v780_v1  ;;  %v888_v54 = vpop.permute.xlu0 %887 }
 0x118   : > { %v815_v16 = vpop.permute.xlu1 %814  ;;  %v811_v51 = vadd.f32 %v809_v60, %v795_v56  ;;  %v812_v45 = vadd.f32 %v810_v14, %v796_v57 }
 0x119   : > { %2234 = vset.pattern.permute.xlu1 %v2358_v10  ;;  %v825_v0 = vmul.f32 %v820_v62, %v815_v16  ;;  %v826_v52 = vmul.f32 %v824_v63, %v815_v16 }
 0x11a   : > { %1382 = vperm.xlu1 %2234, %v2548_v28   ;;  %v857_v28 = vmul.f32 %v852_v9, %v847_v25 }
 0x11b   : > { %v827_v29 = vadd.f32 %v825_v0, %v811_v51  ;;  %v828_v30 = vadd.f32 %v826_v52, %v812_v45 }
 0x11d   : > { %v831_v26 = vpop.permute.xlu1 %830 }
 0x11e   : > { %v841_v32 = vmul.f32 %v836_v23, %v831_v26  ;;  %v842_v35 = vmul.f32 %v840_v24, %v831_v26  ;;  %2236 = vset.pattern.permute.xlu1 %v2351_v2 }
 0x11f   : > { %1419 = vperm.xlu1 %2236, %v2597_v17  }
 0x120   : > { %v843_v38 = vadd.f32 %v841_v32, %v827_v29  ;;  %v844_v39 = vadd.f32 %v842_v35, %v828_v30  ;;  %v936_v30 = vpop.permute.xlu0 %935 }
 0x122   : > { %v859_v15 = vadd.f32 %v857_v28, %v843_v38  ;;  %v860_v40 = vadd.f32 %v858_v37, %v844_v39  ;;  %v868_v41 = vpop.permute.xlu1 %867 }
 0x123   : > { %2237 = vset.pattern.permute.xlu1 %v2353_v4 }
 0x124   : > { %v2849_v12 = vmax.f32 %v859_v15, 0.0  ;;  %v2851_v13 = vmax.f32 %v860_v40, 0.0  ;;  %1433 = vperm.xlu1 %2237, %v2597_v17  }
 0x126   : > { %v873_v42 = vrot.slane %v2849_v12, %v2527_v19  ;;  %v877_v18 = vrot.slane %v2851_v13, %v2527_v19  ;;  %v893_v49 = vrot.slane %v2849_v12, %v2532_v20  ;;  %v897_v50 = vrot.slane %v2851_v13, %v2532_v20 }
 0x127   : > { %v882_v48 = vpop.permute.xlu1 %881  ;;  %v909_v59 = vrot.slane %v2849_v12, %v2543_v27  ;;  %v913_v60 = vrot.slane %v2851_v13, %v2543_v27  ;;  %v925_v51 = vrot.slane %v2849_v12, %v2557_v33  ;;  %v929_v45 = vrot.slane %v2851_v13, %v2557_v33 }
 0x128   : > { %v878_v21 = vmul.f32 %v873_v42, %v868_v41  ;;  %v879_v22 = vmul.f32 %v877_v18, %v868_v41  ;;  %2239 = vset.pattern.permute.xlu1 %v2352_v3  ;;  %v898_v6 = vmul.f32 %v893_v49, %v888_v54  ;;  %v899_v56 = vmul.f32 %v897_v50, %v888_v54  ;;  %v984_v50 = vpop.permute.xlu0 %983 }
 0x129   : > { %1455 = vperm.xlu1 %2239, %v2597_v17   ;;  %v941_v0 = vrot.slane %v2849_v12, %v2559_v34  ;;  %v945_v52 = vrot.slane %v2851_v13, %v2559_v34  ;;  %v957_v37 = vrot.slane %v2849_v12, %v2574_v46  ;;  %v961_v38 = vrot.slane %v2851_v13, %v2574_v46 }
 0x12a   : > { %v884_v53 = vadd.f32 %v882_v48, %v878_v21  ;;  %v885_v1 = vadd.f32 %v882_v48, %v879_v22  ;;  %v989_v42 = vrot.slane %v2849_v12, %v2586_v61  ;;  %v993_v18 = vrot.slane %v2851_v13, %v2586_v61 }
 0x12b   : > { %v946_v32 = vmul.f32 %v941_v0, %v936_v30  ;;  %v947_v35 = vmul.f32 %v945_v52, %v936_v30  ;;  %v973_v48 = vrot.slane %v2849_v12, %v2581_v58  ;;  %v977_v49 = vrot.slane %v2851_v13, %v2581_v58 }
 0x12c   : > { %v904_v57 = vpop.permute.xlu1 %903  ;;  %v900_v14 = vadd.f32 %v898_v6, %v884_v53  ;;  %v901_v16 = vadd.f32 %v899_v56, %v885_v1  ;;  %v995_v6 = vmul.f32 %v993_v18, %v984_v50 }
 0x12d   : > { %2240 = vset.pattern.permute.xlu1 %v2354_v5  ;;  %v914_v62 = vmul.f32 %v909_v59, %v904_v57  ;;  %v915_v63 = vmul.f32 %v913_v60, %v904_v57 }
 0x12e   : > { %1471 = vperm.xlu1 %2240, %v2597_v17  }
 0x12f   : > { %v916_v11 = vadd.f32 %v914_v62, %v900_v14  ;;  %v917_v23 = vadd.f32 %v915_v63, %v901_v16 }
 0x131   : > { %v920_v9 = vpop.permute.xlu1 %919 }
 0x132   : > { %v930_v24 = vmul.f32 %v925_v51, %v920_v9  ;;  %v931_v25 = vmul.f32 %v929_v45, %v920_v9  ;;  %2242 = vset.pattern.permute.xlu1 %v2356_v7 }
 0x133   : > { %1503 = vperm.xlu1 %2242, %v2597_v17  }
 0x134   : > { %v932_v26 = vadd.f32 %v930_v24, %v916_v11  ;;  %v933_v29 = vadd.f32 %v931_v25, %v917_v23  ;;  %v1025_v23 = vpop.permute.xlu0 %1024 }
 0x136   : > { %v952_v28 = vpop.permute.xlu1 %951  ;;  %v948_v39 = vadd.f32 %v946_v32, %v932_v26  ;;  %v949_v15 = vadd.f32 %v947_v35, %v933_v29 }
 0x137   : > { %2243 = vset.pattern.permute.xlu1 %v2358_v10  ;;  %v962_v40 = vmul.f32 %v957_v37, %v952_v28  ;;  %v963_v41 = vmul.f32 %v961_v38, %v952_v28 }
 0x138   : > { %1519 = vperm.xlu1 %2243, %v2597_v17   ;;  %v994_v17 = vmul.f32 %v989_v42, %v984_v50 }
 0x139   : > { %v964_v22 = vadd.f32 %v962_v40, %v948_v39  ;;  %v965_v53 = vadd.f32 %v963_v41, %v949_v15 }
 0x13b   : > { %v968_v21 = vpop.permute.xlu1 %967 }
 0x13c   : > { %v978_v1 = vmul.f32 %v973_v48, %v968_v21  ;;  %v979_v54 = vmul.f32 %v977_v49, %v968_v21  ;;  %2245 = vset.pattern.permute.xlu1 %v2351_v2 }
 0x13d   : > { %1556 = vperm.xlu1 %2245, %v2649_v31  }
 0x13e   : > { %v980_v56 = vadd.f32 %v978_v1, %v964_v22  ;;  %v981_v57 = vadd.f32 %v979_v54, %v965_v53  ;;  %v1073_v22 = vpop.permute.xlu0 %1072 }
 0x140   : > { %v996_v59 = vadd.f32 %v994_v17, %v980_v56  ;;  %v997_v60 = vadd.f32 %v995_v6, %v981_v57  ;;  %v1005_v12 = vpop.permute.xlu1 %1004 }
 0x141   : > { %2246 = vset.pattern.permute.xlu1 %v2353_v4 }
 0x142   : > { %v2897_v13 = vmax.f32 %v996_v59, 0.0  ;;  %v2899_v14 = vmax.f32 %v997_v60, 0.0  ;;  %1570 = vperm.xlu1 %2246, %v2649_v31  }
 0x144   : > { %v1010_v16 = vrot.slane %v2897_v13, %v2527_v19  ;;  %v1014_v62 = vrot.slane %v2899_v14, %v2527_v19  ;;  %v1030_v51 = vrot.slane %v2897_v13, %v2532_v20  ;;  %v1034_v45 = vrot.slane %v2899_v14, %v2532_v20 }
 0x145   : > { %v1019_v63 = vpop.permute.xlu1 %1018  ;;  %v1046_v29 = vrot.slane %v2897_v13, %v2543_v27  ;;  %v1050_v30 = vrot.slane %v2899_v14, %v2543_v27  ;;  %v1062_v38 = vrot.slane %v2897_v13, %v2557_v33  ;;  %v1066_v39 = vrot.slane %v2899_v14, %v2557_v33 }
 0x146   : > { %v1015_v0 = vmul.f32 %v1010_v16, %v1005_v12  ;;  %v1016_v52 = vmul.f32 %v1014_v62, %v1005_v12  ;;  %2248 = vset.pattern.permute.xlu1 %v2352_v3  ;;  %v1035_v24 = vmul.f32 %v1030_v51, %v1025_v23  ;;  %v1036_v25 = vmul.f32 %v1034_v45, %v1025_v23  ;;  %v1121_v51 = vpop.permute.xlu0 %1120 }
 0x147   : > { %1592 = vperm.xlu1 %2248, %v2649_v31   ;;  %v1078_v15 = vrot.slane %v2897_v13, %v2559_v34  ;;  %v1082_v40 = vrot.slane %v2899_v14, %v2559_v34  ;;  %v1094_v17 = vrot.slane %v2897_v13, %v2574_v46  ;;  %v1098_v6 = vrot.slane %v2899_v14, %v2574_v46 }
 0x148   : > { %v1021_v9 = vadd.f32 %v1019_v63, %v1015_v0  ;;  %v1022_v11 = vadd.f32 %v1019_v63, %v1016_v52  ;;  %v1126_v12 = vrot.slane %v2897_v13, %v2586_v61  ;;  %v1130_v16 = vrot.slane %v2899_v14, %v2586_v61 }
 0x149   : > { %v1083_v53 = vmul.f32 %v1078_v15, %v1073_v22  ;;  %v1084_v1 = vmul.f32 %v1082_v40, %v1073_v22  ;;  %v1110_v62 = vrot.slane %v2897_v13, %v2581_v58  ;;  %v1114_v63 = vrot.slane %v2899_v14, %v2581_v58 }
 0x14a   : > { %v1041_v26 = vpop.permute.xlu1 %1040  ;;  %v1037_v32 = vadd.f32 %v1035_v24, %v1021_v9  ;;  %v1038_v35 = vadd.f32 %v1036_v25, %v1022_v11  ;;  %v1132_v23 = vmul.f32 %v1130_v16, %v1121_v51  ;;  %v1137_v14 = vmul.f32 2.0, %v2801_v47  ;;  %v1166_v40 = vpop.permute.xlu0 %1165 }
 0x14b   : > { %2249 = vset.pattern.permute.xlu1 %v2354_v5  ;;  %v1051_v28 = vmul.f32 %v1046_v29, %v1041_v26  ;;  %v1052_v37 = vmul.f32 %v1050_v30, %v1041_v26  ;;  %v1138_v30 = vmul.f32 2.0, %v2803_v8 }
 0x14c   : > { %1608 = vperm.xlu1 %2249, %v2649_v31  }
 0x14d   : > { %v1053_v42 = vadd.f32 %v1051_v28, %v1037_v32  ;;  %v1054_v18 = vadd.f32 %v1052_v37, %v1038_v35 }
 0x14f   : > { %v1057_v41 = vpop.permute.xlu1 %1056 }
 0x150   : > { %v1067_v48 = vmul.f32 %v1062_v38, %v1057_v41  ;;  %v1068_v49 = vmul.f32 %v1066_v39, %v1057_v41  ;;  %2251 = vset.pattern.permute.xlu1 %v2356_v7 }
 0x151   : > { %1640 = vperm.xlu1 %2251, %v2649_v31  }
 0x152   : > { %v1069_v50 = vadd.f32 %v1067_v48, %v1053_v42  ;;  %v1070_v21 = vadd.f32 %v1068_v49, %v1054_v18 }
 0x154   : > { %v1089_v54 = vpop.permute.xlu1 %1088  ;;  %v1085_v56 = vadd.f32 %v1083_v53, %v1069_v50  ;;  %v1086_v57 = vadd.f32 %v1084_v1, %v1070_v21 }
 0x155   : > { %2252 = vset.pattern.permute.xlu1 %v2358_v10  ;;  %v1099_v59 = vmul.f32 %v1094_v17, %v1089_v54  ;;  %v1100_v60 = vmul.f32 %v1098_v6, %v1089_v54 }
 0x156   : > { %1656 = vperm.xlu1 %2252, %v2649_v31   ;;  %v1131_v31 = vmul.f32 %v1126_v12, %v1121_v51 }
 0x157   : > { %v1101_v0 = vadd.f32 %v1099_v59, %v1085_v56  ;;  %v1102_v52 = vadd.f32 %v1100_v60, %v1086_v57 }
 0x159   : > { %v1105_v45 = vpop.permute.xlu1 %1104 }
 0x15a   : > { %v1115_v9 = vmul.f32 %v1110_v62, %v1105_v45  ;;  %v1116_v11 = vmul.f32 %v1114_v63, %v1105_v45  ;;  %2254 = vset.pattern.permute.xlu1 %v2351_v2 }
 0x15b   : > { %1697 = vperm.xlu1 %2254, %v2708_v55  }
 0x15c   : > { %v1117_v24 = vadd.f32 %v1115_v9, %v1101_v0  ;;  %v1118_v25 = vadd.f32 %v1116_v11, %v1102_v52  ;;  %v1214_v52 = vpop.permute.xlu0 %1213 }
 0x15e   : > { %v1133_v26 = vadd.f32 %v1131_v31, %v1117_v24  ;;  %v1134_v29 = vadd.f32 %v1132_v23, %v1118_v25  ;;  %v1146_v13 = vpop.permute.xlu1 %1145 }
 0x15f   : > { %2255 = vset.pattern.permute.xlu1 %v2353_v4 }
 0x160   : > { %v1135_v32 = vmax.f32 %v1133_v26, 0.0  ;;  %v1136_v35 = vmax.f32 %v1134_v29, 0.0  ;;  %1711 = vperm.xlu1 %2255, %v2708_v55  }
 0x162   : > { %v2948_v28 = vadd.f32 %v1137_v14, %v1135_v32  ;;  %v2950_v37 = vadd.f32 %v1138_v30, %v1136_v35 }
 0x163   : > { %v1160_v38 = vpop.permute.xlu1 %1159 }
 0x164   : > { %v1171_v39 = vrot.slane %v2948_v28, %v2532_v20  ;;  %v1175_v15 = vrot.slane %v2950_v37, %v2532_v20  ;;  %v1151_v47 = vrot.slane %v2948_v28, %v2527_v19  ;;  %v1155_v8 = vrot.slane %v2950_v37, %v2527_v19  ;;  %2257 = vset.pattern.permute.xlu1 %v2352_v3 }
 0x165   : > { %1733 = vperm.xlu1 %2257, %v2708_v55   ;;  %v1187_v22 = vrot.slane %v2948_v28, %v2543_v27  ;;  %v1191_v53 = vrot.slane %v2950_v37, %v2543_v27  ;;  %v1203_v56 = vrot.slane %v2948_v28, %v2557_v33  ;;  %v1207_v57 = vrot.slane %v2950_v37, %v2557_v33 }
 0x166   : > { %v1156_v41 = vmul.f32 %v1151_v47, %v1146_v13  ;;  %v1157_v42 = vmul.f32 %v1155_v8, %v1146_v13  ;;  %v1176_v18 = vmul.f32 %v1171_v39, %v1166_v40  ;;  %v1177_v48 = vmul.f32 %v1175_v15, %v1166_v40 }
 0x167   : > { %v1219_v59 = vrot.slane %v2948_v28, %v2559_v34  ;;  %v1223_v60 = vrot.slane %v2950_v37, %v2559_v34  ;;  %v1235_v23 = vrot.slane %v2948_v28, %v2574_v46  ;;  %v1239_v24 = vrot.slane %v2950_v37, %v2574_v46 }
 0x168   : > { %v1162_v49 = vadd.f32 %v1160_v38, %v1156_v41  ;;  %v1163_v50 = vadd.f32 %v1160_v38, %v1157_v42  ;;  %v1182_v21 = vpop.permute.xlu1 %1181  ;;  %v1267_v14 = vrot.slane %v2948_v28, %v2586_v61  ;;  %v1271_v30 = vrot.slane %v2950_v37, %v2586_v61  ;;  %v1262_v38 = vpop.permute.xlu0 %1261 }
 0x169   : > { %2258 = vset.pattern.permute.xlu1 %v2354_v5  ;;  %v1192_v17 = vmul.f32 %v1187_v22, %v1182_v21  ;;  %v1193_v6 = vmul.f32 %v1191_v53, %v1182_v21  ;;  %v1224_v9 = vmul.f32 %v1219_v59, %v1214_v52  ;;  %v1225_v11 = vmul.f32 %v1223_v60, %v1214_v52 }
 0x16a   : > { %v1178_v1 = vadd.f32 %v1176_v18, %v1162_v49  ;;  %v1179_v54 = vadd.f32 %v1177_v48, %v1163_v50  ;;  %1749 = vperm.xlu1 %2258, %v2708_v55   ;;  %v1251_v32 = vrot.slane %v2948_v28, %v2581_v58  ;;  %v1255_v35 = vrot.slane %v2950_v37, %v2581_v58 }
 0x16b   : > { %v1273_v41 = vmul.f32 %v1271_v30, %v1262_v38 }
 0x16c   : > { %v1194_v16 = vadd.f32 %v1192_v17, %v1178_v1  ;;  %v1195_v62 = vadd.f32 %v1193_v6, %v1179_v54  ;;  %v1303_v17 = vpop.permute.xlu0 %1302 }
 0x16d   : > { %v1198_v12 = vpop.permute.xlu1 %1197 }
 0x16e   : > { %v1208_v63 = vmul.f32 %v1203_v56, %v1198_v12  ;;  %v1209_v51 = vmul.f32 %v1207_v57, %v1198_v12  ;;  %2260 = vset.pattern.permute.xlu1 %v2356_v7 }
 0x16f   : > { %1781 = vperm.xlu1 %2260, %v2708_v55  }
 0x170   : > { %v1210_v45 = vadd.f32 %v1208_v63, %v1194_v16  ;;  %v1211_v0 = vadd.f32 %v1209_v51, %v1195_v62 }
 0x172   : > { %v1230_v31 = vpop.permute.xlu1 %1229  ;;  %v1226_v25 = vadd.f32 %v1224_v9, %v1210_v45  ;;  %v1227_v26 = vadd.f32 %v1225_v11, %v1211_v0 }
 0x173   : > { %2261 = vset.pattern.permute.xlu1 %v2358_v10  ;;  %v1240_v29 = vmul.f32 %v1235_v23, %v1230_v31  ;;  %v1241_v13 = vmul.f32 %v1239_v24, %v1230_v31 }
 0x174   : > { %1797 = vperm.xlu1 %2261, %v2708_v55   ;;  %v1272_v55 = vmul.f32 %v1267_v14, %v1262_v38 }
 0x175   : > { %v1242_v15 = vadd.f32 %v1240_v29, %v1226_v25  ;;  %v1243_v47 = vadd.f32 %v1241_v13, %v1227_v26  ;;  %v1351_v29 = vpop.permute.xlu0 %1350 }
 0x177   : > { %v1246_v39 = vpop.permute.xlu1 %1245 }
 0x178   : > { %v1256_v8 = vmul.f32 %v1251_v32, %v1246_v39  ;;  %v1257_v40 = vmul.f32 %v1255_v35, %v1246_v39  ;;  %2263 = vset.pattern.permute.xlu1 %v2351_v2 }
 0x179   : > { %1836 = vperm.xlu1 %2263, %v2775_v36  }
 0x17a   : > { %v1258_v42 = vadd.f32 %v1256_v8, %v1242_v15  ;;  %v1259_v18 = vadd.f32 %v1257_v40, %v1243_v47 }
 0x17c   : > { %v1274_v48 = vadd.f32 %v1272_v55, %v1258_v42  ;;  %v1275_v49 = vadd.f32 %v1273_v41, %v1259_v18  ;;  %v1283_v28 = vpop.permute.xlu1 %1282  ;;  %v1399_v41 = vpop.permute.xlu0 %1398 }
 0x17d   : > { %2264 = vset.pattern.permute.xlu1 %v2353_v4 }
 0x17e   : > { %v2995_v37 = vmax.f32 %v1274_v48, 0.0  ;;  %v2997_v50 = vmax.f32 %v1275_v49, 0.0  ;;  %1850 = vperm.xlu1 %2264, %v2775_v36  }
 0x180   : > { %v1288_v2 = vrot.slane %v2995_v37, %v2527_v19  ;;  %v1292_v21 = vrot.slane %v2997_v50, %v2527_v19  ;;  %v1308_v53 = vrot.slane %v2995_v37, %v2532_v20  ;;  %v1312_v1 = vrot.slane %v2997_v50, %v2532_v20 }
 0x181   : > { %v1297_v22 = vpop.permute.xlu1 %1296  ;;  %v1324_v12 = vrot.slane %v2995_v37, %v2543_v27  ;;  %v1328_v16 = vrot.slane %v2997_v50, %v2543_v27  ;;  %v1340_v45 = vrot.slane %v2995_v37, %v2557_v33  ;;  %v1344_v0 = vrot.slane %v2997_v50, %v2557_v33 }
 0x182   : > { %2266 = vset.pattern.permute.xlu1 %v2352_v3  ;;  %v1293_v4 = vmul.f32 %v1288_v2, %v1283_v28  ;;  %v1294_v54 = vmul.f32 %v1292_v21, %v1283_v28  ;;  %v1313_v57 = vmul.f32 %v1308_v53, %v1303_v17  ;;  %v1314_v59 = vmul.f32 %v1312_v1, %v1303_v17 }
 0x183   : > { %1872 = vperm.xlu1 %2266, %v2775_v36   ;;  %v1356_v52 = vrot.slane %v2995_v37, %v2559_v34  ;;  %v1360_v9 = vrot.slane %v2997_v50, %v2559_v34  ;;  %v1372_v32 = vrot.slane %v2995_v37, %v2574_v46  ;;  %v1376_v35 = vrot.slane %v2997_v50, %v2574_v46 }
 0x184   : > { %v1299_v6 = vadd.f32 %v1297_v22, %v1293_v4  ;;  %v1300_v56 = vadd.f32 %v1297_v22, %v1294_v54  ;;  %v1404_v47 = vrot.slane %v2995_v37, %v2586_v61  ;;  %v1408_v8 = vrot.slane %v2997_v50, %v2586_v61 }
 0x185   : > { %v1361_v13 = vmul.f32 %v1356_v52, %v1351_v29  ;;  %v1362_v14 = vmul.f32 %v1360_v9, %v1351_v29  ;;  %v1388_v40 = vrot.slane %v2995_v37, %v2581_v58  ;;  %v1392_v55 = vrot.slane %v2997_v50, %v2581_v58 }
 0x186   : > { %v1319_v60 = vpop.permute.xlu1 %1318  ;;  %v1315_v62 = vadd.f32 %v1313_v57, %v1299_v6  ;;  %v1316_v3 = vadd.f32 %v1314_v59, %v1300_v56  ;;  %v1409_v28 = vmul.f32 %v1404_v47, %v1399_v41 }
 0x187   : > { %2267 = vset.pattern.permute.xlu1 %v2354_v5  ;;  %v1329_v63 = vmul.f32 %v1324_v12, %v1319_v60  ;;  %v1330_v51 = vmul.f32 %v1328_v16, %v1319_v60 }
 0x188   : > { %1888 = vperm.xlu1 %2267, %v2775_v36  }
 0x189   : > { %v1331_v5 = vadd.f32 %v1329_v63, %v1315_v62  ;;  %v1332_v31 = vadd.f32 %v1330_v51, %v1316_v3  ;;  %v1440_v3 = vpop.permute.xlu0 %1439 }
 0x18b   : > { %v1335_v11 = vpop.permute.xlu1 %1334 }
 0x18c   : > { %v1345_v23 = vmul.f32 %v1340_v45, %v1335_v11  ;;  %v1346_v24 = vmul.f32 %v1344_v0, %v1335_v11  ;;  %2269 = vset.pattern.permute.xlu1 %v2356_v7 }
 0x18d   : > { %1920 = vperm.xlu1 %2269, %v2775_v36  }
 0x18e   : > { %v1347_v25 = vadd.f32 %v1345_v23, %v1331_v5  ;;  %v1348_v26 = vadd.f32 %v1346_v24, %v1332_v31 }
 0x190   : > { %v1367_v30 = vpop.permute.xlu1 %1366  ;;  %v1363_v38 = vadd.f32 %v1361_v13, %v1347_v25  ;;  %v1364_v39 = vadd.f32 %v1362_v14, %v1348_v26 }
 0x191   : > { %2270 = vset.pattern.permute.xlu1 %v2358_v10  ;;  %v1377_v15 = vmul.f32 %v1372_v32, %v1367_v30  ;;  %v1378_v7 = vmul.f32 %v1376_v35, %v1367_v30 }
 0x192   : > { %1936 = vperm.xlu1 %2270, %v2775_v36   ;;  %v1410_v36 = vmul.f32 %v1408_v8, %v1399_v41 }
 0x193   : > { %v1379_v42 = vadd.f32 %v1377_v15, %v1363_v38  ;;  %v1380_v18 = vadd.f32 %v1378_v7, %v1364_v39  ;;  %v1488_v39 = vpop.permute.xlu0 %1487 }
 0x195   : > { %v1383_v10 = vpop.permute.xlu1 %1382 }
 0x196   : > { %v1393_v48 = vmul.f32 %v1388_v40, %v1383_v10  ;;  %v1394_v49 = vmul.f32 %v1392_v55, %v1383_v10 }
 0x198   : > { %v1395_v2 = vadd.f32 %v1393_v48, %v1379_v42  ;;  %v1396_v21 = vadd.f32 %v1394_v49, %v1380_v18 }
 0x19a   : > { %v1411_v22 = vadd.f32 %v1409_v28, %v1395_v2  ;;  %v1412_v53 = vadd.f32 %v1410_v36, %v1396_v21  ;;  %v1420_v1 = vpop.permute.xlu1 %1419  ;;  %v1536_v36 = vpop.permute.xlu0 %1535 }
 0x19c   : > { %v1413_v4 = vmax.f32 %v1411_v22, 0.0  ;;  %v1414_v54 = vmax.f32 %v1412_v53, 0.0 }
 0x19e   : > { %v1425_v17 = vrot.slane %v1413_v4, %v2527_v19  ;;  %v1429_v6 = vrot.slane %v1414_v54, %v2527_v19  ;;  %v1445_v57 = vrot.slane %v1413_v4, %v2532_v20  ;;  %v1449_v59 = vrot.slane %v1414_v54, %v2532_v20 }
 0x19f   : > { %v1434_v56 = vpop.permute.xlu1 %1433  ;;  %v1461_v0 = vrot.slane %v1413_v4, %v2543_v27  ;;  %v1465_v52 = vrot.slane %v1414_v54, %v2543_v27  ;;  %v1477_v23 = vrot.slane %v1413_v4, %v2557_v33  ;;  %v1481_v24 = vrot.slane %v1414_v54, %v2557_v33 }
 0x1a0   : > { %v1430_v60 = vmul.f32 %v1425_v17, %v1420_v1  ;;  %v1431_v12 = vmul.f32 %v1429_v6, %v1420_v1  ;;  %v1450_v63 = vmul.f32 %v1445_v57, %v1440_v3  ;;  %v1451_v51 = vmul.f32 %v1449_v59, %v1440_v3 }
 0x1a1   : > { %v1493_v25 = vrot.slane %v1413_v4, %v2559_v34  ;;  %v1497_v26 = vrot.slane %v1414_v54, %v2559_v34  ;;  %v1509_v8 = vrot.slane %v1413_v4, %v2574_v46  ;;  %v1513_v40 = vrot.slane %v1414_v54, %v2574_v46 }
 0x1a2   : > { %v1436_v16 = vadd.f32 %v1434_v56, %v1430_v60  ;;  %v1437_v62 = vadd.f32 %v1434_v56, %v1431_v12  ;;  %v1541_v18 = vrot.slane %v1413_v4, %v2586_v61  ;;  %v1545_v48 = vrot.slane %v1414_v54, %v2586_v61 }
 0x1a3   : > { %v1498_v15 = vmul.f32 %v1493_v25, %v1488_v39  ;;  %v1499_v7 = vmul.f32 %v1497_v26, %v1488_v39  ;;  %v1525_v49 = vrot.slane %v1413_v4, %v2581_v58  ;;  %v1529_v28 = vrot.slane %v1414_v54, %v2581_v58 }
 0x1a4   : > { %v1456_v45 = vpop.permute.xlu1 %1455  ;;  %v1452_v9 = vadd.f32 %v1450_v63, %v1436_v16  ;;  %v1453_v11 = vadd.f32 %v1451_v51, %v1437_v62  ;;  %v1546_v17 = vmul.f32 %v1541_v18, %v1536_v36  ;;  %v1547_v6 = vmul.f32 %v1545_v48, %v1536_v36 }
 0x1a5   : > { %v1466_v5 = vmul.f32 %v1461_v0, %v1456_v45  ;;  %v1467_v31 = vmul.f32 %v1465_v52, %v1456_v45 }
 0x1a7   : > { %v1468_v13 = vadd.f32 %v1466_v5, %v1452_v9  ;;  %v1469_v14 = vadd.f32 %v1467_v31, %v1453_v11  ;;  %v1577_v11 = vpop.permute.xlu0 %1576 }
 0x1a9   : > { %v1472_v29 = vpop.permute.xlu1 %1471 }
 0x1aa   : > { %v1482_v30 = vmul.f32 %v1477_v23, %v1472_v29  ;;  %v1483_v32 = vmul.f32 %v1481_v24, %v1472_v29 }
 0x1ac   : > { %v1484_v35 = vadd.f32 %v1482_v30, %v1468_v13  ;;  %v1485_v38 = vadd.f32 %v1483_v32, %v1469_v14 }
 0x1ae   : > { %v1504_v47 = vpop.permute.xlu1 %1503  ;;  %v1500_v55 = vadd.f32 %v1498_v15, %v1484_v35  ;;  %v1501_v41 = vadd.f32 %v1499_v7, %v1485_v38 }
 0x1af   : > { %v1514_v10 = vmul.f32 %v1509_v8, %v1504_v47  ;;  %v1515_v42 = vmul.f32 %v1513_v40, %v1504_v47 }
 0x1b1   : > { %v1516_v21 = vadd.f32 %v1514_v10, %v1500_v55  ;;  %v1517_v22 = vadd.f32 %v1515_v42, %v1501_v41  ;;  %v1625_v41 = vpop.permute.xlu0 %1624 }
 0x1b3   : > { %v1520_v2 = vpop.permute.xlu1 %1519 }
 0x1b4   : > { %v1530_v53 = vmul.f32 %v1525_v49, %v1520_v2  ;;  %v1531_v1 = vmul.f32 %v1529_v28, %v1520_v2 }
 0x1b6   : > { %v1532_v56 = vadd.f32 %v1530_v53, %v1516_v21  ;;  %v1533_v57 = vadd.f32 %v1531_v1, %v1517_v22 }
 0x1b8   : > { %v1548_v59 = vadd.f32 %v1546_v17, %v1532_v56  ;;  %v1549_v60 = vadd.f32 %v1547_v6, %v1533_v57  ;;  %v1557_v12 = vpop.permute.xlu1 %1556  ;;  %v1673_v6 = vpop.permute.xlu0 %1672 }
 0x1ba   : > { %v1550_v16 = vmax.f32 %v1548_v59, 0.0  ;;  %v1551_v62 = vmax.f32 %v1549_v60, 0.0 }
 0x1bc   : > { %v1562_v3 = vrot.slane %v1550_v16, %v2527_v19  ;;  %v1566_v4 = vrot.slane %v1551_v62, %v2527_v19  ;;  %v1582_v63 = vrot.slane %v1550_v16, %v2532_v20  ;;  %v1586_v51 = vrot.slane %v1551_v62, %v2532_v20 }
 0x1bd   : > { %v1571_v54 = vpop.permute.xlu1 %1570  ;;  %v1598_v24 = vrot.slane %v1550_v16, %v2543_v27  ;;  %v1602_v25 = vrot.slane %v1551_v62, %v2543_v27  ;;  %v1614_v30 = vrot.slane %v1550_v16, %v2557_v33  ;;  %v1618_v32 = vrot.slane %v1551_v62, %v2557_v33 }
 0x1be   : > { %v1567_v45 = vmul.f32 %v1562_v3, %v1557_v12  ;;  %v1568_v0 = vmul.f32 %v1566_v4, %v1557_v12  ;;  %v1587_v5 = vmul.f32 %v1582_v63, %v1577_v11  ;;  %v1588_v31 = vmul.f32 %v1586_v51, %v1577_v11 }
 0x1bf   : > { %v1630_v35 = vrot.slane %v1550_v16, %v2559_v34  ;;  %v1634_v38 = vrot.slane %v1551_v62, %v2559_v34  ;;  %v1646_v48 = vrot.slane %v1550_v16, %v2574_v46  ;;  %v1650_v49 = vrot.slane %v1551_v62, %v2574_v46 }
 0x1c0   : > { %v1573_v52 = vadd.f32 %v1571_v54, %v1567_v45  ;;  %v1574_v9 = vadd.f32 %v1571_v54, %v1568_v0  ;;  %v1678_v22 = vrot.slane %v1550_v16, %v2586_v61  ;;  %v1682_v53 = vrot.slane %v1551_v62, %v2586_v61 }
 0x1c1   : > { %v1635_v10 = vmul.f32 %v1630_v35, %v1625_v41  ;;  %v1636_v42 = vmul.f32 %v1634_v38, %v1625_v41  ;;  %v1662_v1 = vrot.slane %v1550_v16, %v2581_v58  ;;  %v1666_v17 = vrot.slane %v1551_v62, %v2581_v58 }
 0x1c2   : > { %v1593_v23 = vpop.permute.xlu1 %1592  ;;  %v1589_v26 = vadd.f32 %v1587_v5, %v1573_v52  ;;  %v1590_v29 = vadd.f32 %v1588_v31, %v1574_v9  ;;  %v1683_v3 = vmul.f32 %v1678_v22, %v1673_v6  ;;  %v1684_v4 = vmul.f32 %v1682_v53, %v1673_v6 }
 0x1c3   : > { %v1603_v13 = vmul.f32 %v1598_v24, %v1593_v23  ;;  %v1604_v14 = vmul.f32 %v1602_v25, %v1593_v23  ;;  %v1689_v52 = vmul.f32 2.0, %v2995_v37  ;;  %v1690_v9 = vmul.f32 2.0, %v2997_v50 }
 0x1c5   : > { %v1605_v15 = vadd.f32 %v1603_v13, %v1589_v26  ;;  %v1606_v7 = vadd.f32 %v1604_v14, %v1590_v29  ;;  %v1718_v29 = vpop.permute.xlu0 %1717 }
 0x1c7   : > { %v1609_v39 = vpop.permute.xlu1 %1608 }
 0x1c8   : > { %v1619_v47 = vmul.f32 %v1614_v30, %v1609_v39  ;;  %v1620_v8 = vmul.f32 %v1618_v32, %v1609_v39 }
 0x1ca   : > { %v1621_v40 = vadd.f32 %v1619_v47, %v1605_v15  ;;  %v1622_v55 = vadd.f32 %v1620_v8, %v1606_v7 }
 0x1cc   : > { %v1641_v18 = vpop.permute.xlu1 %1640  ;;  %v1637_v28 = vadd.f32 %v1635_v10, %v1621_v40  ;;  %v1638_v36 = vadd.f32 %v1636_v42, %v1622_v55 }
 0x1cd   : > { %v1651_v2 = vmul.f32 %v1646_v48, %v1641_v18  ;;  %v1652_v21 = vmul.f32 %v1650_v49, %v1641_v18 }
 0x1cf   : > { %v1653_v57 = vadd.f32 %v1651_v2, %v1637_v28  ;;  %v1654_v59 = vadd.f32 %v1652_v21, %v1638_v36  ;;  %v1766_v21 = vpop.permute.xlu0 %1765 }
 0x1d1   : > { %v1657_v56 = vpop.permute.xlu1 %1656 }
 0x1d2   : > { %v1667_v60 = vmul.f32 %v1662_v1, %v1657_v56  ;;  %v1668_v12 = vmul.f32 %v1666_v17, %v1657_v56 }
 0x1d4   : > { %v1669_v54 = vadd.f32 %v1667_v60, %v1653_v57  ;;  %v1670_v63 = vadd.f32 %v1668_v12, %v1654_v59 }
 0x1d6   : > { %v1685_v51 = vadd.f32 %v1683_v3, %v1669_v54  ;;  %v1686_v45 = vadd.f32 %v1684_v4, %v1670_v63  ;;  %v1698_v0 = vpop.permute.xlu1 %1697  ;;  %v1814_v63 = vpop.permute.xlu0 %1813 }
 0x1d8   : > { %v1687_v16 = vmax.f32 %v1685_v51, 0.0  ;;  %v1688_v11 = vmax.f32 %v1686_v45, 0.0 }
 0x1da   : > { %v1691_v62 = vadd.f32 %v1689_v52, %v1687_v16  ;;  %v1692_v5 = vadd.f32 %v1690_v9, %v1688_v11 }
 0x1db   : > { %v1712_v31 = vpop.permute.xlu1 %1711 }
 0x1dc   : > { %v1723_v23 = vrot.slane %v1691_v62, %v2532_v20  ;;  %v1727_v24 = vrot.slane %v1692_v5, %v2532_v20  ;;  %v1703_v25 = vrot.slane %v1691_v62, %v2527_v19  ;;  %v1707_v26 = vrot.slane %v1692_v5, %v2527_v19 }
 0x1dd   : > { %v1739_v38 = vrot.slane %v1691_v62, %v2543_v27  ;;  %v1743_v39 = vrot.slane %v1692_v5, %v2543_v27  ;;  %v1755_v40 = vrot.slane %v1691_v62, %v2557_v33  ;;  %v1759_v55 = vrot.slane %v1692_v5, %v2557_v33 }
 0x1de   : > { %v1708_v13 = vmul.f32 %v1703_v25, %v1698_v0  ;;  %v1709_v14 = vmul.f32 %v1707_v26, %v1698_v0  ;;  %v1728_v30 = vmul.f32 %v1723_v23, %v1718_v29  ;;  %v1729_v37 = vmul.f32 %v1727_v24, %v1718_v29 }
 0x1df   : > { %v1771_v41 = vrot.slane %v1691_v62, %v2559_v34  ;;  %v1775_v10 = vrot.slane %v1692_v5, %v2559_v34  ;;  %v1787_v17 = vrot.slane %v1691_v62, %v2574_v46  ;;  %v1791_v6 = vrot.slane %v1692_v5, %v2574_v46 }
 0x1e0   : > { %v1714_v32 = vadd.f32 %v1712_v31, %v1708_v13  ;;  %v1715_v50 = vadd.f32 %v1712_v31, %v1709_v14  ;;  %v1734_v35 = vpop.permute.xlu1 %1733  ;;  %v1819_v12 = vrot.slane %v1691_v62, %v2586_v61  ;;  %v1823_v3 = vrot.slane %v1692_v5, %v2586_v61 }
 0x1e1   : > { %v1744_v47 = vmul.f32 %v1739_v38, %v1734_v35  ;;  %v1745_v8 = vmul.f32 %v1743_v39, %v1734_v35  ;;  %v1776_v22 = vmul.f32 %v1771_v41, %v1766_v21  ;;  %v1777_v53 = vmul.f32 %v1775_v10, %v1766_v21  ;;  %v1857_v35 = vpop.permute.xlu0 %1856 }
 0x1e2   : > { %v1730_v15 = vadd.f32 %v1728_v30, %v1714_v32  ;;  %v1731_v7 = vadd.f32 %v1729_v37, %v1715_v50  ;;  %v1803_v4 = vrot.slane %v1691_v62, %v2581_v58  ;;  %v1807_v54 = vrot.slane %v1692_v5, %v2581_v58 }
 0x1e3   : > { %v1824_v16 = vmul.f32 %v1819_v12, %v1814_v63  ;;  %v1825_v11 = vmul.f32 %v1823_v3, %v1814_v63 }
 0x1e4   : > { %v1746_v18 = vadd.f32 %v1744_v47, %v1730_v15  ;;  %v1747_v48 = vadd.f32 %v1745_v8, %v1731_v7 }
 0x1e5   : > { %v1750_v42 = vpop.permute.xlu1 %1749 }
 0x1e6   : > { %v1760_v49 = vmul.f32 %v1755_v40, %v1750_v42  ;;  %v1761_v28 = vmul.f32 %v1759_v55, %v1750_v42 }
 0x1e8   : > { %v1762_v36 = vadd.f32 %v1760_v49, %v1746_v18  ;;  %v1763_v2 = vadd.f32 %v1761_v28, %v1747_v48 }
 0x1ea   : > { %v1782_v1 = vpop.permute.xlu1 %1781  ;;  %v1778_v56 = vadd.f32 %v1776_v22, %v1762_v36  ;;  %v1779_v57 = vadd.f32 %v1777_v53, %v1763_v2  ;;  %v1905_v53 = vpop.permute.xlu0 %1904 }
 0x1eb   : > { %v1792_v59 = vmul.f32 %v1787_v17, %v1782_v1  ;;  %v1793_v60 = vmul.f32 %v1791_v6, %v1782_v1 }
 0x1ed   : > { %v1794_v45 = vadd.f32 %v1792_v59, %v1778_v56  ;;  %v1795_v0 = vadd.f32 %v1793_v60, %v1779_v57 }
 0x1ee   : > { %v1953_v63 = vpop.permute.xlu0 %1952 }
 0x1ef   : > { %v1798_v51 = vpop.permute.xlu1 %1797 }
 0x1f0   : > { %v1808_v52 = vmul.f32 %v1803_v4, %v1798_v51  ;;  %v1809_v9 = vmul.f32 %v1807_v54, %v1798_v51 }
 0x1f2   : > { %v1810_v31 = vadd.f32 %v1808_v52, %v1794_v45  ;;  %v1811_v23 = vadd.f32 %v1809_v9, %v1795_v0 }
 0x1f4   : > { %v1826_v24 = vadd.f32 %v1824_v16, %v1810_v31  ;;  %v1827_v25 = vadd.f32 %v1825_v11, %v1811_v23  ;;  %v1837_v26 = vpop.permute.xlu1 %1836 }
 0x1f6   : > { %v1828_v29 = vmax.f32 %v1826_v24, 0.0  ;;  %v1829_v13 = vmax.f32 %v1827_v25, 0.0 }
 0x1f8   : > { %v1830_v14 = vadd.f32 %v1828_v29, %v2734_v43  ;;  %v1831_v62 = vadd.f32 %v1829_v13, %v2737_v44 }
 0x1f9   : > { %v1851_v5 = vpop.permute.xlu1 %1850 }
 0x1fa   : > { %v1862_v30 = vrot.slane %v1830_v14, %v2532_v20  ;;  %v1866_v37 = vrot.slane %v1831_v62, %v2532_v20  ;;  %v1842_v32 = vrot.slane %v1830_v14, %v2527_v19  ;;  %v1846_v50 = vrot.slane %v1831_v62, %v2527_v19 }
 0x1fb   : > { %v1878_v43 = vrot.slane %v1830_v14, %v2543_v27  ;;  %v1882_v44 = vrot.slane %v1831_v62, %v2543_v27  ;;  %v1894_v42 = vrot.slane %v1830_v14, %v2557_v33  ;;  %v1898_v19 = vrot.slane %v1831_v62, %v2557_v33 }
 0x1fc   : > { %v1847_v38 = vmul.f32 %v1842_v32, %v1837_v26  ;;  %v1848_v39 = vmul.f32 %v1846_v50, %v1837_v26  ;;  %v1867_v15 = vmul.f32 %v1862_v30, %v1857_v35  ;;  %v1868_v7 = vmul.f32 %v1866_v37, %v1857_v35 }
 0x1fd   : > { %v1910_v18 = vrot.slane %v1830_v14, %v2559_v34  ;;  %v1914_v48 = vrot.slane %v1831_v62, %v2559_v34  ;;  %v1926_v56 = vrot.slane %v1830_v14, %v2574_v46  ;;  %v1930_v33 = vrot.slane %v1831_v62, %v2574_v46 }
 0x1fe   : > { %v1853_v47 = vadd.f32 %v1851_v5, %v1847_v38  ;;  %v1854_v8 = vadd.f32 %v1851_v5, %v1848_v39  ;;  %v1873_v40 = vpop.permute.xlu1 %1872  ;;  %v1958_v12 = vrot.slane %v1830_v14, %v2586_v61  ;;  %v1962_v3 = vrot.slane %v1831_v62, %v2586_v61 }
 0x1ff   : > { %v1883_v10 = vmul.f32 %v1878_v43, %v1873_v40  ;;  %v1884_v20 = vmul.f32 %v1882_v44, %v1873_v40  ;;  %v1915_v1 = vmul.f32 %v1910_v18, %v1905_v53  ;;  %v1916_v17 = vmul.f32 %v1914_v48, %v1905_v53 }
 0x200   : > { %v1869_v55 = vadd.f32 %v1867_v15, %v1853_v47  ;;  %v1870_v41 = vadd.f32 %v1868_v7, %v1854_v8  ;;  %v1942_v4 = vrot.slane %v1830_v14, %v2581_v58  ;;  %v1946_v54 = vrot.slane %v1831_v62, %v2581_v58 }
 0x201   : > { %v1963_v9 = vmul.f32 %v1958_v12, %v1953_v63  ;;  %v1964_v16 = vmul.f32 %v1962_v3, %v1953_v63 }
 0x202   : > { %v1885_v28 = vadd.f32 %v1883_v10, %v1869_v55  ;;  %v1886_v36 = vadd.f32 %v1884_v20, %v1870_v41 }
 0x203   : > { %v1889_v49 = vpop.permute.xlu1 %1888 }
 0x204   : > { %v1899_v2 = vmul.f32 %v1894_v42, %v1889_v49  ;;  %v1900_v21 = vmul.f32 %v1898_v19, %v1889_v49 }
 0x206   : > { %v1901_v27 = vadd.f32 %v1899_v2, %v1885_v28  ;;  %v1902_v22 = vadd.f32 %v1900_v21, %v1886_v36 }
 0x208   : > { %v1921_v6 = vpop.permute.xlu1 %1920  ;;  %v1917_v57 = vadd.f32 %v1915_v1, %v1901_v27  ;;  %v1918_v59 = vadd.f32 %v1916_v17, %v1902_v22 }
 0x209   : > { %v1931_v34 = vmul.f32 %v1926_v56, %v1921_v6  ;;  %v1932_v60 = vmul.f32 %v1930_v33, %v1921_v6 }
 0x20b   : > { %v1933_v45 = vadd.f32 %v1931_v34, %v1917_v57  ;;  %v1934_v46 = vadd.f32 %v1932_v60, %v1918_v59 }
 0x20d   : > { %v1937_v51 = vpop.permute.xlu1 %1936 }
 0x20e   : > { %v1947_v0 = vmul.f32 %v1942_v4, %v1937_v51  ;;  %v1948_v52 = vmul.f32 %v1946_v54, %v1937_v51 }
 0x210   : > { %v1949_v11 = vadd.f32 %v1947_v0, %v1933_v45  ;;  %v1950_v31 = vadd.f32 %v1948_v52, %v1934_v46 }
 0x212   : > { %v1965_v61 = vadd.f32 %v1963_v9, %v1949_v11  ;;  %v1966_v23 = vadd.f32 %v1964_v16, %v1950_v31 }
 0x214   : > { %v1967_v24 = vmax.f32 %v1965_v61, 0.0  ;;  %v1968_v25 = vmax.f32 %v1966_v23, 0.0 }
 0x216   : > { %1969 = vst [vmem:[%s161_s18] sm:$0xff] %v1967_v24  ;;  %1970 = vst [vmem:[%s161_s18 + $0x8] sm:$0xff] %v1968_v25 }
 0x217   : > { %2285 = shalt.err (!%p2282_p5)
}
 0x218   : > { %s2286_s30 = scalar_lea.hbm %s3115_s25, 256  ;;  %s2290_s5 = scalar_lea.hbm %s3159_s2, 512 }
 0x219   : > { %p2287_p6 = scmp.ne.s32.totalorder %s3115_s25, %s2286_s30  ;;  %p2291_p10 = scmp.lt.s32.totalorder %s3115_s25, %s3159_s2 }
 0x21a   : > { %p2292_p11 = scmp.lt.s32.totalorder %s2290_s5, %s2286_s30 }
 0x21b   : > { %p2288_p7 = pnand %p2287_p6, %p2415_p4 }
 0x21c   : > { %p2293_p12 = por %p2292_p11, %p2291_p10 }
 0x21d   : > { %p2289_p9 = pneg %p2288_p7 }
 0x21f   : > { %p2294_p13 = pnand %p2293_p12, %p2289_p9 }
 0x221   : > { %2297 = shalt.err (!%p2294_p13)
}
 0x222   : > { %2091 = dma.vmem_to_hbm [thread:$0]  (%p2415_p4), %s1989_s20, 256, %s3115_s25, %s1972_s26  }
 0x223 PF: > { %p2097_p0 = scmp.ge.s32.totalorder %s2348_s14, 2  ;;  %s2000_s8 = sand.u32 1, %s2328_s9  }
 0x224   : > { %s2001_s15 = scalar_lea.sflag [#allocation3], %s2000_s8 }
 0x225   : > { %p2094_p1 = pnand %p2097_p0, %p2422_p8 }
 0x227   : > { %p2095_p2 = pneg %p2094_p1 }
 0x229   : > { %2323 = dma.done.wait (%p2095_p2), %s2001_s15, 256  }
 0x22a   : > { %2325 = vsyncadd (%p2095_p2), %s2001_s15, 4294967040  ;;  %s15_s14 = sadd.s32 1, %s2348_s14   ;;  %s3162_s9 = smov %s2332_s10 }
 0x22b   : > { %p12_p3 = scmp.ge.s32.totalorder %s15_s14, 4   ;;  %s3163_s10 = smov %s2336_s11 }
 0x22c   : > { %s3164_s11 = smov %s2428_s22  ;;  %s3165_s12 = smov %s2344_s13 }
 0x22d   : > { %s3166_s13 = smov %s3168_s17  ;;  %14 = sbr.rel (!%p12_p3) target bundleno = 4 (0x4), region = 75 }
 0x232   :  { %2006 = vsyncpa [#allocation3], 1 }
 0x233   :  { %2008 = vsyncpa [#allocation3 + $0x1], 1 }

</bundles_post_ra>
